<compile_context>
chip_gen: v5e
topology: v5e:2x2
jax: 0.10.0
libtpu: 0.0.40
codegen_flags: <defaults>
</compile_context>

<pallas_src>
import jax
import jax.numpy as jnp
from jax import lax
from jax.experimental import pallas as pl
from jax.experimental.pallas import tpu as pltpu

# Small, synthetic hyper-parameters consistent with the module's forward():
PIANO_PITCHES = 8      # stands in for PIANO_RANGE[1] - PIANO_RANGE[0]
N_FRAMES = 8           # stands in for N_FRAMES_PER_DATAPOINT
N_HIDDEN = 32          # gru_hp.n_hidden
N_LAYERS = 2           # gru_hp.n_layers
BATCH = 2


# ----------------------------- fused Pallas kernel -------------------------

def _make_fused_kernel(n_layers, B, T, H):
    """Kernel: in-projector + n_layers bidirectional GRU layers, fully in VMEM."""
    H2, H6 = 2 * H, 6 * H

    def kernel(*refs):
        # refs = (x, in_w_t, in_b, [wih_c, bih_c, whh_bd, bhn_c]*n_layers,
        #         o, scratch...)
        x_ref, inw_ref, inb_ref = refs[0], refs[1], refs[2]
        layer_refs = refs[3:3 + 4 * n_layers]
        o_ref = refs[3 + 4 * n_layers]
        scratch_refs = refs[4 + 4 * n_layers:]

        # Direction mask over the gate-major / direction-minor 6H column layout:
        #   [r_f, r_r, z_f, z_r, n_f, n_r]   (each block H wide)
        col = lax.broadcasted_iota(jnp.int32, (1, H6), 1)
        fwd_cols = ((col < H)
                    | ((col >= 2 * H) & (col < 3 * H))
                    | ((col >= 4 * H) & (col < 5 * H)))

        # ---- in-projector: one MXU matmul over the whole time-major slab ----
        h_in = (jnp.dot(x_ref[...], inw_ref[...],
                        preferred_element_type=jnp.float32)
                + inb_ref[...])                                   # (T*B, H)

        def run_layer(xin_2d, w_ref, b_ref, whh_ref, bhn_ref, dst_ref):
            # Batched input-gate projection for BOTH directions & ALL steps.
            xg = (jnp.dot(xin_2d, w_ref[...],
                          preferred_element_type=jnp.float32)
                  + b_ref[...])                                   # (T*B, 6H)
            whh = whh_ref[...]                                    # (2H, 6H) blockdiag
            bhn = bhn_ref[...]                                    # (1, 2H)
            hc = jnp.zeros((B, H2), jnp.float32)                  # [h_fwd | h_rev]
            for s in range(T):                                    # static unroll
                sf, sr = s * B, (T - 1 - s) * B
                # fwd direction reads time s, rev direction reads time T-1-s
                x_t = jnp.where(fwd_cols, xg[sf:sf + B, :], xg[sr:sr + B, :])
                # single block-diagonal hidden matmul for both directions
                hg = jnp.dot(hc, whh, preferred_element_type=jnp.float32)
                r = jax.nn.sigmoid(x_t[:, :H2] + hg[:, :H2])
                z = jax.nn.sigmoid(x_t[:, H2:2 * H2] + hg[:, H2:2 * H2])
                n = jnp.tanh(x_t[:, 2 * H2:] + r * (hg[:, 2 * H2:] + bhn))
                hc = (1.0 - z) * n + z * hc
                # Per-step writes straight into the destination ref (no stacking).
                dst_ref[sf:sf + B, 0:H] = hc[:, :H]      # fwd dir -> time s
                dst_ref[sr:sr + B, H:H2] = hc[:, H:]     # rev dir -> time T-1-s

        xin = h_in
        for l in range(n_layers):
            w_ref, b_ref, whh_ref, bhn_ref = layer_refs[4 * l: 4 * l + 4]
            last = (l == n_layers - 1)
            dst = o_ref if last else scratch_refs[l % max(len(scratch_refs), 1)]
            run_layer(xin, w_ref, b_ref, whh_ref, bhn_ref, dst)
            if not last:
                xin = dst[...]            # (T*B, 2H) slab feeds the next layer

    return kernel


# ------------------------- param pre-processing (wrapper) --------------------

def _combine_dirs(wih_f, wih_r, whh_f, whh_r, bih_f, bih_r, bhh_f, bhh_r, H):
    """Build combined, pre-transposed params for one bidirectional GRU layer.

    Column layout (6H): gate-major, direction-minor -> [r_f, r_r, z_f, z_r, n_f, n_r].
    Returns:
      wih_c  (Din, 6H)  input weights, both directions
      bih_c  (1, 6H)    input bias with the r/z hidden biases folded in
      whh_bd (2H, 6H)   block-diagonal hidden weights ([h_fwd | h_rev] rows)
      bhn_c  (1, 2H)    n-gate hidden bias (must stay inside r*(hn + b_hn))
    """
    def g3(a):
        return a[0:H], a[H:2 * H], a[2 * H:3 * H]

    w_ir_f, w_iz_f, w_in_f = g3(wih_f)
    w_ir_r, w_iz_r, w_in_r = g3(wih_r)
    wih_c = jnp.concatenate(
        [w_ir_f.T, w_ir_r.T, w_iz_f.T, w_iz_r.T, w_in_f.T, w_in_r.T], axis=1)

    b_ir_f, b_iz_f, b_in_f = g3(bih_f)
    b_ir_r, b_iz_r, b_in_r = g3(bih_r)
    b_hr_f, b_hz_f, b_hn_f = g3(bhh_f)
    b_hr_r, b_hz_r, b_hn_r = g3(bhh_r)
    bih_c = jnp.concatenate(
        [b_ir_f + b_hr_f, b_ir_r + b_hr_r,
         b_iz_f + b_hz_f, b_iz_r + b_hz_r,
         b_in_f, b_in_r])[None, :]

    w_hr_f, w_hz_f, w_hn_f = g3(whh_f)
    w_hr_r, w_hz_r, w_hn_r = g3(whh_r)
    Z = jnp.zeros((H, H), jnp.float32)
    top = jnp.concatenate([w_hr_f.T, Z, w_hz_f.T, Z, w_hn_f.T, Z], axis=1)
    bot = jnp.concatenate([Z, w_hr_r.T, Z, w_hz_r.T, Z, w_hn_r.T], axis=1)
    whh_bd = jnp.concatenate([top, bot], axis=0)

    bhn_c = jnp.concatenate([b_hn_f, b_hn_r])[None, :]
    return wih_c, bih_c, whh_bd, bhn_c


def prepare_fused_params(params):
    H = N_HIDDEN
    fp = {
        "in_w_t": params["in_w"].T,              # (Din0, H), pre-transposed
        "in_b": params["in_b"].reshape(1, H),
        "layers": [],
    }
    for lp in params["gru"]:
        fp["layers"].append(_combine_dirs(
            lp["wih"], lp["wih_r"], lp["whh"], lp["whh_r"],
            lp["bih"], lp["bih_r"], lp["bhh"], lp["bhh_r"], H))
    return fp


# --------------------------- model forward (glue) ---------------------------

def gru_inner_model_forward(x, fused_params):
    """x: (B, 2, n_pitches, n_frames) float32 -> (B, n_frames, 2*N_HIDDEN)."""
    B, C, P, F = x.shape
    assert C == 2
    T, Din0 = F, C * P
    # x.view(B, 2P, F).permute(0, 2, 1) -> (B, T, 2P); the kernel wants the
    # time-major (T*B, 2P) slab so per-step slices are contiguous sublane rows.
    x_slab = jnp.transpose(x.reshape(B, Din0, T), (2, 0, 1)).reshape(T * B, Din0)

    H = fused_params["in_w_t"].shape[1]
    n_layers = len(fused_params["layers"])
    N = T * B

    args = [x_slab, fused_params["in_w_t"], fused_params["in_b"]]
    for lw in fused_params["layers"]:
        args.extend(lw)

    n_scratch = min(n_layers - 1, 2)           # ping-pong inter-layer slabs
    kernel = _make_fused_kernel(n_layers, B, T, H)
    out2d = pl.pallas_call(
        kernel,
        out_shape=jax.ShapeDtypeStruct((N, 2 * H), jnp.float32),
        in_specs=[pl.BlockSpec(memory_space=pltpu.MemorySpace.VMEM)] * len(args),
        out_specs=pl.BlockSpec(memory_space=pltpu.MemorySpace.VMEM),
        scratch_shapes=[pltpu.VMEM((N, 2 * H), jnp.float32)] * n_scratch,
    )(*args)
    # time-major (T*B, 2H) -> (B, T, 2H): pure layout plumbing outside the kernel.
    return jnp.transpose(out2d.reshape(T, B, 2 * H), (1, 0, 2))
    # TODO(synk): inter-layer dropout is identity in eval mode; omitted here.


# ------------------------- pure-JAX reference (check) ------------------------

def _ref_gru_dir(x, wih, whh, bih, bhh):
    B, T, _ = x.shape
    H = whh.shape[1]
    h = jnp.zeros((B, H), jnp.float32)
    outs = []
    for t in range(T):
        xg = x[:, t, :] @ wih.T + bih
        hg = h @ whh.T + bhh
        r = jax.nn.sigmoid(xg[:, :H] + hg[:, :H])
        z = jax.nn.sigmoid(xg[:, H:2 * H] + hg[:, H:2 * H])
        n = jnp.tanh(xg[:, 2 * H:] + r * hg[:, 2 * H:])
        h = (1.0 - z) * n + z * h
        outs.append(h)
    return jnp.stack(outs, axis=1)


def reference_forward(x, params):
    B, C, P, F = x.shape
    x = jnp.transpose(x.reshape(B, C * P, F), (0, 2, 1))
    h = x @ params["in_w"].T + params["in_b"]
    for l in range(N_LAYERS):
        lp = params["gru"][l]
        fwd = _ref_gru_dir(h, lp["wih"], lp["whh"], lp["bih"], lp["bhh"])
        bwd = jnp.flip(
            _ref_gru_dir(jnp.flip(h, axis=1),
                         lp["wih_r"], lp["whh_r"], lp["bih_r"], lp["bhh_r"]),
            axis=1)
        h = jnp.concatenate([fwd, bwd], axis=-1)
    return h


# ------------------------------ param init ----------------------------------

def init_params(key):
    H = N_HIDDEN
    Din0 = 2 * PIANO_PITCHES
    params = {}
    keys = jax.random.split(key, 2 + 8 * N_LAYERS)
    k_lin = 1.0 / jnp.sqrt(jnp.float32(Din0))
    params["in_w"] = jax.random.uniform(keys[0], (H, Din0), jnp.float32, -k_lin, k_lin)
    params["in_b"] = jax.random.uniform(keys[1], (H,), jnp.float32, -k_lin, k_lin)
    k_gru = 1.0 / jnp.sqrt(jnp.float32(H))
    gru = []
    ki = 2
    for l in range(N_LAYERS):
        din = H if l == 0 else 2 * H
        layer = {}
        for suf, shape in [("wih", (3 * H, din)), ("whh", (3 * H, H)),
                           ("bih", (3 * H,)), ("bhh", (3 * H,)),
                           ("wih_r", (3 * H, din)), ("whh_r", (3 * H, H)),
                           ("bih_r", (3 * H,)), ("bhh_r", (3 * H,))]:
            layer[suf] = jax.random.uniform(keys[ki], shape, jnp.float32, -k_gru, k_gru)
            ki += 1
        gru.append(layer)
    params["gru"] = gru
    return params


# --------------------------------- main --------------------------------------

if __name__ == "__main__":
    key = jax.random.PRNGKey(0)
    k_p, k_x = jax.random.split(key)
    params = init_params(k_p)
    fused_params = prepare_fused_params(params)
    x = jax.random.normal(k_x, (BATCH, 2, PIANO_PITCHES, N_FRAMES), jnp.float32)

    out = gru_inner_model_forward(x, fused_params)
    out = jax.block_until_ready(out)

    ref = reference_forward(x, params)
    assert out.shape == (BATCH, N_FRAMES, 2 * N_HIDDEN), out.shape
    assert jnp.allclose(out, ref, atol=1e-5, rtol=1e-5), \
        float(jnp.max(jnp.abs(out - ref)))

    print("KERNEL_OK")
</pallas_src>

<mosaic_0001>
module attributes {stable_mosaic.version = 11 : i64} {
  func.func @kernel(%arg0: memref<16x16xf32, #tpu.memory_space<vmem>>, %arg1: memref<16x32xf32, #tpu.memory_space<vmem>>, %arg2: memref<1x32xf32, #tpu.memory_space<vmem>>, %arg3: memref<32x192xf32, #tpu.memory_space<vmem>>, %arg4: memref<1x192xf32, #tpu.memory_space<vmem>>, %arg5: memref<64x192xf32, #tpu.memory_space<vmem>>, %arg6: memref<1x64xf32, #tpu.memory_space<vmem>>, %arg7: memref<64x192xf32, #tpu.memory_space<vmem>>, %arg8: memref<1x192xf32, #tpu.memory_space<vmem>>, %arg9: memref<64x192xf32, #tpu.memory_space<vmem>>, %arg10: memref<1x64xf32, #tpu.memory_space<vmem>>, %arg11: memref<16x64xf32, #tpu.memory_space<vmem>>, %arg12: memref<16x64xf32, #tpu.memory_space<vmem>>) attributes {dimension_semantics = [], scalar_prefetch = 0 : i64, scratch_operands = 1 : i64, tpu.core_type = #tpu.core_type<tc>} {
    %0 = tpu.iota {dimensions = array<i32: 1>} : vector<1x192xi32>
    %c32_i32 = arith.constant 32 : i32
    %1 = vector.broadcast %c32_i32 : i32 to vector<1x192xi32>
    %2 = arith.cmpi slt, %0, %1 : vector<1x192xi32>
    %c64_i32 = arith.constant 64 : i32
    %3 = vector.broadcast %c64_i32 : i32 to vector<1x192xi32>
    %4 = arith.cmpi sge, %0, %3 : vector<1x192xi32>
    %c96_i32 = arith.constant 96 : i32
    %5 = vector.broadcast %c96_i32 : i32 to vector<1x192xi32>
    %6 = arith.cmpi slt, %0, %5 : vector<1x192xi32>
    %7 = arith.andi %4, %6 : vector<1x192xi1>
    %8 = arith.ori %2, %7 : vector<1x192xi1>
    %c128_i32 = arith.constant 128 : i32
    %9 = vector.broadcast %c128_i32 : i32 to vector<1x192xi32>
    %10 = arith.cmpi sge, %0, %9 : vector<1x192xi32>
    %c160_i32 = arith.constant 160 : i32
    %11 = vector.broadcast %c160_i32 : i32 to vector<1x192xi32>
    %12 = arith.cmpi slt, %0, %11 : vector<1x192xi32>
    %13 = arith.andi %10, %12 : vector<1x192xi1>
    %14 = arith.ori %8, %13 : vector<1x192xi1>
    %c0 = arith.constant 0 : index
    %c0_0 = arith.constant 0 : index
    %15 = vector.load %arg0[%c0, %c0_0] : memref<16x16xf32, #tpu.memory_space<vmem>>, vector<16x16xf32>
    %c0_1 = arith.constant 0 : index
    %c0_2 = arith.constant 0 : index
    %16 = vector.load %arg1[%c0_1, %c0_2] : memref<16x32xf32, #tpu.memory_space<vmem>>, vector<16x32xf32>
    %cst = arith.constant dense<0.000000e+00> : vector<16x32xf32>
    %17 = tpu.matmul %15, %16, %cst {dimension_numbers = #tpu.dot_dimension_numbers<[1], [0], [0], [1], [0, 0, 1, 1], [], []>} : vector<16x16xf32>, vector<16x32xf32>, vector<16x32xf32> -> vector<16x32xf32>
    %c0_3 = arith.constant 0 : index
    %c0_4 = arith.constant 0 : index
    %18 = vector.load %arg2[%c0_3, %c0_4] : memref<1x32xf32, #tpu.memory_space<vmem>>, vector<1x32xf32>
    %19 = vector.broadcast %18 : vector<1x32xf32> to vector<16x32xf32>
    %20 = arith.addf %17, %19 : vector<16x32xf32>
    %c0_5 = arith.constant 0 : index
    %c0_6 = arith.constant 0 : index
    %21 = vector.load %arg3[%c0_5, %c0_6] : memref<32x192xf32, #tpu.memory_space<vmem>>, vector<32x192xf32>
    %cst_7 = arith.constant dense<0.000000e+00> : vector<16x192xf32>
    %22 = tpu.matmul %20, %21, %cst_7 {dimension_numbers = #tpu.dot_dimension_numbers<[1], [0], [0], [1], [0, 0, 1, 1], [], []>} : vector<16x32xf32>, vector<32x192xf32>, vector<16x192xf32> -> vector<16x192xf32>
    %c0_8 = arith.constant 0 : index
    %c0_9 = arith.constant 0 : index
    %23 = vector.load %arg4[%c0_8, %c0_9] : memref<1x192xf32, #tpu.memory_space<vmem>>, vector<1x192xf32>
    %24 = vector.broadcast %23 : vector<1x192xf32> to vector<16x192xf32>
    %25 = arith.addf %22, %24 : vector<16x192xf32>
    %c0_10 = arith.constant 0 : index
    %c0_11 = arith.constant 0 : index
    %26 = vector.load %arg5[%c0_10, %c0_11] : memref<64x192xf32, #tpu.memory_space<vmem>>, vector<64x192xf32>
    %c0_12 = arith.constant 0 : index
    %c0_13 = arith.constant 0 : index
    %27 = vector.load %arg6[%c0_12, %c0_13] : memref<1x64xf32, #tpu.memory_space<vmem>>, vector<1x64xf32>
    %cst_14 = arith.constant 0.000000e+00 : f32
    %28 = vector.broadcast %cst_14 : f32 to vector<2x64xf32>
    %29 = vector.extract_strided_slice %25 {offsets = [0, 0], sizes = [2, 192], strides = [1, 1]} : vector<16x192xf32> to vector<2x192xf32>
    %30 = vector.extract_strided_slice %25 {offsets = [14, 0], sizes = [2, 192], strides = [1, 1]} : vector<16x192xf32> to vector<2x192xf32>
    %31 = vector.shape_cast %14 : vector<1x192xi1> to vector<1x192xi1>
    %32 = vector.broadcast %31 : vector<1x192xi1> to vector<2x192xi1>
    %33 = arith.select %32, %29, %30 : vector<2x192xi1>, vector<2x192xf32>
    %cst_15 = arith.constant dense<0.000000e+00> : vector<2x192xf32>
    %34 = tpu.matmul %28, %26, %cst_15 {dimension_numbers = #tpu.dot_dimension_numbers<[1], [0], [0], [1], [0, 0, 1, 1], [], []>} : vector<2x64xf32>, vector<64x192xf32>, vector<2x192xf32> -> vector<2x192xf32>
    %35 = vector.extract_strided_slice %33 {offsets = [0, 0], sizes = [2, 64], strides = [1, 1]} : vector<2x192xf32> to vector<2x64xf32>
    %36 = vector.extract_strided_slice %34 {offsets = [0, 0], sizes = [2, 64], strides = [1, 1]} : vector<2x192xf32> to vector<2x64xf32>
    %37 = arith.addf %35, %36 : vector<2x64xf32>
    %38 = arith.negf %37 : vector<2x64xf32>
    %39 = math.exp %38 : vector<2x64xf32>
    %cst_16 = arith.constant 1.000000e+00 : f32
    %40 = vector.broadcast %cst_16 : f32 to vector<2x64xf32>
    %41 = arith.addf %40, %39 : vector<2x64xf32>
    %42 = arith.divf %40, %41 : vector<2x64xf32>
    %43 = vector.extract_strided_slice %33 {offsets = [0, 64], sizes = [2, 64], strides = [1, 1]} : vector<2x192xf32> to vector<2x64xf32>
    %44 = vector.extract_strided_slice %34 {offsets = [0, 64], sizes = [2, 64], strides = [1, 1]} : vector<2x192xf32> to vector<2x64xf32>
    %45 = arith.addf %43, %44 : vector<2x64xf32>
    %46 = arith.negf %45 : vector<2x64xf32>
    %47 = math.exp %46 : vector<2x64xf32>
    %cst_17 = arith.constant 1.000000e+00 : f32
    %48 = vector.broadcast %cst_17 : f32 to vector<2x64xf32>
    %49 = arith.addf %48, %47 : vector<2x64xf32>
    %50 = arith.divf %48, %49 : vector<2x64xf32>
    %51 = vector.extract_strided_slice %33 {offsets = [0, 128], sizes = [2, 64], strides = [1, 1]} : vector<2x192xf32> to vector<2x64xf32>
    %52 = vector.extract_strided_slice %34 {offsets = [0, 128], sizes = [2, 64], strides = [1, 1]} : vector<2x192xf32> to vector<2x64xf32>
    %53 = vector.broadcast %27 : vector<1x64xf32> to vector<2x64xf32>
    %54 = arith.addf %52, %53 : vector<2x64xf32>
    %55 = arith.mulf %42, %54 : vector<2x64xf32>
    %56 = arith.addf %51, %55 : vector<2x64xf32>
    %57 = math.tanh %56 : vector<2x64xf32>
    %cst_18 = arith.constant 1.000000e+00 : f32
    %58 = vector.broadcast %cst_18 : f32 to vector<2x64xf32>
    %59 = arith.subf %58, %50 : vector<2x64xf32>
    %60 = arith.mulf %59, %57 : vector<2x64xf32>
    %61 = arith.mulf %50, %28 : vector<2x64xf32>
    %62 = arith.addf %60, %61 : vector<2x64xf32>
    %63 = vector.extract_strided_slice %62 {offsets = [0, 0], sizes = [2, 32], strides = [1, 1]} : vector<2x64xf32> to vector<2x32xf32>
    %c0_19 = arith.constant 0 : index
    %c0_20 = arith.constant 0 : index
    %64 = vector.load %arg12[%c0_19, %c0_20] : memref<16x64xf32, #tpu.memory_space<vmem>>, vector<2x32xf32>
    tpu.vector_store %arg12[%c0_19, %c0_20], %63 {strides = array<i32>} : memref<16x64xf32, #tpu.memory_space<vmem>>, vector<2x32xf32>,
    %65 = vector.extract_strided_slice %62 {offsets = [0, 32], sizes = [2, 32], strides = [1, 1]} : vector<2x64xf32> to vector<2x32xf32>
    %c14 = arith.constant 14 : index
    %c32 = arith.constant 32 : index
    %66 = vector.load %arg12[%c14, %c32] : memref<16x64xf32, #tpu.memory_space<vmem>>, vector<2x32xf32>
    tpu.vector_store %arg12[%c14, %c32], %65 {strides = array<i32>} : memref<16x64xf32, #tpu.memory_space<vmem>>, vector<2x32xf32>,
    %67 = vector.extract_strided_slice %25 {offsets = [2, 0], sizes = [2, 192], strides = [1, 1]} : vector<16x192xf32> to vector<2x192xf32>
    %68 = vector.extract_strided_slice %25 {offsets = [12, 0], sizes = [2, 192], strides = [1, 1]} : vector<16x192xf32> to vector<2x192xf32>
    %69 = vector.shape_cast %14 : vector<1x192xi1> to vector<1x192xi1>
    %70 = vector.broadcast %69 : vector<1x192xi1> to vector<2x192xi1>
    %71 = arith.select %70, %67, %68 : vector<2x192xi1>, vector<2x192xf32>
    %cst_21 = arith.constant dense<0.000000e+00> : vector<2x192xf32>
    %72 = tpu.matmul %62, %26, %cst_21 {dimension_numbers = #tpu.dot_dimension_numbers<[1], [0], [0], [1], [0, 0, 1, 1], [], []>} : vector<2x64xf32>, vector<64x192xf32>, vector<2x192xf32> -> vector<2x192xf32>
    %73 = vector.extract_strided_slice %71 {offsets = [0, 0], sizes = [2, 64], strides = [1, 1]} : vector<2x192xf32> to vector<2x64xf32>
    %74 = vector.extract_strided_slice %72 {offsets = [0, 0], sizes = [2, 64], strides = [1, 1]} : vector<2x192xf32> to vector<2x64xf32>
    %75 = arith.addf %73, %74 : vector<2x64xf32>
    %76 = arith.negf %75 : vector<2x64xf32>
    %77 = math.exp %76 : vector<2x64xf32>
    %cst_22 = arith.constant 1.000000e+00 : f32
    %78 = vector.broadcast %cst_22 : f32 to vector<2x64xf32>
    %79 = arith.addf %78, %77 : vector<2x64xf32>
    %80 = arith.divf %78, %79 : vector<2x64xf32>
    %81 = vector.extract_strided_slice %71 {offsets = [0, 64], sizes = [2, 64], strides = [1, 1]} : vector<2x192xf32> to vector<2x64xf32>
    %82 = vector.extract_strided_slice %72 {offsets = [0, 64], sizes = [2, 64], strides = [1, 1]} : vector<2x192xf32> to vector<2x64xf32>
    %83 = arith.addf %81, %82 : vector<2x64xf32>
    %84 = arith.negf %83 : vector<2x64xf32>
    %85 = math.exp %84 : vector<2x64xf32>
    %cst_23 = arith.constant 1.000000e+00 : f32
    %86 = vector.broadcast %cst_23 : f32 to vector<2x64xf32>
    %87 = arith.addf %86, %85 : vector<2x64xf32>
    %88 = arith.divf %86, %87 : vector<2x64xf32>
    %89 = vector.extract_strided_slice %71 {offsets = [0, 128], sizes = [2, 64], strides = [1, 1]} : vector<2x192xf32> to vector<2x64xf32>
    %90 = vector.extract_strided_slice %72 {offsets = [0, 128], sizes = [2, 64], strides = [1, 1]} : vector<2x192xf32> to vector<2x64xf32>
    %91 = vector.broadcast %27 : vector<1x64xf32> to vector<2x64xf32>
    %92 = arith.addf %90, %91 : vector<2x64xf32>
    %93 = arith.mulf %80, %92 : vector<2x64xf32>
    %94 = arith.addf %89, %93 : vector<2x64xf32>
    %95 = math.tanh %94 : vector<2x64xf32>
    %cst_24 = arith.constant 1.000000e+00 : f32
    %96 = vector.broadcast %cst_24 : f32 to vector<2x64xf32>
    %97 = arith.subf %96, %88 : vector<2x64xf32>
    %98 = arith.mulf %97, %95 : vector<2x64xf32>
    %99 = arith.mulf %88, %62 : vector<2x64xf32>
    %100 = arith.addf %98, %99 : vector<2x64xf32>
    %101 = vector.extract_strided_slice %100 {offsets = [0, 0], sizes = [2, 32], strides = [1, 1]} : vector<2x64xf32> to vector<2x32xf32>
    %c2 = arith.constant 2 : index
    %c0_25 = arith.constant 0 : index
    %102 = vector.load %arg12[%c2, %c0_25] : memref<16x64xf32, #tpu.memory_space<vmem>>, vector<2x32xf32>
    tpu.vector_store %arg12[%c2, %c0_25], %101 {strides = array<i32>} : memref<16x64xf32, #tpu.memory_space<vmem>>, vector<2x32xf32>,
    %103 = vector.extract_strided_slice %100 {offsets = [0, 32], sizes = [2, 32], strides = [1, 1]} : vector<2x64xf32> to vector<2x32xf32>
    %c12 = arith.constant 12 : index
    %c32_26 = arith.constant 32 : index
    %104 = vector.load %arg12[%c12, %c32_26] : memref<16x64xf32, #tpu.memory_space<vmem>>, vector<2x32xf32>
    tpu.vector_store %arg12[%c12, %c32_26], %103 {strides = array<i32>} : memref<16x64xf32, #tpu.memory_space<vmem>>, vector<2x32xf32>,
    %105 = vector.extract_strided_slice %25 {offsets = [4, 0], sizes = [2, 192], strides = [1, 1]} : vector<16x192xf32> to vector<2x192xf32>
    %106 = vector.extract_strided_slice %25 {offsets = [10, 0], sizes = [2, 192], strides = [1, 1]} : vector<16x192xf32> to vector<2x192xf32>
    %107 = vector.shape_cast %14 : vector<1x192xi1> to vector<1x192xi1>
    %108 = vector.broadcast %107 : vector<1x192xi1> to vector<2x192xi1>
    %109 = arith.select %108, %105, %106 : vector<2x192xi1>, vector<2x192xf32>
    %cst_27 = arith.constant dense<0.000000e+00> : vector<2x192xf32>
    %110 = tpu.matmul %100, %26, %cst_27 {dimension_numbers = #tpu.dot_dimension_numbers<[1], [0], [0], [1], [0, 0, 1, 1], [], []>} : vector<2x64xf32>, vector<64x192xf32>, vector<2x192xf32> -> vector<2x192xf32>
    %111 = vector.extract_strided_slice %109 {offsets = [0, 0], sizes = [2, 64], strides = [1, 1]} : vector<2x192xf32> to vector<2x64xf32>
    %112 = vector.extract_strided_slice %110 {offsets = [0, 0], sizes = [2, 64], strides = [1, 1]} : vector<2x192xf32> to vector<2x64xf32>
    %113 = arith.addf %111, %112 : vector<2x64xf32>
    %114 = arith.negf %113 : vector<2x64xf32>
    %115 = math.exp %114 : vector<2x64xf32>
    %cst_28 = arith.constant 1.000000e+00 : f32
    %116 = vector.broadcast %cst_28 : f32 to vector<2x64xf32>
    %117 = arith.addf %116, %115 : vector<2x64xf32>
    %118 = arith.divf %116, %117 : vector<2x64xf32>
    %119 = vector.extract_strided_slice %109 {offsets = [0, 64], sizes = [2, 64], strides = [1, 1]} : vector<2x192xf32> to vector<2x64xf32>
    %120 = vector.extract_strided_slice %110 {offsets = [0, 64], sizes = [2, 64], strides = [1, 1]} : vector<2x192xf32> to vector<2x64xf32>
    %121 = arith.addf %119, %120 : vector<2x64xf32>
    %122 = arith.negf %121 : vector<2x64xf32>
    %123 = math.exp %122 : vector<2x64xf32>
    %cst_29 = arith.constant 1.000000e+00 : f32
    %124 = vector.broadcast %cst_29 : f32 to vector<2x64xf32>
    %125 = arith.addf %124, %123 : vector<2x64xf32>
    %126 = arith.divf %124, %125 : vector<2x64xf32>
    %127 = vector.extract_strided_slice %109 {offsets = [0, 128], sizes = [2, 64], strides = [1, 1]} : vector<2x192xf32> to vector<2x64xf32>
    %128 = vector.extract_strided_slice %110 {offsets = [0, 128], sizes = [2, 64], strides = [1, 1]} : vector<2x192xf32> to vector<2x64xf32>
    %129 = vector.broadcast %27 : vector<1x64xf32> to vector<2x64xf32>
    %130 = arith.addf %128, %129 : vector<2x64xf32>
    %131 = arith.mulf %118, %130 : vector<2x64xf32>
    %132 = arith.addf %127, %131 : vector<2x64xf32>
    %133 = math.tanh %132 : vector<2x64xf32>
    %cst_30 = arith.constant 1.000000e+00 : f32
    %134 = vector.broadcast %cst_30 : f32 to vector<2x64xf32>
    %135 = arith.subf %134, %126 : vector<2x64xf32>
    %136 = arith.mulf %135, %133 : vector<2x64xf32>
    %137 = arith.mulf %126, %100 : vector<2x64xf32>
    %138 = arith.addf %136, %137 : vector<2x64xf32>
    %139 = vector.extract_strided_slice %138 {offsets = [0, 0], sizes = [2, 32], strides = [1, 1]} : vector<2x64xf32> to vector<2x32xf32>
    %c4 = arith.constant 4 : index
    %c0_31 = arith.constant 0 : index
    %140 = vector.load %arg12[%c4, %c0_31] : memref<16x64xf32, #tpu.memory_space<vmem>>, vector<2x32xf32>
    tpu.vector_store %arg12[%c4, %c0_31], %139 {strides = array<i32>} : memref<16x64xf32, #tpu.memory_space<vmem>>, vector<2x32xf32>,
    %141 = vector.extract_strided_slice %138 {offsets = [0, 32], sizes = [2, 32], strides = [1, 1]} : vector<2x64xf32> to vector<2x32xf32>
    %c10 = arith.constant 10 : index
    %c32_32 = arith.constant 32 : index
    %142 = vector.load %arg12[%c10, %c32_32] : memref<16x64xf32, #tpu.memory_space<vmem>>, vector<2x32xf32>
    tpu.vector_store %arg12[%c10, %c32_32], %141 {strides = array<i32>} : memref<16x64xf32, #tpu.memory_space<vmem>>, vector<2x32xf32>,
    %143 = vector.extract_strided_slice %25 {offsets = [6, 0], sizes = [2, 192], strides = [1, 1]} : vector<16x192xf32> to vector<2x192xf32>
    %144 = vector.extract_strided_slice %25 {offsets = [8, 0], sizes = [2, 192], strides = [1, 1]} : vector<16x192xf32> to vector<2x192xf32>
    %145 = vector.shape_cast %14 : vector<1x192xi1> to vector<1x192xi1>
    %146 = vector.broadcast %145 : vector<1x192xi1> to vector<2x192xi1>
    %147 = arith.select %146, %143, %144 : vector<2x192xi1>, vector<2x192xf32>
    %cst_33 = arith.constant dense<0.000000e+00> : vector<2x192xf32>
    %148 = tpu.matmul %138, %26, %cst_33 {dimension_numbers = #tpu.dot_dimension_numbers<[1], [0], [0], [1], [0, 0, 1, 1], [], []>} : vector<2x64xf32>, vector<64x192xf32>, vector<2x192xf32> -> vector<2x192xf32>
    %149 = vector.extract_strided_slice %147 {offsets = [0, 0], sizes = [2, 64], strides = [1, 1]} : vector<2x192xf32> to vector<2x64xf32>
    %150 = vector.extract_strided_slice %148 {offsets = [0, 0], sizes = [2, 64], strides = [1, 1]} : vector<2x192xf32> to vector<2x64xf32>
    %151 = arith.addf %149, %150 : vector<2x64xf32>
    %152 = arith.negf %151 : vector<2x64xf32>
    %153 = math.exp %152 : vector<2x64xf32>
    %cst_34 = arith.constant 1.000000e+00 : f32
    %154 = vector.broadcast %cst_34 : f32 to vector<2x64xf32>
    %155 = arith.addf %154, %153 : vector<2x64xf32>
    %156 = arith.divf %154, %155 : vector<2x64xf32>
    %157 = vector.extract_strided_slice %147 {offsets = [0, 64], sizes = [2, 64], strides = [1, 1]} : vector<2x192xf32> to vector<2x64xf32>
    %158 = vector.extract_strided_slice %148 {offsets = [0, 64], sizes = [2, 64], strides = [1, 1]} : vector<2x192xf32> to vector<2x64xf32>
    %159 = arith.addf %157, %158 : vector<2x64xf32>
    %160 = arith.negf %159 : vector<2x64xf32>
    %161 = math.exp %160 : vector<2x64xf32>
    %cst_35 = arith.constant 1.000000e+00 : f32
    %162 = vector.broadcast %cst_35 : f32 to vector<2x64xf32>
    %163 = arith.addf %162, %161 : vector<2x64xf32>
    %164 = arith.divf %162, %163 : vector<2x64xf32>
    %165 = vector.extract_strided_slice %147 {offsets = [0, 128], sizes = [2, 64], strides = [1, 1]} : vector<2x192xf32> to vector<2x64xf32>
    %166 = vector.extract_strided_slice %148 {offsets = [0, 128], sizes = [2, 64], strides = [1, 1]} : vector<2x192xf32> to vector<2x64xf32>
    %167 = vector.broadcast %27 : vector<1x64xf32> to vector<2x64xf32>
    %168 = arith.addf %166, %167 : vector<2x64xf32>
    %169 = arith.mulf %156, %168 : vector<2x64xf32>
    %170 = arith.addf %165, %169 : vector<2x64xf32>
    %171 = math.tanh %170 : vector<2x64xf32>
    %cst_36 = arith.constant 1.000000e+00 : f32
    %172 = vector.broadcast %cst_36 : f32 to vector<2x64xf32>
    %173 = arith.subf %172, %164 : vector<2x64xf32>
    %174 = arith.mulf %173, %171 : vector<2x64xf32>
    %175 = arith.mulf %164, %138 : vector<2x64xf32>
    %176 = arith.addf %174, %175 : vector<2x64xf32>
    %177 = vector.extract_strided_slice %176 {offsets = [0, 0], sizes = [2, 32], strides = [1, 1]} : vector<2x64xf32> to vector<2x32xf32>
    %c6 = arith.constant 6 : index
    %c0_37 = arith.constant 0 : index
    %178 = vector.load %arg12[%c6, %c0_37] : memref<16x64xf32, #tpu.memory_space<vmem>>, vector<2x32xf32>
    tpu.vector_store %arg12[%c6, %c0_37], %177 {strides = array<i32>} : memref<16x64xf32, #tpu.memory_space<vmem>>, vector<2x32xf32>,
    %179 = vector.extract_strided_slice %176 {offsets = [0, 32], sizes = [2, 32], strides = [1, 1]} : vector<2x64xf32> to vector<2x32xf32>
    %c8 = arith.constant 8 : index
    %c32_38 = arith.constant 32 : index
    %180 = vector.load %arg12[%c8, %c32_38] : memref<16x64xf32, #tpu.memory_space<vmem>>, vector<2x32xf32>
    tpu.vector_store %arg12[%c8, %c32_38], %179 {strides = array<i32>} : memref<16x64xf32, #tpu.memory_space<vmem>>, vector<2x32xf32>,
    %181 = vector.extract_strided_slice %25 {offsets = [8, 0], sizes = [2, 192], strides = [1, 1]} : vector<16x192xf32> to vector<2x192xf32>
    %182 = vector.extract_strided_slice %25 {offsets = [6, 0], sizes = [2, 192], strides = [1, 1]} : vector<16x192xf32> to vector<2x192xf32>
    %183 = vector.shape_cast %14 : vector<1x192xi1> to vector<1x192xi1>
    %184 = vector.broadcast %183 : vector<1x192xi1> to vector<2x192xi1>
    %185 = arith.select %184, %181, %182 : vector<2x192xi1>, vector<2x192xf32>
    %cst_39 = arith.constant dense<0.000000e+00> : vector<2x192xf32>
    %186 = tpu.matmul %176, %26, %cst_39 {dimension_numbers = #tpu.dot_dimension_numbers<[1], [0], [0], [1], [0, 0, 1, 1], [], []>} : vector<2x64xf32>, vector<64x192xf32>, vector<2x192xf32> -> vector<2x192xf32>
    %187 = vector.extract_strided_slice %185 {offsets = [0, 0], sizes = [2, 64], strides = [1, 1]} : vector<2x192xf32> to vector<2x64xf32>
    %188 = vector.extract_strided_slice %186 {offsets = [0, 0], sizes = [2, 64], strides = [1, 1]} : vector<2x192xf32> to vector<2x64xf32>
    %189 = arith.addf %187, %188 : vector<2x64xf32>
    %190 = arith.negf %189 : vector<2x64xf32>
    %191 = math.exp %190 : vector<2x64xf32>
    %cst_40 = arith.constant 1.000000e+00 : f32
    %192 = vector.broadcast %cst_40 : f32 to vector<2x64xf32>
    %193 = arith.addf %192, %191 : vector<2x64xf32>
    %194 = arith.divf %192, %193 : vector<2x64xf32>
    %195 = vector.extract_strided_slice %185 {offsets = [0, 64], sizes = [2, 64], strides = [1, 1]} : vector<2x192xf32> to vector<2x64xf32>
    %196 = vector.extract_strided_slice %186 {offsets = [0, 64], sizes = [2, 64], strides = [1, 1]} : vector<2x192xf32> to vector<2x64xf32>
    %197 = arith.addf %195, %196 : vector<2x64xf32>
    %198 = arith.negf %197 : vector<2x64xf32>
    %199 = math.exp %198 : vector<2x64xf32>
    %cst_41 = arith.constant 1.000000e+00 : f32
    %200 = vector.broadcast %cst_41 : f32 to vector<2x64xf32>
    %201 = arith.addf %200, %199 : vector<2x64xf32>
    %202 = arith.divf %200, %201 : vector<2x64xf32>
    %203 = vector.extract_strided_slice %185 {offsets = [0, 128], sizes = [2, 64], strides = [1, 1]} : vector<2x192xf32> to vector<2x64xf32>
    %204 = vector.extract_strided_slice %186 {offsets = [0, 128], sizes = [2, 64], strides = [1, 1]} : vector<2x192xf32> to vector<2x64xf32>
    %205 = vector.broadcast %27 : vector<1x64xf32> to vector<2x64xf32>
    %206 = arith.addf %204, %205 : vector<2x64xf32>
    %207 = arith.mulf %194, %206 : vector<2x64xf32>
    %208 = arith.addf %203, %207 : vector<2x64xf32>
    %209 = math.tanh %208 : vector<2x64xf32>
    %cst_42 = arith.constant 1.000000e+00 : f32
    %210 = vector.broadcast %cst_42 : f32 to vector<2x64xf32>
    %211 = arith.subf %210, %202 : vector<2x64xf32>
    %212 = arith.mulf %211, %209 : vector<2x64xf32>
    %213 = arith.mulf %202, %176 : vector<2x64xf32>
    %214 = arith.addf %212, %213 : vector<2x64xf32>
    %215 = vector.extract_strided_slice %214 {offsets = [0, 0], sizes = [2, 32], strides = [1, 1]} : vector<2x64xf32> to vector<2x32xf32>
    %c8_43 = arith.constant 8 : index
    %c0_44 = arith.constant 0 : index
    %216 = vector.load %arg12[%c8_43, %c0_44] : memref<16x64xf32, #tpu.memory_space<vmem>>, vector<2x32xf32>
    tpu.vector_store %arg12[%c8_43, %c0_44], %215 {strides = array<i32>} : memref<16x64xf32, #tpu.memory_space<vmem>>, vector<2x32xf32>,
    %217 = vector.extract_strided_slice %214 {offsets = [0, 32], sizes = [2, 32], strides = [1, 1]} : vector<2x64xf32> to vector<2x32xf32>
    %c6_45 = arith.constant 6 : index
    %c32_46 = arith.constant 32 : index
    %218 = vector.load %arg12[%c6_45, %c32_46] : memref<16x64xf32, #tpu.memory_space<vmem>>, vector<2x32xf32>
    tpu.vector_store %arg12[%c6_45, %c32_46], %217 {strides = array<i32>} : memref<16x64xf32, #tpu.memory_space<vmem>>, vector<2x32xf32>,
    %219 = vector.extract_strided_slice %25 {offsets = [10, 0], sizes = [2, 192], strides = [1, 1]} : vector<16x192xf32> to vector<2x192xf32>
    %220 = vector.extract_strided_slice %25 {offsets = [4, 0], sizes = [2, 192], strides = [1, 1]} : vector<16x192xf32> to vector<2x192xf32>
    %221 = vector.shape_cast %14 : vector<1x192xi1> to vector<1x192xi1>
    %222 = vector.broadcast %221 : vector<1x192xi1> to vector<2x192xi1>
    %223 = arith.select %222, %219, %220 : vector<2x192xi1>, vector<2x192xf32>
    %cst_47 = arith.constant dense<0.000000e+00> : vector<2x192xf32>
    %224 = tpu.matmul %214, %26, %cst_47 {dimension_numbers = #tpu.dot_dimension_numbers<[1], [0], [0], [1], [0, 0, 1, 1], [], []>} : vector<2x64xf32>, vector<64x192xf32>, vector<2x192xf32> -> vector<2x192xf32>
    %225 = vector.extract_strided_slice %223 {offsets = [0, 0], sizes = [2, 64], strides = [1, 1]} : vector<2x192xf32> to vector<2x64xf32>
    %226 = vector.extract_strided_slice %224 {offsets = [0, 0], sizes = [2, 64], strides = [1, 1]} : vector<2x192xf32> to vector<2x64xf32>
    %227 = arith.addf %225, %226 : vector<2x64xf32>
    %228 = arith.negf %227 : vector<2x64xf32>
    %229 = math.exp %228 : vector<2x64xf32>
    %cst_48 = arith.constant 1.000000e+00 : f32
    %230 = vector.broadcast %cst_48 : f32 to vector<2x64xf32>
    %231 = arith.addf %230, %229 : vector<2x64xf32>
    %232 = arith.divf %230, %231 : vector<2x64xf32>
    %233 = vector.extract_strided_slice %223 {offsets = [0, 64], sizes = [2, 64], strides = [1, 1]} : vector<2x192xf32> to vector<2x64xf32>
    %234 = vector.extract_strided_slice %224 {offsets = [0, 64], sizes = [2, 64], strides = [1, 1]} : vector<2x192xf32> to vector<2x64xf32>
    %235 = arith.addf %233, %234 : vector<2x64xf32>
    %236 = arith.negf %235 : vector<2x64xf32>
    %237 = math.exp %236 : vector<2x64xf32>
    %cst_49 = arith.constant 1.000000e+00 : f32
    %238 = vector.broadcast %cst_49 : f32 to vector<2x64xf32>
    %239 = arith.addf %238, %237 : vector<2x64xf32>
    %240 = arith.divf %238, %239 : vector<2x64xf32>
    %241 = vector.extract_strided_slice %223 {offsets = [0, 128], sizes = [2, 64], strides = [1, 1]} : vector<2x192xf32> to vector<2x64xf32>
    %242 = vector.extract_strided_slice %224 {offsets = [0, 128], sizes = [2, 64], strides = [1, 1]} : vector<2x192xf32> to vector<2x64xf32>
    %243 = vector.broadcast %27 : vector<1x64xf32> to vector<2x64xf32>
    %244 = arith.addf %242, %243 : vector<2x64xf32>
    %245 = arith.mulf %232, %244 : vector<2x64xf32>
    %246 = arith.addf %241, %245 : vector<2x64xf32>
    %247 = math.tanh %246 : vector<2x64xf32>
    %cst_50 = arith.constant 1.000000e+00 : f32
    %248 = vector.broadcast %cst_50 : f32 to vector<2x64xf32>
    %249 = arith.subf %248, %240 : vector<2x64xf32>
    %250 = arith.mulf %249, %247 : vector<2x64xf32>
    %251 = arith.mulf %240, %214 : vector<2x64xf32>
    %252 = arith.addf %250, %251 : vector<2x64xf32>
    %253 = vector.extract_strided_slice %252 {offsets = [0, 0], sizes = [2, 32], strides = [1, 1]} : vector<2x64xf32> to vector<2x32xf32>
    %c10_51 = arith.constant 10 : index
    %c0_52 = arith.constant 0 : index
    %254 = vector.load %arg12[%c10_51, %c0_52] : memref<16x64xf32, #tpu.memory_space<vmem>>, vector<2x32xf32>
    tpu.vector_store %arg12[%c10_51, %c0_52], %253 {strides = array<i32>} : memref<16x64xf32, #tpu.memory_space<vmem>>, vector<2x32xf32>,
    %255 = vector.extract_strided_slice %252 {offsets = [0, 32], sizes = [2, 32], strides = [1, 1]} : vector<2x64xf32> to vector<2x32xf32>
    %c4_53 = arith.constant 4 : index
    %c32_54 = arith.constant 32 : index
    %256 = vector.load %arg12[%c4_53, %c32_54] : memref<16x64xf32, #tpu.memory_space<vmem>>, vector<2x32xf32>
    tpu.vector_store %arg12[%c4_53, %c32_54], %255 {strides = array<i32>} : memref<16x64xf32, #tpu.memory_space<vmem>>, vector<2x32xf32>,
    %257 = vector.extract_strided_slice %25 {offsets = [12, 0], sizes = [2, 192], strides = [1, 1]} : vector<16x192xf32> to vector<2x192xf32>
    %258 = vector.extract_strided_slice %25 {offsets = [2, 0], sizes = [2, 192], strides = [1, 1]} : vector<16x192xf32> to vector<2x192xf32>
    %259 = vector.shape_cast %14 : vector<1x192xi1> to vector<1x192xi1>
    %260 = vector.broadcast %259 : vector<1x192xi1> to vector<2x192xi1>
    %261 = arith.select %260, %257, %258 : vector<2x192xi1>, vector<2x192xf32>
    %cst_55 = arith.constant dense<0.000000e+00> : vector<2x192xf32>
    %262 = tpu.matmul %252, %26, %cst_55 {dimension_numbers = #tpu.dot_dimension_numbers<[1], [0], [0], [1], [0, 0, 1, 1], [], []>} : vector<2x64xf32>, vector<64x192xf32>, vector<2x192xf32> -> vector<2x192xf32>
    %263 = vector.extract_strided_slice %261 {offsets = [0, 0], sizes = [2, 64], strides = [1, 1]} : vector<2x192xf32> to vector<2x64xf32>
    %264 = vector.extract_strided_slice %262 {offsets = [0, 0], sizes = [2, 64], strides = [1, 1]} : vector<2x192xf32> to vector<2x64xf32>
    %265 = arith.addf %263, %264 : vector<2x64xf32>
    %266 = arith.negf %265 : vector<2x64xf32>
    %267 = math.exp %266 : vector<2x64xf32>
    %cst_56 = arith.constant 1.000000e+00 : f32
    %268 = vector.broadcast %cst_56 : f32 to vector<2x64xf32>
    %269 = arith.addf %268, %267 : vector<2x64xf32>
    %270 = arith.divf %268, %269 : vector<2x64xf32>
    %271 = vector.extract_strided_slice %261 {offsets = [0, 64], sizes = [2, 64], strides = [1, 1]} : vector<2x192xf32> to vector<2x64xf32>
    %272 = vector.extract_strided_slice %262 {offsets = [0, 64], sizes = [2, 64], strides = [1, 1]} : vector<2x192xf32> to vector<2x64xf32>
    %273 = arith.addf %271, %272 : vector<2x64xf32>
    %274 = arith.negf %273 : vector<2x64xf32>
    %275 = math.exp %274 : vector<2x64xf32>
    %cst_57 = arith.constant 1.000000e+00 : f32
    %276 = vector.broadcast %cst_57 : f32 to vector<2x64xf32>
    %277 = arith.addf %276, %275 : vector<2x64xf32>
    %278 = arith.divf %276, %277 : vector<2x64xf32>
    %279 = vector.extract_strided_slice %261 {offsets = [0, 128], sizes = [2, 64], strides = [1, 1]} : vector<2x192xf32> to vector<2x64xf32>
    %280 = vector.extract_strided_slice %262 {offsets = [0, 128], sizes = [2, 64], strides = [1, 1]} : vector<2x192xf32> to vector<2x64xf32>
    %281 = vector.broadcast %27 : vector<1x64xf32> to vector<2x64xf32>
    %282 = arith.addf %280, %281 : vector<2x64xf32>
    %283 = arith.mulf %270, %282 : vector<2x64xf32>
    %284 = arith.addf %279, %283 : vector<2x64xf32>
    %285 = math.tanh %284 : vector<2x64xf32>
    %cst_58 = arith.constant 1.000000e+00 : f32
    %286 = vector.broadcast %cst_58 : f32 to vector<2x64xf32>
    %287 = arith.subf %286, %278 : vector<2x64xf32>
    %288 = arith.mulf %287, %285 : vector<2x64xf32>
    %289 = arith.mulf %278, %252 : vector<2x64xf32>
    %290 = arith.addf %288, %289 : vector<2x64xf32>
    %291 = vector.extract_strided_slice %290 {offsets = [0, 0], sizes = [2, 32], strides = [1, 1]} : vector<2x64xf32> to vector<2x32xf32>
    %c12_59 = arith.constant 12 : index
    %c0_60 = arith.constant 0 : index
    %292 = vector.load %arg12[%c12_59, %c0_60] : memref<16x64xf32, #tpu.memory_space<vmem>>, vector<2x32xf32>
    tpu.vector_store %arg12[%c12_59, %c0_60], %291 {strides = array<i32>} : memref<16x64xf32, #tpu.memory_space<vmem>>, vector<2x32xf32>,
    %293 = vector.extract_strided_slice %290 {offsets = [0, 32], sizes = [2, 32], strides = [1, 1]} : vector<2x64xf32> to vector<2x32xf32>
    %c2_61 = arith.constant 2 : index
    %c32_62 = arith.constant 32 : index
    %294 = vector.load %arg12[%c2_61, %c32_62] : memref<16x64xf32, #tpu.memory_space<vmem>>, vector<2x32xf32>
    tpu.vector_store %arg12[%c2_61, %c32_62], %293 {strides = array<i32>} : memref<16x64xf32, #tpu.memory_space<vmem>>, vector<2x32xf32>,
    %295 = vector.extract_strided_slice %25 {offsets = [14, 0], sizes = [2, 192], strides = [1, 1]} : vector<16x192xf32> to vector<2x192xf32>
    %296 = vector.extract_strided_slice %25 {offsets = [0, 0], sizes = [2, 192], strides = [1, 1]} : vector<16x192xf32> to vector<2x192xf32>
    %297 = vector.shape_cast %14 : vector<1x192xi1> to vector<1x192xi1>
    %298 = vector.broadcast %297 : vector<1x192xi1> to vector<2x192xi1>
    %299 = arith.select %298, %295, %296 : vector<2x192xi1>, vector<2x192xf32>
    %cst_63 = arith.constant dense<0.000000e+00> : vector<2x192xf32>
    %300 = tpu.matmul %290, %26, %cst_63 {dimension_numbers = #tpu.dot_dimension_numbers<[1], [0], [0], [1], [0, 0, 1, 1], [], []>} : vector<2x64xf32>, vector<64x192xf32>, vector<2x192xf32> -> vector<2x192xf32>
    %301 = vector.extract_strided_slice %299 {offsets = [0, 0], sizes = [2, 64], strides = [1, 1]} : vector<2x192xf32> to vector<2x64xf32>
    %302 = vector.extract_strided_slice %300 {offsets = [0, 0], sizes = [2, 64], strides = [1, 1]} : vector<2x192xf32> to vector<2x64xf32>
    %303 = arith.addf %301, %302 : vector<2x64xf32>
    %304 = arith.negf %303 : vector<2x64xf32>
    %305 = math.exp %304 : vector<2x64xf32>
    %cst_64 = arith.constant 1.000000e+00 : f32
    %306 = vector.broadcast %cst_64 : f32 to vector<2x64xf32>
    %307 = arith.addf %306, %305 : vector<2x64xf32>
    %308 = arith.divf %306, %307 : vector<2x64xf32>
    %309 = vector.extract_strided_slice %299 {offsets = [0, 64], sizes = [2, 64], strides = [1, 1]} : vector<2x192xf32> to vector<2x64xf32>
    %310 = vector.extract_strided_slice %300 {offsets = [0, 64], sizes = [2, 64], strides = [1, 1]} : vector<2x192xf32> to vector<2x64xf32>
    %311 = arith.addf %309, %310 : vector<2x64xf32>
    %312 = arith.negf %311 : vector<2x64xf32>
    %313 = math.exp %312 : vector<2x64xf32>
    %cst_65 = arith.constant 1.000000e+00 : f32
    %314 = vector.broadcast %cst_65 : f32 to vector<2x64xf32>
    %315 = arith.addf %314, %313 : vector<2x64xf32>
    %316 = arith.divf %314, %315 : vector<2x64xf32>
    %317 = vector.extract_strided_slice %299 {offsets = [0, 128], sizes = [2, 64], strides = [1, 1]} : vector<2x192xf32> to vector<2x64xf32>
    %318 = vector.extract_strided_slice %300 {offsets = [0, 128], sizes = [2, 64], strides = [1, 1]} : vector<2x192xf32> to vector<2x64xf32>
    %319 = vector.broadcast %27 : vector<1x64xf32> to vector<2x64xf32>
    %320 = arith.addf %318, %319 : vector<2x64xf32>
    %321 = arith.mulf %308, %320 : vector<2x64xf32>
    %322 = arith.addf %317, %321 : vector<2x64xf32>
    %323 = math.tanh %322 : vector<2x64xf32>
    %cst_66 = arith.constant 1.000000e+00 : f32
    %324 = vector.broadcast %cst_66 : f32 to vector<2x64xf32>
    %325 = arith.subf %324, %316 : vector<2x64xf32>
    %326 = arith.mulf %325, %323 : vector<2x64xf32>
    %327 = arith.mulf %316, %290 : vector<2x64xf32>
    %328 = arith.addf %326, %327 : vector<2x64xf32>
    %329 = vector.extract_strided_slice %328 {offsets = [0, 0], sizes = [2, 32], strides = [1, 1]} : vector<2x64xf32> to vector<2x32xf32>
    %c14_67 = arith.constant 14 : index
    %c0_68 = arith.constant 0 : index
    %330 = vector.load %arg12[%c14_67, %c0_68] : memref<16x64xf32, #tpu.memory_space<vmem>>, vector<2x32xf32>
    tpu.vector_store %arg12[%c14_67, %c0_68], %329 {strides = array<i32>} : memref<16x64xf32, #tpu.memory_space<vmem>>, vector<2x32xf32>,
    %331 = vector.extract_strided_slice %328 {offsets = [0, 32], sizes = [2, 32], strides = [1, 1]} : vector<2x64xf32> to vector<2x32xf32>
    %c0_69 = arith.constant 0 : index
    %c32_70 = arith.constant 32 : index
    %332 = vector.load %arg12[%c0_69, %c32_70] : memref<16x64xf32, #tpu.memory_space<vmem>>, vector<2x32xf32>
    tpu.vector_store %arg12[%c0_69, %c32_70], %331 {strides = array<i32>} : memref<16x64xf32, #tpu.memory_space<vmem>>, vector<2x32xf32>,
    %c0_71 = arith.constant 0 : index
    %c0_72 = arith.constant 0 : index
    %333 = vector.load %arg12[%c0_71, %c0_72] : memref<16x64xf32, #tpu.memory_space<vmem>>, vector<16x64xf32>
    %c0_73 = arith.constant 0 : index
    %c0_74 = arith.constant 0 : index
    %334 = vector.load %arg7[%c0_73, %c0_74] : memref<64x192xf32, #tpu.memory_space<vmem>>, vector<64x192xf32>
    %cst_75 = arith.constant dense<0.000000e+00> : vector<16x192xf32>
    %335 = tpu.matmul %333, %334, %cst_75 {dimension_numbers = #tpu.dot_dimension_numbers<[1], [0], [0], [1], [0, 0, 1, 1], [], []>} : vector<16x64xf32>, vector<64x192xf32>, vector<16x192xf32> -> vector<16x192xf32>
    %c0_76 = arith.constant 0 : index
    %c0_77 = arith.constant 0 : index
    %336 = vector.load %arg8[%c0_76, %c0_77] : memref<1x192xf32, #tpu.memory_space<vmem>>, vector<1x192xf32>
    %337 = vector.broadcast %336 : vector<1x192xf32> to vector<16x192xf32>
    %338 = arith.addf %335, %337 : vector<16x192xf32>
    %c0_78 = arith.constant 0 : index
    %c0_79 = arith.constant 0 : index
    %339 = vector.load %arg9[%c0_78, %c0_79] : memref<64x192xf32, #tpu.memory_space<vmem>>, vector<64x192xf32>
    %c0_80 = arith.constant 0 : index
    %c0_81 = arith.constant 0 : index
    %340 = vector.load %arg10[%c0_80, %c0_81] : memref<1x64xf32, #tpu.memory_space<vmem>>, vector<1x64xf32>
    %cst_82 = arith.constant 0.000000e+00 : f32
    %341 = vector.broadcast %cst_82 : f32 to vector<2x64xf32>
    %342 = vector.extract_strided_slice %338 {offsets = [0, 0], sizes = [2, 192], strides = [1, 1]} : vector<16x192xf32> to vector<2x192xf32>
    %343 = vector.extract_strided_slice %338 {offsets = [14, 0], sizes = [2, 192], strides = [1, 1]} : vector<16x192xf32> to vector<2x192xf32>
    %344 = vector.shape_cast %14 : vector<1x192xi1> to vector<1x192xi1>
    %345 = vector.broadcast %344 : vector<1x192xi1> to vector<2x192xi1>
    %346 = arith.select %345, %342, %343 : vector<2x192xi1>, vector<2x192xf32>
    %cst_83 = arith.constant dense<0.000000e+00> : vector<2x192xf32>
    %347 = tpu.matmul %341, %339, %cst_83 {dimension_numbers = #tpu.dot_dimension_numbers<[1], [0], [0], [1], [0, 0, 1, 1], [], []>} : vector<2x64xf32>, vector<64x192xf32>, vector<2x192xf32> -> vector<2x192xf32>
    %348 = vector.extract_strided_slice %346 {offsets = [0, 0], sizes = [2, 64], strides = [1, 1]} : vector<2x192xf32> to vector<2x64xf32>
    %349 = vector.extract_strided_slice %347 {offsets = [0, 0], sizes = [2, 64], strides = [1, 1]} : vector<2x192xf32> to vector<2x64xf32>
    %350 = arith.addf %348, %349 : vector<2x64xf32>
    %351 = arith.negf %350 : vector<2x64xf32>
    %352 = math.exp %351 : vector<2x64xf32>
    %cst_84 = arith.constant 1.000000e+00 : f32
    %353 = vector.broadcast %cst_84 : f32 to vector<2x64xf32>
    %354 = arith.addf %353, %352 : vector<2x64xf32>
    %355 = arith.divf %353, %354 : vector<2x64xf32>
    %356 = vector.extract_strided_slice %346 {offsets = [0, 64], sizes = [2, 64], strides = [1, 1]} : vector<2x192xf32> to vector<2x64xf32>
    %357 = vector.extract_strided_slice %347 {offsets = [0, 64], sizes = [2, 64], strides = [1, 1]} : vector<2x192xf32> to vector<2x64xf32>
    %358 = arith.addf %356, %357 : vector<2x64xf32>
    %359 = arith.negf %358 : vector<2x64xf32>
    %360 = math.exp %359 : vector<2x64xf32>
    %cst_85 = arith.constant 1.000000e+00 : f32
    %361 = vector.broadcast %cst_85 : f32 to vector<2x64xf32>
    %362 = arith.addf %361, %360 : vector<2x64xf32>
    %363 = arith.divf %361, %362 : vector<2x64xf32>
    %364 = vector.extract_strided_slice %346 {offsets = [0, 128], sizes = [2, 64], strides = [1, 1]} : vector<2x192xf32> to vector<2x64xf32>
    %365 = vector.extract_strided_slice %347 {offsets = [0, 128], sizes = [2, 64], strides = [1, 1]} : vector<2x192xf32> to vector<2x64xf32>
    %366 = vector.broadcast %340 : vector<1x64xf32> to vector<2x64xf32>
    %367 = arith.addf %365, %366 : vector<2x64xf32>
    %368 = arith.mulf %355, %367 : vector<2x64xf32>
    %369 = arith.addf %364, %368 : vector<2x64xf32>
    %370 = math.tanh %369 : vector<2x64xf32>
    %cst_86 = arith.constant 1.000000e+00 : f32
    %371 = vector.broadcast %cst_86 : f32 to vector<2x64xf32>
    %372 = arith.subf %371, %363 : vector<2x64xf32>
    %373 = arith.mulf %372, %370 : vector<2x64xf32>
    %374 = arith.mulf %363, %341 : vector<2x64xf32>
    %375 = arith.addf %373, %374 : vector<2x64xf32>
    %376 = vector.extract_strided_slice %375 {offsets = [0, 0], sizes = [2, 32], strides = [1, 1]} : vector<2x64xf32> to vector<2x32xf32>
    %c0_87 = arith.constant 0 : index
    %c0_88 = arith.constant 0 : index
    %377 = vector.load %arg11[%c0_87, %c0_88] : memref<16x64xf32, #tpu.memory_space<vmem>>, vector<2x32xf32>
    tpu.vector_store %arg11[%c0_87, %c0_88], %376 {strides = array<i32>} : memref<16x64xf32, #tpu.memory_space<vmem>>, vector<2x32xf32>,
    %378 = vector.extract_strided_slice %375 {offsets = [0, 32], sizes = [2, 32], strides = [1, 1]} : vector<2x64xf32> to vector<2x32xf32>
    %c14_89 = arith.constant 14 : index
    %c32_90 = arith.constant 32 : index
    %379 = vector.load %arg11[%c14_89, %c32_90] : memref<16x64xf32, #tpu.memory_space<vmem>>, vector<2x32xf32>
    tpu.vector_store %arg11[%c14_89, %c32_90], %378 {strides = array<i32>} : memref<16x64xf32, #tpu.memory_space<vmem>>, vector<2x32xf32>,
    %380 = vector.extract_strided_slice %338 {offsets = [2, 0], sizes = [2, 192], strides = [1, 1]} : vector<16x192xf32> to vector<2x192xf32>
    %381 = vector.extract_strided_slice %338 {offsets = [12, 0], sizes = [2, 192], strides = [1, 1]} : vector<16x192xf32> to vector<2x192xf32>
    %382 = vector.shape_cast %14 : vector<1x192xi1> to vector<1x192xi1>
    %383 = vector.broadcast %382 : vector<1x192xi1> to vector<2x192xi1>
    %384 = arith.select %383, %380, %381 : vector<2x192xi1>, vector<2x192xf32>
    %cst_91 = arith.constant dense<0.000000e+00> : vector<2x192xf32>
    %385 = tpu.matmul %375, %339, %cst_91 {dimension_numbers = #tpu.dot_dimension_numbers<[1], [0], [0], [1], [0, 0, 1, 1], [], []>} : vector<2x64xf32>, vector<64x192xf32>, vector<2x192xf32> -> vector<2x192xf32>
    %386 = vector.extract_strided_slice %384 {offsets = [0, 0], sizes = [2, 64], strides = [1, 1]} : vector<2x192xf32> to vector<2x64xf32>
    %387 = vector.extract_strided_slice %385 {offsets = [0, 0], sizes = [2, 64], strides = [1, 1]} : vector<2x192xf32> to vector<2x64xf32>
    %388 = arith.addf %386, %387 : vector<2x64xf32>
    %389 = arith.negf %388 : vector<2x64xf32>
    %390 = math.exp %389 : vector<2x64xf32>
    %cst_92 = arith.constant 1.000000e+00 : f32
    %391 = vector.broadcast %cst_92 : f32 to vector<2x64xf32>
    %392 = arith.addf %391, %390 : vector<2x64xf32>
    %393 = arith.divf %391, %392 : vector<2x64xf32>
    %394 = vector.extract_strided_slice %384 {offsets = [0, 64], sizes = [2, 64], strides = [1, 1]} : vector<2x192xf32> to vector<2x64xf32>
    %395 = vector.extract_strided_slice %385 {offsets = [0, 64], sizes = [2, 64], strides = [1, 1]} : vector<2x192xf32> to vector<2x64xf32>
    %396 = arith.addf %394, %395 : vector<2x64xf32>
    %397 = arith.negf %396 : vector<2x64xf32>
    %398 = math.exp %397 : vector<2x64xf32>
    %cst_93 = arith.constant 1.000000e+00 : f32
    %399 = vector.broadcast %cst_93 : f32 to vector<2x64xf32>
    %400 = arith.addf %399, %398 : vector<2x64xf32>
    %401 = arith.divf %399, %400 : vector<2x64xf32>
    %402 = vector.extract_strided_slice %384 {offsets = [0, 128], sizes = [2, 64], strides = [1, 1]} : vector<2x192xf32> to vector<2x64xf32>
    %403 = vector.extract_strided_slice %385 {offsets = [0, 128], sizes = [2, 64], strides = [1, 1]} : vector<2x192xf32> to vector<2x64xf32>
    %404 = vector.broadcast %340 : vector<1x64xf32> to vector<2x64xf32>
    %405 = arith.addf %403, %404 : vector<2x64xf32>
    %406 = arith.mulf %393, %405 : vector<2x64xf32>
    %407 = arith.addf %402, %406 : vector<2x64xf32>
    %408 = math.tanh %407 : vector<2x64xf32>
    %cst_94 = arith.constant 1.000000e+00 : f32
    %409 = vector.broadcast %cst_94 : f32 to vector<2x64xf32>
    %410 = arith.subf %409, %401 : vector<2x64xf32>
    %411 = arith.mulf %410, %408 : vector<2x64xf32>
    %412 = arith.mulf %401, %375 : vector<2x64xf32>
    %413 = arith.addf %411, %412 : vector<2x64xf32>
    %414 = vector.extract_strided_slice %413 {offsets = [0, 0], sizes = [2, 32], strides = [1, 1]} : vector<2x64xf32> to vector<2x32xf32>
    %c2_95 = arith.constant 2 : index
    %c0_96 = arith.constant 0 : index
    %415 = vector.load %arg11[%c2_95, %c0_96] : memref<16x64xf32, #tpu.memory_space<vmem>>, vector<2x32xf32>
    tpu.vector_store %arg11[%c2_95, %c0_96], %414 {strides = array<i32>} : memref<16x64xf32, #tpu.memory_space<vmem>>, vector<2x32xf32>,
    %416 = vector.extract_strided_slice %413 {offsets = [0, 32], sizes = [2, 32], strides = [1, 1]} : vector<2x64xf32> to vector<2x32xf32>
    %c12_97 = arith.constant 12 : index
    %c32_98 = arith.constant 32 : index
    %417 = vector.load %arg11[%c12_97, %c32_98] : memref<16x64xf32, #tpu.memory_space<vmem>>, vector<2x32xf32>
    tpu.vector_store %arg11[%c12_97, %c32_98], %416 {strides = array<i32>} : memref<16x64xf32, #tpu.memory_space<vmem>>, vector<2x32xf32>,
    %418 = vector.extract_strided_slice %338 {offsets = [4, 0], sizes = [2, 192], strides = [1, 1]} : vector<16x192xf32> to vector<2x192xf32>
    %419 = vector.extract_strided_slice %338 {offsets = [10, 0], sizes = [2, 192], strides = [1, 1]} : vector<16x192xf32> to vector<2x192xf32>
    %420 = vector.shape_cast %14 : vector<1x192xi1> to vector<1x192xi1>
    %421 = vector.broadcast %420 : vector<1x192xi1> to vector<2x192xi1>
    %422 = arith.select %421, %418, %419 : vector<2x192xi1>, vector<2x192xf32>
    %cst_99 = arith.constant dense<0.000000e+00> : vector<2x192xf32>
    %423 = tpu.matmul %413, %339, %cst_99 {dimension_numbers = #tpu.dot_dimension_numbers<[1], [0], [0], [1], [0, 0, 1, 1], [], []>} : vector<2x64xf32>, vector<64x192xf32>, vector<2x192xf32> -> vector<2x192xf32>
    %424 = vector.extract_strided_slice %422 {offsets = [0, 0], sizes = [2, 64], strides = [1, 1]} : vector<2x192xf32> to vector<2x64xf32>
    %425 = vector.extract_strided_slice %423 {offsets = [0, 0], sizes = [2, 64], strides = [1, 1]} : vector<2x192xf32> to vector<2x64xf32>
    %426 = arith.addf %424, %425 : vector<2x64xf32>
    %427 = arith.negf %426 : vector<2x64xf32>
    %428 = math.exp %427 : vector<2x64xf32>
    %cst_100 = arith.constant 1.000000e+00 : f32
    %429 = vector.broadcast %cst_100 : f32 to vector<2x64xf32>
    %430 = arith.addf %429, %428 : vector<2x64xf32>
    %431 = arith.divf %429, %430 : vector<2x64xf32>
    %432 = vector.extract_strided_slice %422 {offsets = [0, 64], sizes = [2, 64], strides = [1, 1]} : vector<2x192xf32> to vector<2x64xf32>
    %433 = vector.extract_strided_slice %423 {offsets = [0, 64], sizes = [2, 64], strides = [1, 1]} : vector<2x192xf32> to vector<2x64xf32>
    %434 = arith.addf %432, %433 : vector<2x64xf32>
    %435 = arith.negf %434 : vector<2x64xf32>
    %436 = math.exp %435 : vector<2x64xf32>
    %cst_101 = arith.constant 1.000000e+00 : f32
    %437 = vector.broadcast %cst_101 : f32 to vector<2x64xf32>
    %438 = arith.addf %437, %436 : vector<2x64xf32>
    %439 = arith.divf %437, %438 : vector<2x64xf32>
    %440 = vector.extract_strided_slice %422 {offsets = [0, 128], sizes = [2, 64], strides = [1, 1]} : vector<2x192xf32> to vector<2x64xf32>
    %441 = vector.extract_strided_slice %423 {offsets = [0, 128], sizes = [2, 64], strides = [1, 1]} : vector<2x192xf32> to vector<2x64xf32>
    %442 = vector.broadcast %340 : vector<1x64xf32> to vector<2x64xf32>
    %443 = arith.addf %441, %442 : vector<2x64xf32>
    %444 = arith.mulf %431, %443 : vector<2x64xf32>
    %445 = arith.addf %440, %444 : vector<2x64xf32>
    %446 = math.tanh %445 : vector<2x64xf32>
    %cst_102 = arith.constant 1.000000e+00 : f32
    %447 = vector.broadcast %cst_102 : f32 to vector<2x64xf32>
    %448 = arith.subf %447, %439 : vector<2x64xf32>
    %449 = arith.mulf %448, %446 : vector<2x64xf32>
    %450 = arith.mulf %439, %413 : vector<2x64xf32>
    %451 = arith.addf %449, %450 : vector<2x64xf32>
    %452 = vector.extract_strided_slice %451 {offsets = [0, 0], sizes = [2, 32], strides = [1, 1]} : vector<2x64xf32> to vector<2x32xf32>
    %c4_103 = arith.constant 4 : index
    %c0_104 = arith.constant 0 : index
    %453 = vector.load %arg11[%c4_103, %c0_104] : memref<16x64xf32, #tpu.memory_space<vmem>>, vector<2x32xf32>
    tpu.vector_store %arg11[%c4_103, %c0_104], %452 {strides = array<i32>} : memref<16x64xf32, #tpu.memory_space<vmem>>, vector<2x32xf32>,
    %454 = vector.extract_strided_slice %451 {offsets = [0, 32], sizes = [2, 32], strides = [1, 1]} : vector<2x64xf32> to vector<2x32xf32>
    %c10_105 = arith.constant 10 : index
    %c32_106 = arith.constant 32 : index
    %455 = vector.load %arg11[%c10_105, %c32_106] : memref<16x64xf32, #tpu.memory_space<vmem>>, vector<2x32xf32>
    tpu.vector_store %arg11[%c10_105, %c32_106], %454 {strides = array<i32>} : memref<16x64xf32, #tpu.memory_space<vmem>>, vector<2x32xf32>,
    %456 = vector.extract_strided_slice %338 {offsets = [6, 0], sizes = [2, 192], strides = [1, 1]} : vector<16x192xf32> to vector<2x192xf32>
    %457 = vector.extract_strided_slice %338 {offsets = [8, 0], sizes = [2, 192], strides = [1, 1]} : vector<16x192xf32> to vector<2x192xf32>
    %458 = vector.shape_cast %14 : vector<1x192xi1> to vector<1x192xi1>
    %459 = vector.broadcast %458 : vector<1x192xi1> to vector<2x192xi1>
    %460 = arith.select %459, %456, %457 : vector<2x192xi1>, vector<2x192xf32>
    %cst_107 = arith.constant dense<0.000000e+00> : vector<2x192xf32>
    %461 = tpu.matmul %451, %339, %cst_107 {dimension_numbers = #tpu.dot_dimension_numbers<[1], [0], [0], [1], [0, 0, 1, 1], [], []>} : vector<2x64xf32>, vector<64x192xf32>, vector<2x192xf32> -> vector<2x192xf32>
    %462 = vector.extract_strided_slice %460 {offsets = [0, 0], sizes = [2, 64], strides = [1, 1]} : vector<2x192xf32> to vector<2x64xf32>
    %463 = vector.extract_strided_slice %461 {offsets = [0, 0], sizes = [2, 64], strides = [1, 1]} : vector<2x192xf32> to vector<2x64xf32>
    %464 = arith.addf %462, %463 : vector<2x64xf32>
    %465 = arith.negf %464 : vector<2x64xf32>
    %466 = math.exp %465 : vector<2x64xf32>
    %cst_108 = arith.constant 1.000000e+00 : f32
    %467 = vector.broadcast %cst_108 : f32 to vector<2x64xf32>
    %468 = arith.addf %467, %466 : vector<2x64xf32>
    %469 = arith.divf %467, %468 : vector<2x64xf32>
    %470 = vector.extract_strided_slice %460 {offsets = [0, 64], sizes = [2, 64], strides = [1, 1]} : vector<2x192xf32> to vector<2x64xf32>
    %471 = vector.extract_strided_slice %461 {offsets = [0, 64], sizes = [2, 64], strides = [1, 1]} : vector<2x192xf32> to vector<2x64xf32>
    %472 = arith.addf %470, %471 : vector<2x64xf32>
    %473 = arith.negf %472 : vector<2x64xf32>
    %474 = math.exp %473 : vector<2x64xf32>
    %cst_109 = arith.constant 1.000000e+00 : f32
    %475 = vector.broadcast %cst_109 : f32 to vector<2x64xf32>
    %476 = arith.addf %475, %474 : vector<2x64xf32>
    %477 = arith.divf %475, %476 : vector<2x64xf32>
    %478 = vector.extract_strided_slice %460 {offsets = [0, 128], sizes = [2, 64], strides = [1, 1]} : vector<2x192xf32> to vector<2x64xf32>
    %479 = vector.extract_strided_slice %461 {offsets = [0, 128], sizes = [2, 64], strides = [1, 1]} : vector<2x192xf32> to vector<2x64xf32>
    %480 = vector.broadcast %340 : vector<1x64xf32> to vector<2x64xf32>
    %481 = arith.addf %479, %480 : vector<2x64xf32>
    %482 = arith.mulf %469, %481 : vector<2x64xf32>
    %483 = arith.addf %478, %482 : vector<2x64xf32>
    %484 = math.tanh %483 : vector<2x64xf32>
    %cst_110 = arith.constant 1.000000e+00 : f32
    %485 = vector.broadcast %cst_110 : f32 to vector<2x64xf32>
    %486 = arith.subf %485, %477 : vector<2x64xf32>
    %487 = arith.mulf %486, %484 : vector<2x64xf32>
    %488 = arith.mulf %477, %451 : vector<2x64xf32>
    %489 = arith.addf %487, %488 : vector<2x64xf32>
    %490 = vector.extract_strided_slice %489 {offsets = [0, 0], sizes = [2, 32], strides = [1, 1]} : vector<2x64xf32> to vector<2x32xf32>
    %c6_111 = arith.constant 6 : index
    %c0_112 = arith.constant 0 : index
    %491 = vector.load %arg11[%c6_111, %c0_112] : memref<16x64xf32, #tpu.memory_space<vmem>>, vector<2x32xf32>
    tpu.vector_store %arg11[%c6_111, %c0_112], %490 {strides = array<i32>} : memref<16x64xf32, #tpu.memory_space<vmem>>, vector<2x32xf32>,
    %492 = vector.extract_strided_slice %489 {offsets = [0, 32], sizes = [2, 32], strides = [1, 1]} : vector<2x64xf32> to vector<2x32xf32>
    %c8_113 = arith.constant 8 : index
    %c32_114 = arith.constant 32 : index
    %493 = vector.load %arg11[%c8_113, %c32_114] : memref<16x64xf32, #tpu.memory_space<vmem>>, vector<2x32xf32>
    tpu.vector_store %arg11[%c8_113, %c32_114], %492 {strides = array<i32>} : memref<16x64xf32, #tpu.memory_space<vmem>>, vector<2x32xf32>,
    %494 = vector.extract_strided_slice %338 {offsets = [8, 0], sizes = [2, 192], strides = [1, 1]} : vector<16x192xf32> to vector<2x192xf32>
    %495 = vector.extract_strided_slice %338 {offsets = [6, 0], sizes = [2, 192], strides = [1, 1]} : vector<16x192xf32> to vector<2x192xf32>
    %496 = vector.shape_cast %14 : vector<1x192xi1> to vector<1x192xi1>
    %497 = vector.broadcast %496 : vector<1x192xi1> to vector<2x192xi1>
    %498 = arith.select %497, %494, %495 : vector<2x192xi1>, vector<2x192xf32>
    %cst_115 = arith.constant dense<0.000000e+00> : vector<2x192xf32>
    %499 = tpu.matmul %489, %339, %cst_115 {dimension_numbers = #tpu.dot_dimension_numbers<[1], [0], [0], [1], [0, 0, 1, 1], [], []>} : vector<2x64xf32>, vector<64x192xf32>, vector<2x192xf32> -> vector<2x192xf32>
    %500 = vector.extract_strided_slice %498 {offsets = [0, 0], sizes = [2, 64], strides = [1, 1]} : vector<2x192xf32> to vector<2x64xf32>
    %501 = vector.extract_strided_slice %499 {offsets = [0, 0], sizes = [2, 64], strides = [1, 1]} : vector<2x192xf32> to vector<2x64xf32>
    %502 = arith.addf %500, %501 : vector<2x64xf32>
    %503 = arith.negf %502 : vector<2x64xf32>
    %504 = math.exp %503 : vector<2x64xf32>
    %cst_116 = arith.constant 1.000000e+00 : f32
    %505 = vector.broadcast %cst_116 : f32 to vector<2x64xf32>
    %506 = arith.addf %505, %504 : vector<2x64xf32>
    %507 = arith.divf %505, %506 : vector<2x64xf32>
    %508 = vector.extract_strided_slice %498 {offsets = [0, 64], sizes = [2, 64], strides = [1, 1]} : vector<2x192xf32> to vector<2x64xf32>
    %509 = vector.extract_strided_slice %499 {offsets = [0, 64], sizes = [2, 64], strides = [1, 1]} : vector<2x192xf32> to vector<2x64xf32>
    %510 = arith.addf %508, %509 : vector<2x64xf32>
    %511 = arith.negf %510 : vector<2x64xf32>
    %512 = math.exp %511 : vector<2x64xf32>
    %cst_117 = arith.constant 1.000000e+00 : f32
    %513 = vector.broadcast %cst_117 : f32 to vector<2x64xf32>
    %514 = arith.addf %513, %512 : vector<2x64xf32>
    %515 = arith.divf %513, %514 : vector<2x64xf32>
    %516 = vector.extract_strided_slice %498 {offsets = [0, 128], sizes = [2, 64], strides = [1, 1]} : vector<2x192xf32> to vector<2x64xf32>
    %517 = vector.extract_strided_slice %499 {offsets = [0, 128], sizes = [2, 64], strides = [1, 1]} : vector<2x192xf32> to vector<2x64xf32>
    %518 = vector.broadcast %340 : vector<1x64xf32> to vector<2x64xf32>
    %519 = arith.addf %517, %518 : vector<2x64xf32>
    %520 = arith.mulf %507, %519 : vector<2x64xf32>
    %521 = arith.addf %516, %520 : vector<2x64xf32>
    %522 = math.tanh %521 : vector<2x64xf32>
    %cst_118 = arith.constant 1.000000e+00 : f32
    %523 = vector.broadcast %cst_118 : f32 to vector<2x64xf32>
    %524 = arith.subf %523, %515 : vector<2x64xf32>
    %525 = arith.mulf %524, %522 : vector<2x64xf32>
    %526 = arith.mulf %515, %489 : vector<2x64xf32>
    %527 = arith.addf %525, %526 : vector<2x64xf32>
    %528 = vector.extract_strided_slice %527 {offsets = [0, 0], sizes = [2, 32], strides = [1, 1]} : vector<2x64xf32> to vector<2x32xf32>
    %c8_119 = arith.constant 8 : index
    %c0_120 = arith.constant 0 : index
    %529 = vector.load %arg11[%c8_119, %c0_120] : memref<16x64xf32, #tpu.memory_space<vmem>>, vector<2x32xf32>
    tpu.vector_store %arg11[%c8_119, %c0_120], %528 {strides = array<i32>} : memref<16x64xf32, #tpu.memory_space<vmem>>, vector<2x32xf32>,
    %530 = vector.extract_strided_slice %527 {offsets = [0, 32], sizes = [2, 32], strides = [1, 1]} : vector<2x64xf32> to vector<2x32xf32>
    %c6_121 = arith.constant 6 : index
    %c32_122 = arith.constant 32 : index
    %531 = vector.load %arg11[%c6_121, %c32_122] : memref<16x64xf32, #tpu.memory_space<vmem>>, vector<2x32xf32>
    tpu.vector_store %arg11[%c6_121, %c32_122], %530 {strides = array<i32>} : memref<16x64xf32, #tpu.memory_space<vmem>>, vector<2x32xf32>,
    %532 = vector.extract_strided_slice %338 {offsets = [10, 0], sizes = [2, 192], strides = [1, 1]} : vector<16x192xf32> to vector<2x192xf32>
    %533 = vector.extract_strided_slice %338 {offsets = [4, 0], sizes = [2, 192], strides = [1, 1]} : vector<16x192xf32> to vector<2x192xf32>
    %534 = vector.shape_cast %14 : vector<1x192xi1> to vector<1x192xi1>
    %535 = vector.broadcast %534 : vector<1x192xi1> to vector<2x192xi1>
    %536 = arith.select %535, %532, %533 : vector<2x192xi1>, vector<2x192xf32>
    %cst_123 = arith.constant dense<0.000000e+00> : vector<2x192xf32>
    %537 = tpu.matmul %527, %339, %cst_123 {dimension_numbers = #tpu.dot_dimension_numbers<[1], [0], [0], [1], [0, 0, 1, 1], [], []>} : vector<2x64xf32>, vector<64x192xf32>, vector<2x192xf32> -> vector<2x192xf32>
    %538 = vector.extract_strided_slice %536 {offsets = [0, 0], sizes = [2, 64], strides = [1, 1]} : vector<2x192xf32> to vector<2x64xf32>
    %539 = vector.extract_strided_slice %537 {offsets = [0, 0], sizes = [2, 64], strides = [1, 1]} : vector<2x192xf32> to vector<2x64xf32>
    %540 = arith.addf %538, %539 : vector<2x64xf32>
    %541 = arith.negf %540 : vector<2x64xf32>
    %542 = math.exp %541 : vector<2x64xf32>
    %cst_124 = arith.constant 1.000000e+00 : f32
    %543 = vector.broadcast %cst_124 : f32 to vector<2x64xf32>
    %544 = arith.addf %543, %542 : vector<2x64xf32>
    %545 = arith.divf %543, %544 : vector<2x64xf32>
    %546 = vector.extract_strided_slice %536 {offsets = [0, 64], sizes = [2, 64], strides = [1, 1]} : vector<2x192xf32> to vector<2x64xf32>
    %547 = vector.extract_strided_slice %537 {offsets = [0, 64], sizes = [2, 64], strides = [1, 1]} : vector<2x192xf32> to vector<2x64xf32>
    %548 = arith.addf %546, %547 : vector<2x64xf32>
    %549 = arith.negf %548 : vector<2x64xf32>
    %550 = math.exp %549 : vector<2x64xf32>
    %cst_125 = arith.constant 1.000000e+00 : f32
    %551 = vector.broadcast %cst_125 : f32 to vector<2x64xf32>
    %552 = arith.addf %551, %550 : vector<2x64xf32>
    %553 = arith.divf %551, %552 : vector<2x64xf32>
    %554 = vector.extract_strided_slice %536 {offsets = [0, 128], sizes = [2, 64], strides = [1, 1]} : vector<2x192xf32> to vector<2x64xf32>
    %555 = vector.extract_strided_slice %537 {offsets = [0, 128], sizes = [2, 64], strides = [1, 1]} : vector<2x192xf32> to vector<2x64xf32>
    %556 = vector.broadcast %340 : vector<1x64xf32> to vector<2x64xf32>
    %557 = arith.addf %555, %556 : vector<2x64xf32>
    %558 = arith.mulf %545, %557 : vector<2x64xf32>
    %559 = arith.addf %554, %558 : vector<2x64xf32>
    %560 = math.tanh %559 : vector<2x64xf32>
    %cst_126 = arith.constant 1.000000e+00 : f32
    %561 = vector.broadcast %cst_126 : f32 to vector<2x64xf32>
    %562 = arith.subf %561, %553 : vector<2x64xf32>
    %563 = arith.mulf %562, %560 : vector<2x64xf32>
    %564 = arith.mulf %553, %527 : vector<2x64xf32>
    %565 = arith.addf %563, %564 : vector<2x64xf32>
    %566 = vector.extract_strided_slice %565 {offsets = [0, 0], sizes = [2, 32], strides = [1, 1]} : vector<2x64xf32> to vector<2x32xf32>
    %c10_127 = arith.constant 10 : index
    %c0_128 = arith.constant 0 : index
    %567 = vector.load %arg11[%c10_127, %c0_128] : memref<16x64xf32, #tpu.memory_space<vmem>>, vector<2x32xf32>
    tpu.vector_store %arg11[%c10_127, %c0_128], %566 {strides = array<i32>} : memref<16x64xf32, #tpu.memory_space<vmem>>, vector<2x32xf32>,
    %568 = vector.extract_strided_slice %565 {offsets = [0, 32], sizes = [2, 32], strides = [1, 1]} : vector<2x64xf32> to vector<2x32xf32>
    %c4_129 = arith.constant 4 : index
    %c32_130 = arith.constant 32 : index
    %569 = vector.load %arg11[%c4_129, %c32_130] : memref<16x64xf32, #tpu.memory_space<vmem>>, vector<2x32xf32>
    tpu.vector_store %arg11[%c4_129, %c32_130], %568 {strides = array<i32>} : memref<16x64xf32, #tpu.memory_space<vmem>>, vector<2x32xf32>,
    %570 = vector.extract_strided_slice %338 {offsets = [12, 0], sizes = [2, 192], strides = [1, 1]} : vector<16x192xf32> to vector<2x192xf32>
    %571 = vector.extract_strided_slice %338 {offsets = [2, 0], sizes = [2, 192], strides = [1, 1]} : vector<16x192xf32> to vector<2x192xf32>
    %572 = vector.shape_cast %14 : vector<1x192xi1> to vector<1x192xi1>
    %573 = vector.broadcast %572 : vector<1x192xi1> to vector<2x192xi1>
    %574 = arith.select %573, %570, %571 : vector<2x192xi1>, vector<2x192xf32>
    %cst_131 = arith.constant dense<0.000000e+00> : vector<2x192xf32>
    %575 = tpu.matmul %565, %339, %cst_131 {dimension_numbers = #tpu.dot_dimension_numbers<[1], [0], [0], [1], [0, 0, 1, 1], [], []>} : vector<2x64xf32>, vector<64x192xf32>, vector<2x192xf32> -> vector<2x192xf32>
    %576 = vector.extract_strided_slice %574 {offsets = [0, 0], sizes = [2, 64], strides = [1, 1]} : vector<2x192xf32> to vector<2x64xf32>
    %577 = vector.extract_strided_slice %575 {offsets = [0, 0], sizes = [2, 64], strides = [1, 1]} : vector<2x192xf32> to vector<2x64xf32>
    %578 = arith.addf %576, %577 : vector<2x64xf32>
    %579 = arith.negf %578 : vector<2x64xf32>
    %580 = math.exp %579 : vector<2x64xf32>
    %cst_132 = arith.constant 1.000000e+00 : f32
    %581 = vector.broadcast %cst_132 : f32 to vector<2x64xf32>
    %582 = arith.addf %581, %580 : vector<2x64xf32>
    %583 = arith.divf %581, %582 : vector<2x64xf32>
    %584 = vector.extract_strided_slice %574 {offsets = [0, 64], sizes = [2, 64], strides = [1, 1]} : vector<2x192xf32> to vector<2x64xf32>
    %585 = vector.extract_strided_slice %575 {offsets = [0, 64], sizes = [2, 64], strides = [1, 1]} : vector<2x192xf32> to vector<2x64xf32>
    %586 = arith.addf %584, %585 : vector<2x64xf32>
    %587 = arith.negf %586 : vector<2x64xf32>
    %588 = math.exp %587 : vector<2x64xf32>
    %cst_133 = arith.constant 1.000000e+00 : f32
    %589 = vector.broadcast %cst_133 : f32 to vector<2x64xf32>
    %590 = arith.addf %589, %588 : vector<2x64xf32>
    %591 = arith.divf %589, %590 : vector<2x64xf32>
    %592 = vector.extract_strided_slice %574 {offsets = [0, 128], sizes = [2, 64], strides = [1, 1]} : vector<2x192xf32> to vector<2x64xf32>
    %593 = vector.extract_strided_slice %575 {offsets = [0, 128], sizes = [2, 64], strides = [1, 1]} : vector<2x192xf32> to vector<2x64xf32>
    %594 = vector.broadcast %340 : vector<1x64xf32> to vector<2x64xf32>
    %595 = arith.addf %593, %594 : vector<2x64xf32>
    %596 = arith.mulf %583, %595 : vector<2x64xf32>
    %597 = arith.addf %592, %596 : vector<2x64xf32>
    %598 = math.tanh %597 : vector<2x64xf32>
    %cst_134 = arith.constant 1.000000e+00 : f32
    %599 = vector.broadcast %cst_134 : f32 to vector<2x64xf32>
    %600 = arith.subf %599, %591 : vector<2x64xf32>
    %601 = arith.mulf %600, %598 : vector<2x64xf32>
    %602 = arith.mulf %591, %565 : vector<2x64xf32>
    %603 = arith.addf %601, %602 : vector<2x64xf32>
    %604 = vector.extract_strided_slice %603 {offsets = [0, 0], sizes = [2, 32], strides = [1, 1]} : vector<2x64xf32> to vector<2x32xf32>
    %c12_135 = arith.constant 12 : index
    %c0_136 = arith.constant 0 : index
    %605 = vector.load %arg11[%c12_135, %c0_136] : memref<16x64xf32, #tpu.memory_space<vmem>>, vector<2x32xf32>
    tpu.vector_store %arg11[%c12_135, %c0_136], %604 {strides = array<i32>} : memref<16x64xf32, #tpu.memory_space<vmem>>, vector<2x32xf32>,
    %606 = vector.extract_strided_slice %603 {offsets = [0, 32], sizes = [2, 32], strides = [1, 1]} : vector<2x64xf32> to vector<2x32xf32>
    %c2_137 = arith.constant 2 : index
    %c32_138 = arith.constant 32 : index
    %607 = vector.load %arg11[%c2_137, %c32_138] : memref<16x64xf32, #tpu.memory_space<vmem>>, vector<2x32xf32>
    tpu.vector_store %arg11[%c2_137, %c32_138], %606 {strides = array<i32>} : memref<16x64xf32, #tpu.memory_space<vmem>>, vector<2x32xf32>,
    %608 = vector.extract_strided_slice %338 {offsets = [14, 0], sizes = [2, 192], strides = [1, 1]} : vector<16x192xf32> to vector<2x192xf32>
    %609 = vector.extract_strided_slice %338 {offsets = [0, 0], sizes = [2, 192], strides = [1, 1]} : vector<16x192xf32> to vector<2x192xf32>
    %610 = vector.shape_cast %14 : vector<1x192xi1> to vector<1x192xi1>
    %611 = vector.broadcast %610 : vector<1x192xi1> to vector<2x192xi1>
    %612 = arith.select %611, %608, %609 : vector<2x192xi1>, vector<2x192xf32>
    %cst_139 = arith.constant dense<0.000000e+00> : vector<2x192xf32>
    %613 = tpu.matmul %603, %339, %cst_139 {dimension_numbers = #tpu.dot_dimension_numbers<[1], [0], [0], [1], [0, 0, 1, 1], [], []>} : vector<2x64xf32>, vector<64x192xf32>, vector<2x192xf32> -> vector<2x192xf32>
    %614 = vector.extract_strided_slice %612 {offsets = [0, 0], sizes = [2, 64], strides = [1, 1]} : vector<2x192xf32> to vector<2x64xf32>
    %615 = vector.extract_strided_slice %613 {offsets = [0, 0], sizes = [2, 64], strides = [1, 1]} : vector<2x192xf32> to vector<2x64xf32>
    %616 = arith.addf %614, %615 : vector<2x64xf32>
    %617 = arith.negf %616 : vector<2x64xf32>
    %618 = math.exp %617 : vector<2x64xf32>
    %cst_140 = arith.constant 1.000000e+00 : f32
    %619 = vector.broadcast %cst_140 : f32 to vector<2x64xf32>
    %620 = arith.addf %619, %618 : vector<2x64xf32>
    %621 = arith.divf %619, %620 : vector<2x64xf32>
    %622 = vector.extract_strided_slice %612 {offsets = [0, 64], sizes = [2, 64], strides = [1, 1]} : vector<2x192xf32> to vector<2x64xf32>
    %623 = vector.extract_strided_slice %613 {offsets = [0, 64], sizes = [2, 64], strides = [1, 1]} : vector<2x192xf32> to vector<2x64xf32>
    %624 = arith.addf %622, %623 : vector<2x64xf32>
    %625 = arith.negf %624 : vector<2x64xf32>
    %626 = math.exp %625 : vector<2x64xf32>
    %cst_141 = arith.constant 1.000000e+00 : f32
    %627 = vector.broadcast %cst_141 : f32 to vector<2x64xf32>
    %628 = arith.addf %627, %626 : vector<2x64xf32>
    %629 = arith.divf %627, %628 : vector<2x64xf32>
    %630 = vector.extract_strided_slice %612 {offsets = [0, 128], sizes = [2, 64], strides = [1, 1]} : vector<2x192xf32> to vector<2x64xf32>
    %631 = vector.extract_strided_slice %613 {offsets = [0, 128], sizes = [2, 64], strides = [1, 1]} : vector<2x192xf32> to vector<2x64xf32>
    %632 = vector.broadcast %340 : vector<1x64xf32> to vector<2x64xf32>
    %633 = arith.addf %631, %632 : vector<2x64xf32>
    %634 = arith.mulf %621, %633 : vector<2x64xf32>
    %635 = arith.addf %630, %634 : vector<2x64xf32>
    %636 = math.tanh %635 : vector<2x64xf32>
    %cst_142 = arith.constant 1.000000e+00 : f32
    %637 = vector.broadcast %cst_142 : f32 to vector<2x64xf32>
    %638 = arith.subf %637, %629 : vector<2x64xf32>
    %639 = arith.mulf %638, %636 : vector<2x64xf32>
    %640 = arith.mulf %629, %603 : vector<2x64xf32>
    %641 = arith.addf %639, %640 : vector<2x64xf32>
    %642 = vector.extract_strided_slice %641 {offsets = [0, 0], sizes = [2, 32], strides = [1, 1]} : vector<2x64xf32> to vector<2x32xf32>
    %c14_143 = arith.constant 14 : index
    %c0_144 = arith.constant 0 : index
    %643 = vector.load %arg11[%c14_143, %c0_144] : memref<16x64xf32, #tpu.memory_space<vmem>>, vector<2x32xf32>
    tpu.vector_store %arg11[%c14_143, %c0_144], %642 {strides = array<i32>} : memref<16x64xf32, #tpu.memory_space<vmem>>, vector<2x32xf32>,
    %644 = vector.extract_strided_slice %641 {offsets = [0, 32], sizes = [2, 32], strides = [1, 1]} : vector<2x64xf32> to vector<2x32xf32>
    %c0_145 = arith.constant 0 : index
    %c32_146 = arith.constant 32 : index
    %645 = vector.load %arg11[%c0_145, %c32_146] : memref<16x64xf32, #tpu.memory_space<vmem>>, vector<2x32xf32>
    tpu.vector_store %arg11[%c0_145, %c32_146], %644 {strides = array<i32>} : memref<16x64xf32, #tpu.memory_space<vmem>>, vector<2x32xf32>,
    return
  }
}

</mosaic_0001>

<bundles_post_ra>
// kernel: tpu_custom_call.1
= control target key start
LH: loop header
LB: loop body
LE: loop exit
PB: predicated region body
PF: predicated region fallthrough
CT: control target
= control target key end

     0   :  { %16 = vsyncpa [#allocation4], 0  ;;  %s2985_s0 = inlined_call_operand.hbm [shape: f32[16,16], index: 0, kind: input, shape index: {}]   ;;  %s2986_s1 = inlined_call_operand.hbm [shape: f32[16,32], index: 1, kind: input, shape index: {}]   ;;  %s2987_s2 = inlined_call_operand.hbm [shape: f32[1,32], index: 2, kind: input, shape index: {}]   ;;  %s2988_s3 = inlined_call_operand.hbm [shape: f32[32,192], index: 3, kind: input, shape index: {}]   ;;  %s2989_s4 = inlined_call_operand.vmem [shape: f32[1,192], index: 4, kind: input, shape index: {}]   ;;  %s2990_s5 = inlined_call_operand.hbm [shape: f32[64,192], index: 5, kind: input, shape index: {}]   ;;  %s2991_s6 = inlined_call_operand.vmem [shape: f32[1,64], index: 6, kind: input, shape index: {}]   ;;  %s2992_s7 = inlined_call_operand.hbm [shape: f32[64,192], index: 7, kind: input, shape index: {}]   ;;  %s2993_s8 = inlined_call_operand.vmem [shape: f32[1,192], index: 8, kind: input, shape index: {}]   ;;  %s2994_s9 = inlined_call_operand.hbm [shape: f32[64,192], index: 9, kind: input, shape index: {}]   ;;  %s2995_s10 = inlined_call_operand.vmem [shape: f32[1,64], index: 10, kind: input, shape index: {}]   ;;  %s2996_s11 = inlined_call_operand.hbm [shape: f32[16,64], index: 11, kind: output, shape index: {}]  }
   0x1   :  { %17 = vsyncpa [#allocation7], 0 }
   0x2   :  { %18 = vsyncpa [#allocation10], 0 }
   0x3   :  { %19 = vsyncpa [#allocation13], 0 }
   0x4   :  { %20 = vsyncpa [#allocation5], 0  ;;  %s38_s19 = sshll.u32 %s2986_s1, 4  ;;  %s2255_s20 = smov [#allocation6]   ;;  %s39_s19 = int_to_ptr.hbm [resolvable:$true] %s38_s19 }
   0x5   :  { %s40_s21 = sshll.u32 %s2255_s20, 4  ;;  %s62_s24 = sshll.u32 %s2988_s3, 4  ;;  %s41_s21 = int_to_ptr.vmem [resolvable:$true] %s40_s21  ;;  %s63_s24 = int_to_ptr.hbm [resolvable:$true] %s62_s24 }
   0x6   :  { %s2256_s25 = smov 128   ;;  %s2257_s26 = smov 8  }
   0x7   :  { %46 = dma.hbm_to_vmem [thread:$0]  %s39_s19, 256, %s41_s21, [#allocation7], %s2256_s25, %s2256_s25, %s2257_s26  }
   0x8   :  { %s2258_s27 = smov [#allocation9]   ;;  %s2259_s29 = smov 256  }
   0x9   :  { %s64_s28 = sshll.u32 %s2258_s27, 4  ;;  %s2260_s1 = smov 16   ;;  %s65_s28 = int_to_ptr.vmem [resolvable:$true] %s64_s28 }
   0xa   :  { %70 = dma.hbm_to_vmem [thread:$0]  %s63_s24, 1024, %s65_s28, [#allocation10], %s2259_s29, %s2259_s29, %s2260_s1  }
   0xb   :  { %s92_s3 = sshll.u32 %s2992_s7, 4  ;;  %s2261_s13 = smov [#allocation12]   ;;  %s93_s3 = int_to_ptr.hbm [resolvable:$true] %s92_s3 }
   0xc   :  { %s94_s14 = sshll.u32 %s2261_s13, 4  ;;  %s25_s17 = sshll.u32 %s2985_s0, 4  ;;  %s95_s14 = int_to_ptr.vmem [resolvable:$true] %s94_s14  ;;  %s26_s17 = int_to_ptr.hbm [resolvable:$true] %s25_s17 }
   0xd   :  { %100 = dma.hbm_to_vmem [thread:$0]  %s93_s3, 2048, %s95_s14, [#allocation13], %s2259_s29, %s2259_s29, %s2260_s1  }
   0xe   :  { %s2262_s18 = smov [#allocation3]   ;;  %s52_s22 = sshll.u32 %s2987_s2, 4  ;;  %s53_s22 = int_to_ptr.hbm [resolvable:$true] %s52_s22 }
   0xf   :  { %s27_s19 = sshll.u32 %s2262_s18, 4  ;;  %s77_s0 = sshll.u32 %s2990_s5, 4  ;;  %s28_s19 = int_to_ptr.vmem [resolvable:$true] %s27_s19  ;;  %s78_s0 = int_to_ptr.hbm [resolvable:$true] %s77_s0 }
  0x10   :  { %33 = dma.hbm_to_vmem [thread:$0]  %s26_s17, 256, %s28_s19, [#allocation4], %s2256_s25, %s2256_s25, %s2257_s26  }
  0x11   :  { %s2263_s24 = smov [#allocation8]   ;;  %s2264_s28 = smov [#allocation11]  }
  0x12   :  { %s54_s27 = sshll.u32 %s2263_s24, 4  ;;  %s79_s30 = sshll.u32 %s2264_s28, 4  ;;  %s55_s27 = int_to_ptr.vmem [resolvable:$true] %s54_s27  ;;  %s80_s30 = int_to_ptr.vmem [resolvable:$true] %s79_s30 }
  0x13   :  { %57 = dma.hbm_to_vmem [thread:$0]  %s53_s22, 16, %s55_s27, [#allocation7]  }
  0x14   :  { %s107_s2 = sshll.u32 %s2994_s9, 4  ;;  %s2265_s13 = smov [#allocation14]   ;;  %s108_s2 = int_to_ptr.hbm [resolvable:$true] %s107_s2 }
  0x15   :  { %85 = dma.hbm_to_vmem [thread:$0]  %s78_s0, 2048, %s80_s30, [#allocation10], %s2259_s29, %s2259_s29, %s2260_s1  }
  0x16   :  { %s109_s14 = sshll.u32 %s2265_s13, 4  ;;  %s110_s14 = int_to_ptr.vmem [resolvable:$true] %s109_s14 }
  0x17   :  { %115 = dma.hbm_to_vmem [thread:$0]  %s108_s2, 2048, %s110_s14, [#allocation13], %s2259_s29, %s2259_s29, %s2260_s1  }
  0x18   :  { %2245 = dma.done.wait [#allocation4], 256  }
  0x19   :  { %2246 = vsyncadd [#allocation4], 4294967040 }
  0x1a   :  { %2247 = dma.done.wait [#allocation7], 272  }
  0x1b   :  { %2248 = vsyncadd [#allocation7], 4294967024 }
  0x1c   :  { %2249 = dma.done.wait [#allocation10], 3072  }
  0x1d   :  { %2250 = vsyncadd [#allocation10], 4294964224 }
  0x1e   :  { %2251 = dma.done.wait [#allocation13], 4096  }
  0x1f   :  { %2252 = vsyncadd [#allocation13], 4294963200  ;;  %v170_v0 = vld [vmem:[#allocation6 + $0x8] sm:$0xff]  ;;  %v169_v1 = vld [vmem:[#allocation6] sm:$0xff]  ;;  %vm175_vm0 = vcmask 130048   ;;  %v2266_v20 = vmov 0.0   ;;  %v146_v34 = vlaneseq }
  0x20   :  { %196 = vmatpush.msra.mxu0 %v170_v0  ;;  %v167_v2 = vld [vmem:[#allocation3] sm:$0xff]  ;;  %v2368_v3 = vld [vmem:[#allocation11 + $0x70] sm:$0xff]  ;;  %v210_v8 = vld [vmem:[#allocation9 + $0x28] sm:$0xff]  ;;  %vm219_vm1 = vcmask 261120   ;;  %vm384_vm12 = vcmask 254976   ;;  %vm301_vm13 = vcmask 523264  }
  0x21   :  { %v211_v4 = vld [vmem:[#allocation9 + $0x30] sm:$0xff]  ;;  %313 = vmatpush.msra.mxu3 %v2368_v3  ;;  %v212_v5 = vld [vmem:[#allocation9 + $0x38] sm:$0xff]  ;;  %v2371_v6 = vld [vmem:[#allocation11 + $0x60] sm:$0xff]  ;;  %v147_v36 = vand.u32 127, %v146_v34  ;;  %vm386_vm14 = vcmask 517376   ;;  %s1870_s20 = sshll.u32 %s2996_s11, 4  ;;  %s1871_s20 = int_to_ptr.hbm [resolvable:$true] %s1870_s20 }
  0x22   :  { %238 = vmatpush.msra.mxu1 %v211_v4  ;;  %v209_v7 = vld [vmem:[#allocation9 + $0x20] sm:$0xff]  ;;  %197 = vmatpush.msra.mxu0 %v169_v1  ;;  %v2373_v9 = vld [vmem:[#allocation11 + $0x50] sm:$0xff]  ;;  %v208_v12 = vld [vmem:[#allocation9 + $0x18] sm:$0xff] }
  0x23   :  { %261 = vmatpush.msra.mxu2 %v212_v5  ;;  %1886 = vmatmul.msk.f32.vlgmr.msra.gmra.mxu0 %vm175_vm0, %v167_v2  ;;  %v168_v10 = vld [vmem:[#allocation3 + $0x8] sm:$0xff]  ;;  %v207_v11 = vld [vmem:[#allocation9 + $0x10] sm:$0xff]  ;;  %v2399_v21 = vld [vmem:[#allocation11 + $0x78] sm:$0xff]  ;;  %vm151_vm2 = vcmp.ge.s32.totalorder %v147_v36, 64  ;;  %vm153_vm3 = vcmp.lt.s32.totalorder %v147_v36, 96  ;;  %vm149_vm4 = vcmp.lt.s32.totalorder %v147_v36, 32 }
  0x24   :  { %314 = vmatpush.msra.mxu3 %v2371_v6  ;;  %239 = vmatpush.msra.mxu1 %v209_v7  ;;  %v2379_v13 = vld [vmem:[#allocation11 + $0x40] sm:$0xff]  ;;  %v206_v15 = vld [vmem:[#allocation9 + $0x8] sm:$0xff]  ;;  %v2382_v16 = vld [vmem:[#allocation11 + $0x30] sm:$0xff]  ;;  %v2495_v48 = vadd.s32 128, %v147_v36 }
  0x25   :  { %262 = vmatpush.msra.mxu2 %v210_v8  ;;  %v205_v14 = vld [vmem:[#allocation9] sm:$0xff]  ;;  %v2388_v18 = vld [vmem:[#allocation11 + $0x10] sm:$0xff]  ;;  %v2401_v22 = vld [vmem:[#allocation11 + $0x68] sm:$0xff]  ;;  %333 = vmatpush.msrb.mxu0 %v2399_v21 }
  0x26   :  { %315 = vmatpush.msra.mxu3 %v2373_v9  ;;  %240 = vmatpush.msra.mxu1 %v207_v11  ;;  %v2385_v17 = vld [vmem:[#allocation11 + $0x20] sm:$0xff]  ;;  %v2407_v23 = vld [vmem:[#allocation11 + $0x58] sm:$0xff]  ;;  %v2413_v24 = vld [vmem:[#allocation11 + $0x48] sm:$0xff]  ;;  %vm162_vm7 = vcmp.lt.s32.totalorder %v2495_v48, 160 }
  0x27   :  { %263 = vmatpush.msra.mxu2 %v208_v12  ;;  %v2394_v19 = vld [vmem:[#allocation11] sm:$0xff]  ;;  %334 = vmatpush.msrb.mxu0 %v2401_v22  ;;  %v2419_v25 = vld [vmem:[#allocation11 + $0x38] sm:$0xff]  ;;  %v2425_v26 = vld [vmem:[#allocation11 + $0x28] sm:$0xff] }
  0x28   :  { %316 = vmatpush.msra.mxu3 %v2379_v13  ;;  %241 = vmatpush.msra.mxu1 %v205_v14  ;;  %v2430_v27 = vld [vmem:[#allocation11 + $0x18] sm:$0xff]  ;;  %v2435_v28 = vld [vmem:[#allocation11 + $0x8] sm:$0xff]  ;;  %vm155_vm5 = vmand %vm151_vm2, %vm153_vm3 }
  0x29   :  { %264 = vmatpush.msra.mxu2 %v206_v15  ;;  %335 = vmatpush.msrb.mxu0 %v2407_v23  ;;  %v1954_v29 = vld [vmem:[#allocation8] ss:$0 sm:$0xff]  ;;  %v213_v35 = vld [vmem:[%s2989_s4] sm:$0x3]  ;;  %vm2491_vm6 = vmor %vm149_vm4, %vm155_vm5 }
  0x2a   :  { %317 = vmatpush.msra.mxu3 %v2382_v16  ;;  %404 = vmatpush.msrb.mxu1 %v2368_v3  ;;  %v215_v38 = vperm.slane %v213_v35, 0  ;;  %v216_v40 = vperm.slane %v213_v35, 1 }
  0x2b   :  { %1887 = vmatmul.msk.f32.gmra.mxu0 %vm175_vm0, %v168_v10  ;;  %424 = vmatpush.msrb.mxu2 %v2399_v21  ;;  %v2530_v10 = vld [vmem:[%s2991_s6] ss:$0 sm:$0xff]  ;;  %s2267_s6 = smov 64  }
  0x2c   :  { %318 = vmatpush.msra.mxu3 %v2385_v17  ;;  %405 = vmatpush.msrb.mxu1 %v2371_v6 }
  0x2d   :  { %425 = vmatpush.msrb.mxu2 %v2401_v22  ;;  %336 = vmatpush.msrb.mxu0 %v2413_v24 }
  0x2e   :  { %319 = vmatpush.msra.mxu3 %v2388_v18  ;;  %406 = vmatpush.msrb.mxu1 %v2373_v9 }
  0x2f   :  { %426 = vmatpush.msrb.mxu2 %v2407_v23  ;;  %337 = vmatpush.msrb.mxu0 %v2419_v25 }
  0x30   :  { %320 = vmatpush.msra.mxu3 %v2394_v19  ;;  %407 = vmatpush.msrb.mxu1 %v2379_v13 }
  0x31   :  { %321 = vmatmul.f32.vlgmr.msra.gmra.mxu3 %v2266_v20  ;;  %427 = vmatpush.msrb.mxu2 %v2413_v24 }
  0x32   :  { %408 = vmatpush.msrb.mxu1 %v2382_v16  ;;  %497 = vmatpush.msrb.mxu3 %v2368_v3 }
  0x33   :  { %428 = vmatpush.msrb.mxu2 %v2419_v25  ;;  %338 = vmatpush.msrb.mxu0 %v2425_v26 }
  0x34   :  { %409 = vmatpush.msrb.mxu1 %v2385_v17  ;;  %498 = vmatpush.msrb.mxu3 %v2371_v6 }
  0x35   :  { %429 = vmatpush.msrb.mxu2 %v2425_v26  ;;  %339 = vmatpush.msrb.mxu0 %v2430_v27 }
  0x36   :  { %410 = vmatpush.msrb.mxu1 %v2388_v18  ;;  %499 = vmatpush.msrb.mxu3 %v2373_v9 }
  0x37   :  { %430 = vmatpush.msrb.mxu2 %v2430_v27  ;;  %340 = vmatpush.msrb.mxu0 %v2435_v28 }
  0x38   :  { %411 = vmatpush.msrb.mxu1 %v2394_v19  ;;  %500 = vmatpush.msrb.mxu3 %v2379_v13 }
  0x39   :  { %431 = vmatpush.msrb.mxu2 %v2435_v28  ;;  %341 = vmatmul.f32.vlgmr.msrb.gmra.mxu0 %v2266_v20 }
  0x3a   :  { %501 = vmatpush.msrb.mxu3 %v2382_v16  ;;  %517 = vmatpush.msra.mxu0 %v2399_v21 }
  0x3c   :  { %502 = vmatpush.msrb.mxu3 %v2385_v17  ;;  %518 = vmatpush.msra.mxu0 %v2401_v22 }
  0x3e   :  { %503 = vmatpush.msrb.mxu3 %v2388_v18  ;;  %519 = vmatpush.msra.mxu0 %v2407_v23 }
  0x40   :  { %504 = vmatpush.msrb.mxu3 %v2394_v19  ;;  %520 = vmatpush.msra.mxu0 %v2413_v24 }
  0x42   :  { %691 = vmatpush.msra.mxu3 %v2368_v3  ;;  %521 = vmatpush.msra.mxu0 %v2419_v25 }
  0x44   :  { %692 = vmatpush.msra.mxu3 %v2371_v6  ;;  %522 = vmatpush.msra.mxu0 %v2425_v26 }
  0x46   :  { %693 = vmatpush.msra.mxu3 %v2373_v9  ;;  %523 = vmatpush.msra.mxu0 %v2430_v27 }
  0x48   :  { %694 = vmatpush.msra.mxu3 %v2379_v13  ;;  %524 = vmatpush.msra.mxu0 %v2435_v28 }
  0x4a   :  { %695 = vmatpush.msra.mxu3 %v2382_v16  ;;  %711 = vmatpush.msrb.mxu0 %v2399_v21 }
  0x4c   :  { %696 = vmatpush.msra.mxu3 %v2385_v17  ;;  %712 = vmatpush.msrb.mxu0 %v2401_v22 }
  0x4e   :  { %697 = vmatpush.msra.mxu3 %v2388_v18  ;;  %713 = vmatpush.msrb.mxu0 %v2407_v23 }
  0x50   :  { %698 = vmatpush.msra.mxu3 %v2394_v19  ;;  %714 = vmatpush.msrb.mxu0 %v2413_v24 }
  0x52   :  { %715 = vmatpush.msrb.mxu0 %v2419_v25 }
  0x54   :  { %716 = vmatpush.msrb.mxu0 %v2425_v26 }
  0x56   :  { %717 = vmatpush.msrb.mxu0 %v2430_v27 }
  0x58   :  { %718 = vmatpush.msrb.mxu0 %v2435_v28 }
  0xa0   :  { %v199_v30 = vpop.f32.mrf.mxu0 }
  0xa1   :  { %v200_v31 = vadd.f32 %v1954_v29, %v199_v30 }
  0xa3   :  { %1888 = vmatmul.msk.f32.vlgmr.msra.gmra.mxu1 %vm219_vm1, %v200_v31  ;;  %1890 = vmatmul.msk.f32.vlgmr.msra.gmra.mxu2 %vm219_vm1, %v200_v31 }
  0xa4   :  { %590 = vmatpush.msra.mxu1 %v2368_v3  ;;  %610 = vmatpush.msra.mxu2 %v2399_v21 }
  0xa6   :  { %591 = vmatpush.msra.mxu1 %v2371_v6  ;;  %611 = vmatpush.msra.mxu2 %v2401_v22 }
  0xa8   :  { %v202_v32 = vpop.f32.mrf.mxu0  ;;  %592 = vmatpush.msra.mxu1 %v2373_v9  ;;  %612 = vmatpush.msra.mxu2 %v2407_v23 }
  0xa9   :  { %v203_v33 = vadd.f32 %v1954_v29, %v202_v32 }
  0xaa   :  { %593 = vmatpush.msra.mxu1 %v2379_v13  ;;  %613 = vmatpush.msra.mxu2 %v2413_v24 }
  0xab   :  { %1889 = vmatmul.msk.f32.gmra.mxu1 %vm219_vm1, %v203_v33  ;;  %1891 = vmatmul.msk.f32.gmra.mxu2 %vm219_vm1, %v203_v33 }
  0xac   :  { %594 = vmatpush.msra.mxu1 %v2382_v16  ;;  %614 = vmatpush.msra.mxu2 %v2419_v25 }
  0xae   :  { %595 = vmatpush.msra.mxu1 %v2385_v17  ;;  %615 = vmatpush.msra.mxu2 %v2425_v26 }
  0xb0   :  { %596 = vmatpush.msra.mxu1 %v2388_v18  ;;  %616 = vmatpush.msra.mxu2 %v2430_v27 }
  0xb2   :  { %597 = vmatpush.msra.mxu1 %v2394_v19  ;;  %617 = vmatpush.msra.mxu2 %v2435_v28 }
  0xb4   :  { %v322_v50 = vpop.f32.mrf.mxu3 }
  0xb6   :  { %v342_v11 = vpop.f32.mrf.mxu0 }
  0xb7   :  { %v368_v30 = vadd.f32 %v2530_v10, %v342_v11 }
 0x120   :  { %v243_v37 = vpop.f32.mrf.mxu1 }
 0x121   :  { %v244_v39 = vadd.f32 %v243_v37, %v215_v38 }
 0x123   :  { %v672_v45 = vrot.slane %v244_v39, 6  ;;  %v762_v46 = vrot.slane %v244_v39, 2 }
 0x126   :  { %v266_v41 = vpop.f32.mrf.mxu2 }
 0x127   :  { %v267_v47 = vadd.f32 %v266_v41, %v216_v40 }
 0x128   :  { %v246_v42 = vpop.f32.mrf.mxu1 }
 0x129   :  { %v247_v44 = vadd.f32 %v246_v42, %v215_v38  ;;  %v673_v58 = vrot.slane %v267_v47, 6  ;;  %v763_v59 = vrot.slane %v267_v47, 2 }
 0x12b   :  { %v295_v49 = vrot.slane %v247_v44, 6  ;;  %v388_v51 = vrot.slane %v247_v44, 2  ;;  %v2499_v52 = vsel %vm2491_vm6, %v247_v44, %v672_v45  ;;  %v2503_v53 = vsel %vm2491_vm6, %v247_v44, %v762_v46 }
 0x12d   :  { %v2507_v54 = vsel %vm2491_vm6, %v244_v39, %v295_v49  ;;  %v2511_v55 = vsel %vm2491_vm6, %v244_v39, %v388_v51 }
 0x12e   :  { %v345_v56 = vadd.f32 %v322_v50, %v2507_v54  ;;  %v269_v57 = vpop.f32.mrf.mxu2 }
 0x12f   :  { %v270_v60 = vadd.f32 %v269_v57, %v216_v40 }
 0x130   :  { %v1892_v61 = vmul.f32 -1.442695, %v345_v56 }
 0x131   :  { %v389_v62 = vrot.slane %v270_v60, 2  ;;  %v2517_v63 = vsel %vm162_vm7, %v270_v60, %v673_v58  ;;  %v2521_v0 = vsel %vm162_vm7, %v270_v60, %v763_v59  ;;  %v296_v31 = vrot.slane %v270_v60, 6 }
 0x132   :  { %1957 = vpow2.f32 %v1892_v61 }
 0x133   :  { %v2525_v1 = vsel %vm162_vm7, %v267_v47, %v389_v62  ;;  %v2535_v36 = vsel %vm162_vm7, %v267_v47, %v296_v31 }
 0x138   :  { %v1958_v2 = vpop.eup %1957 }
 0x139   :  { %v349_v4 = vadd.f32 1.0, %v1958_v2 }
 0x13b   :  { %1959 = vrcp.f32 %v349_v4  ;;  %v361_v12 = vand.u32 2147483648, %v349_v4  ;;  %v359_v15 = vand.u32 2147483647, %v349_v4  ;;  %vm355_vm9 = vweird.f32 %v349_v4 }
 0x13d   :  { %v362_v32 = vor.u32 1.1754944e-38, %v361_v12  ;;  %vm360_vm11 = vcmp.eq.f32.partialorder %v359_v15, 8.507059e+37 }
 0x141   :  { %v1960_v5 = vpop.eup %1959 }
 0x142   :  { %v351_v7 = vmul.f32 %v1960_v5, %v349_v4  ;;  %vm356_vm8 = vweird.f32 %v1960_v5 }
 0x143   :  { %vm357_vm10 = vmor %vm355_vm9, %vm356_vm8 }
 0x144   :  { %v352_v8 = vsub.f32 1.0, %v351_v7 }
 0x146   :  { %v353_v14 = vmul.f32 %v1960_v5, %v352_v8 }
 0x148   :  { %v354_v29 = vadd.f32 %v1960_v5, %v353_v14 }
 0x14a   :  { %v358_v33 = vsel %vm357_vm10, %v1960_v5, %v354_v29 }
 0x14b   :  { %v363_v34 = vsel %vm360_vm11, %v362_v32, %v358_v33 }
 0x14c   :  { %v369_v35 = vmul.f32 %v368_v30, %v363_v34  ;;  %v372_v39 = vsub.f32 1.0, %v363_v34  ;;  %v378_v41 = vmul.f32 0.0, %v363_v34 }
 0x14e   :  { %v370_v37 = vadd.f32 %v369_v35, %v2535_v36 }
 0x150   :  { %1961 = vtanh.f32 %v370_v37 }
 0x156   :  { %v1962_v38 = vpop.eup %1961 }
 0x157   :  { %374 = vrot.lane.b32.xlu0 %v1962_v38, %s2267_s6 }
 0x1c9   :  { %v375_v40 = vpop.permute.xlu0 %374 }
 0x1ca   :  { %v377_v42 = vmul.f32 %v375_v40, %v372_v39 }
 0x1cc   :  { %v379_v44 = vadd.f32 %v378_v41, %v377_v42 }
 0x1ce   :  { %381 = vrot.lane.b32.xlu0 %v379_v44, %s2267_s6  ;;  %v472_v8 = vrot.slane %v379_v44, 6 }
 0x240   :  { %v382_v45 = vpop.permute.xlu0 %381 }
 0x241   :  { %385 = vst.msk [vmem:[#allocation2] sm:$0x3] %vm384_vm12, %v382_v45  ;;  %1893 = vmatmul.msk.f32.vlgmr.msrb.gmra.mxu1 %vm301_vm13, %v382_v45  ;;  %1894 = vmatmul.msk.f32.vlgmr.msrb.gmra.mxu2 %vm301_vm13, %v382_v45 }
 0x242   :  { %387 = vst.msk [vmem:[#allocation2 + $0xe] sm:$0x3] %vm386_vm14, %v382_v45  ;;  %778 = vmatpush.msrb.mxu1 %v2368_v3  ;;  %798 = vmatpush.msrb.mxu2 %v2399_v21 }
 0x244   :  { %779 = vmatpush.msrb.mxu1 %v2371_v6  ;;  %799 = vmatpush.msrb.mxu2 %v2401_v22 }
 0x246   :  { %780 = vmatpush.msrb.mxu1 %v2373_v9  ;;  %800 = vmatpush.msrb.mxu2 %v2407_v23 }
 0x248   :  { %781 = vmatpush.msrb.mxu1 %v2379_v13  ;;  %801 = vmatpush.msrb.mxu2 %v2413_v24 }
 0x24a   :  { %782 = vmatpush.msrb.mxu1 %v2382_v16  ;;  %802 = vmatpush.msrb.mxu2 %v2419_v25 }
 0x24c   :  { %783 = vmatpush.msrb.mxu1 %v2385_v17  ;;  %803 = vmatpush.msrb.mxu2 %v2425_v26 }
 0x24e   :  { %784 = vmatpush.msrb.mxu1 %v2388_v18  ;;  %804 = vmatpush.msrb.mxu2 %v2430_v27 }
 0x250   :  { %785 = vmatpush.msrb.mxu1 %v2394_v19  ;;  %805 = vmatpush.msrb.mxu2 %v2435_v28 }
 0x2be   :  { %v413_v46 = vpop.f32.mrf.mxu1 }
 0x2bf   :  { %v437_v47 = vrot.slane %v413_v46, 6 }
 0x2c1   :  { %v439_v49 = vadd.f32 %v437_v47, %v2511_v55 }
 0x2c3   :  { %v1895_v50 = vmul.f32 -1.442695, %v439_v49 }
 0x2c4   :  { %v433_v59 = vpop.f32.mrf.mxu2 }
 0x2c5   :  { %1963 = vpow2.f32 %v1895_v50  ;;  %v459_v4 = vadd.f32 %v2530_v10, %v433_v59 }
 0x2c7   :  { %v461_v12 = vrot.slane %v459_v4, 6 }
 0x2cb   :  { %v1964_v51 = vpop.eup %1963 }
 0x2cc   :  { %v443_v56 = vadd.f32 1.0, %v1964_v51 }
 0x2ce   :  { %1965 = vrcp.f32 %v443_v56  ;;  %v455_v61 = vand.u32 2147483648, %v443_v56  ;;  %v453_v2 = vand.u32 2147483647, %v443_v56  ;;  %vm449_vm0 = vweird.f32 %v443_v56 }
 0x2d0   :  { %v456_v7 = vor.u32 1.1754944e-38, %v455_v61  ;;  %vm454_vm2 = vcmp.eq.f32.partialorder %v453_v2, 8.507059e+37 }
 0x2d4   :  { %v1966_v57 = vpop.eup %1965 }
 0x2d5   :  { %v445_v58 = vmul.f32 %v1966_v57, %v443_v56  ;;  %vm450_vm15 = vweird.f32 %v1966_v57 }
 0x2d6   :  { %vm451_vm1 = vmor %vm449_vm0, %vm450_vm15 }
 0x2d7   :  { %v446_v60 = vsub.f32 1.0, %v445_v58 }
 0x2d9   :  { %v447_v62 = vmul.f32 %v1966_v57, %v446_v60 }
 0x2db   :  { %v448_v5 = vadd.f32 %v1966_v57, %v447_v62 }
 0x2dd   :  { %v452_v11 = vsel %vm451_vm1, %v1966_v57, %v448_v5 }
 0x2de   :  { %v457_v14 = vsel %vm454_vm2, %v456_v7, %v452_v11 }
 0x2df   :  { %v463_v15 = vmul.f32 %v461_v12, %v457_v14  ;;  %v474_v29 = vmul.f32 %v472_v8, %v457_v14  ;;  %v466_v32 = vsub.f32 1.0, %v457_v14 }
 0x2e1   :  { %v464_v30 = vadd.f32 %v463_v15, %v2525_v1 }
 0x2e3   :  { %1967 = vtanh.f32 %v464_v30 }
 0x2e9   :  { %v1968_v31 = vpop.eup %1967 }
 0x2ea   :  { %468 = vrot.lane.b32.xlu1 %v1968_v31, %s2267_s6 }
 0x35c   :  { %v469_v33 = vpop.permute.xlu1 %468 }
 0x35d   :  { %v471_v34 = vmul.f32 %v469_v33, %v466_v32 }
 0x35f   :  { %v2564_v35 = vadd.f32 %v474_v29, %v471_v34 }
 0x361   :  { %v484_v37 = vrot.slane %v2564_v35, 2  ;;  %v565_v8 = vrot.slane %v2564_v35, 6 }
 0x363   :  { %485 = vrot.lane.b32.xlu1 %v484_v37, %s2267_s6 }
 0x3d5   :  { %v486_v38 = vpop.permute.xlu1 %485 }
 0x3d6   :  { %1896 = vmatmul.msk.f32.vlgmr.msrb.gmra.mxu3 %vm301_vm13, %v486_v38  ;;  %1897 = vmatmul.msk.f32.vlgmr.msra.gmra.mxu0 %vm301_vm13, %v486_v38 }
 0x3d7   :  { %869 = vmatpush.msrb.mxu3 %v2368_v3  ;;  %889 = vmatpush.msra.mxu0 %v2399_v21 }
 0x3d9   :  { %870 = vmatpush.msrb.mxu3 %v2371_v6  ;;  %890 = vmatpush.msra.mxu0 %v2401_v22 }
 0x3db   :  { %871 = vmatpush.msrb.mxu3 %v2373_v9  ;;  %891 = vmatpush.msra.mxu0 %v2407_v23 }
 0x3dd   :  { %872 = vmatpush.msrb.mxu3 %v2379_v13  ;;  %892 = vmatpush.msra.mxu0 %v2413_v24 }
 0x3df   :  { %873 = vmatpush.msrb.mxu3 %v2382_v16  ;;  %893 = vmatpush.msra.mxu0 %v2419_v25 }
 0x3e1   :  { %874 = vmatpush.msrb.mxu3 %v2385_v17  ;;  %894 = vmatpush.msra.mxu0 %v2425_v26 }
 0x3e3   :  { %875 = vmatpush.msrb.mxu3 %v2388_v18  ;;  %895 = vmatpush.msra.mxu0 %v2430_v27 }
 0x3e5   :  { %876 = vmatpush.msrb.mxu3 %v2394_v19  ;;  %896 = vmatpush.msra.mxu0 %v2435_v28 }
 0x453   :  { %v526_v49 = vpop.f32.mrf.mxu0 }
 0x454   :  { %v552_v56 = vadd.f32 %v2530_v10, %v526_v49 }
 0x459   :  { %v506_v39 = vpop.f32.mrf.mxu3 }
 0x45a   :  { %v530_v40 = vrot.slane %v506_v39, 4 }
 0x45c   :  { %v532_v41 = vadd.f32 %v530_v40, %v2507_v54  ;;  %v554_v54 = vrot.slane %v552_v56, 4 }
 0x45e   :  { %v1898_v42 = vmul.f32 -1.442695, %v532_v41 }
 0x460   :  { %1969 = vpow2.f32 %v1898_v42 }
 0x466   :  { %v1970_v44 = vpop.eup %1969 }
 0x467   :  { %v536_v45 = vadd.f32 1.0, %v1970_v44 }
 0x469   :  { %1971 = vrcp.f32 %v536_v45  ;;  %v548_v51 = vand.u32 2147483648, %v536_v45  ;;  %v546_v58 = vand.u32 2147483647, %v536_v45  ;;  %vm542_vm4 = vweird.f32 %v536_v45 }
 0x46b   :  { %v549_v60 = vor.u32 1.1754944e-38, %v548_v51  ;;  %vm547_vm8 = vcmp.eq.f32.partialorder %v546_v58, 8.507059e+37 }
 0x46f   :  { %v1972_v46 = vpop.eup %1971 }
 0x470   :  { %v538_v47 = vmul.f32 %v1972_v46, %v536_v45  ;;  %vm543_vm3 = vweird.f32 %v1972_v46 }
 0x471   :  { %vm544_vm5 = vmor %vm542_vm4, %vm543_vm3 }
 0x472   :  { %v539_v50 = vsub.f32 1.0, %v538_v47 }
 0x474   :  { %v540_v57 = vmul.f32 %v1972_v46, %v539_v50 }
 0x476   :  { %v541_v59 = vadd.f32 %v1972_v46, %v540_v57 }
 0x478   :  { %v545_v61 = vsel %vm544_vm5, %v1972_v46, %v541_v59 }
 0x479   :  { %v550_v62 = vsel %vm547_vm8, %v549_v60, %v545_v61 }
 0x47a   :  { %v556_v2 = vmul.f32 %v554_v54, %v550_v62  ;;  %v559_v7 = vsub.f32 1.0, %v550_v62  ;;  %v567_v12 = vmul.f32 %v565_v8, %v550_v62 }
 0x47c   :  { %v557_v4 = vadd.f32 %v556_v2, %v2535_v36 }
 0x47e   :  { %1973 = vtanh.f32 %v557_v4 }
 0x484   :  { %v1974_v5 = vpop.eup %1973 }
 0x485   :  { %561 = vrot.lane.b32.xlu2 %v1974_v5, %s2267_s6 }
 0x4df   :  { %v562_v11 = vpop.permute.xlu2 %561 }
 0x4e0   :  { %v564_v14 = vmul.f32 %v562_v11, %v559_v7 }
 0x4e2   :  { %v2591_v15 = vadd.f32 %v567_v12, %v564_v14 }
 0x4e4   :  { %v577_v29 = vrot.slane %v2591_v15, 4  ;;  %v658_v38 = vrot.slane %v2591_v15, 6 }
 0x4e6   :  { %578 = vrot.lane.b32.xlu2 %v577_v29, %s2267_s6 }
 0x540   :  { %v579_v30 = vpop.permute.xlu2 %578 }
 0x541   :  { %1899 = vmatmul.msk.f32.vlgmr.msra.gmra.mxu1 %vm301_vm13, %v579_v30  ;;  %1900 = vmatmul.msk.f32.vlgmr.msra.gmra.mxu2 %vm301_vm13, %v579_v30 }
 0x542   :  { %960 = vmatpush.msra.mxu1 %v2368_v3  ;;  %980 = vmatpush.msra.mxu2 %v2399_v21 }
 0x544   :  { %961 = vmatpush.msra.mxu1 %v2371_v6  ;;  %981 = vmatpush.msra.mxu2 %v2401_v22 }
 0x546   :  { %962 = vmatpush.msra.mxu1 %v2373_v9  ;;  %982 = vmatpush.msra.mxu2 %v2407_v23 }
 0x548   :  { %963 = vmatpush.msra.mxu1 %v2379_v13  ;;  %983 = vmatpush.msra.mxu2 %v2413_v24 }
 0x54a   :  { %964 = vmatpush.msra.mxu1 %v2382_v16  ;;  %984 = vmatpush.msra.mxu2 %v2419_v25 }
 0x54c   :  { %965 = vmatpush.msra.mxu1 %v2385_v17  ;;  %985 = vmatpush.msra.mxu2 %v2425_v26 }
 0x54e   :  { %966 = vmatpush.msra.mxu1 %v2388_v18  ;;  %986 = vmatpush.msra.mxu2 %v2430_v27 }
 0x550   :  { %967 = vmatpush.msra.mxu1 %v2394_v19  ;;  %987 = vmatpush.msra.mxu2 %v2435_v28 }
 0x5be   :  { %v599_v3 = vpop.f32.mrf.mxu1 }
 0x5bf   :  { %v623_v6 = vrot.slane %v599_v3, 2 }
 0x5c1   :  { %v625_v9 = vadd.f32 %v623_v6, %v2511_v55 }
 0x5c3   :  { %v1901_v13 = vmul.f32 -1.442695, %v625_v9 }
 0x5c4   :  { %v619_v23 = vpop.f32.mrf.mxu2 }
 0x5c5   :  { %1975 = vpow2.f32 %v1901_v13  ;;  %v645_v19 = vadd.f32 %v2530_v10, %v619_v23 }
 0x5c7   :  { %v647_v36 = vrot.slane %v645_v19, 2 }
 0x5cb   :  { %v1976_v16 = vpop.eup %1975 }
 0x5cc   :  { %v629_v21 = vadd.f32 1.0, %v1976_v16 }
 0x5ce   :  { %1977 = vrcp.f32 %v629_v21  ;;  %v641_v18 = vand.u32 2147483648, %v629_v21  ;;  %v639_v26 = vand.u32 2147483647, %v629_v21  ;;  %vm635_vm10 = vweird.f32 %v629_v21 }
 0x5d0   :  { %v642_v28 = vor.u32 1.1754944e-38, %v641_v18  ;;  %vm640_vm15 = vcmp.eq.f32.partialorder %v639_v26, 8.507059e+37 }
 0x5d4   :  { %v1978_v17 = vpop.eup %1977 }
 0x5d5   :  { %v631_v22 = vmul.f32 %v1978_v17, %v629_v21  ;;  %vm636_vm9 = vweird.f32 %v1978_v17 }
 0x5d6   :  { %vm637_vm11 = vmor %vm635_vm10, %vm636_vm9 }
 0x5d7   :  { %v632_v24 = vsub.f32 1.0, %v631_v22 }
 0x5d9   :  { %v633_v25 = vmul.f32 %v1978_v17, %v632_v24 }
 0x5db   :  { %v634_v27 = vadd.f32 %v1978_v17, %v633_v25 }
 0x5dd   :  { %v638_v55 = vsel %vm637_vm11, %v1978_v17, %v634_v27 }
 0x5de   :  { %v643_v31 = vsel %vm640_vm15, %v642_v28, %v638_v55 }
 0x5df   :  { %v649_v32 = vmul.f32 %v647_v36, %v643_v31  ;;  %v652_v37 = vsub.f32 1.0, %v643_v31  ;;  %v660_v40 = vmul.f32 %v658_v38, %v643_v31 }
 0x5e1   :  { %v650_v33 = vadd.f32 %v649_v32, %v2525_v1 }
 0x5e3   :  { %1979 = vtanh.f32 %v650_v33 }
 0x5e9   :  { %v1980_v34 = vpop.eup %1979 }
 0x5ea   :  { %654 = vrot.lane.b32.xlu0 %v1980_v34, %s2267_s6 }
 0x65c   :  { %v655_v39 = vpop.permute.xlu0 %654 }
 0x65d   :  { %v657_v41 = vmul.f32 %v655_v39, %v652_v37 }
 0x65f   :  { %v2618_v42 = vadd.f32 %v660_v40, %v657_v41 }
 0x661   :  { %v678_v44 = vrot.slane %v2618_v42, 6 }
 0x663   :  { %679 = vrot.lane.b32.xlu1 %v678_v44, %s2267_s6 }
 0x6d5   :  { %v680_v45 = vpop.permute.xlu1 %679 }
 0x6d6   :  { %1902 = vmatmul.msk.f32.vlgmr.msra.gmra.mxu3 %vm301_vm13, %v680_v45  ;;  %1903 = vmatmul.msk.f32.vlgmr.msrb.gmra.mxu0 %vm301_vm13, %v680_v45 }
 0x753   :  { %v720_v54 = vpop.f32.mrf.mxu0 }
 0x754   :  { %v743_v2 = vadd.f32 %v2530_v10, %v720_v54 }
 0x759   :  { %v700_v1 = vpop.f32.mrf.mxu3 }
 0x75a   :  { %v723_v46 = vadd.f32 %v700_v1, %v2499_v52 }
 0x75c   :  { %v1904_v47 = vmul.f32 -1.442695, %v723_v46 }
 0x75e   :  { %1981 = vpow2.f32 %v1904_v47 }
 0x764   :  { %v1982_v49 = vpop.eup %1981 }
 0x765   :  { %v727_v50 = vadd.f32 1.0, %v1982_v49 }
 0x767   :  { %1983 = vrcp.f32 %v727_v50  ;;  %v739_v58 = vand.u32 2147483648, %v727_v50  ;;  %v737_v60 = vand.u32 2147483647, %v727_v50  ;;  %vm733_vm1 = vweird.f32 %v727_v50 }
 0x769   :  { %v740_v62 = vor.u32 1.1754944e-38, %v739_v58  ;;  %vm738_vm3 = vcmp.eq.f32.partialorder %v737_v60, 8.507059e+37 }
 0x76d   :  { %v1984_v51 = vpop.eup %1983 }
 0x76e   :  { %v729_v56 = vmul.f32 %v1984_v51, %v727_v50  ;;  %vm734_vm0 = vweird.f32 %v1984_v51 }
 0x76f   :  { %vm735_vm2 = vmor %vm733_vm1, %vm734_vm0  ;;  %vm480_vm1 = vcmask 257026  }
 0x770   :  { %v730_v57 = vsub.f32 1.0, %v729_v56 }
 0x772   :  { %v731_v59 = vmul.f32 %v1984_v51, %v730_v57 }
 0x774   :  { %v732_v61 = vadd.f32 %v1984_v51, %v731_v59 }
 0x776   :  { %v736_v4 = vsel %vm735_vm2, %v1984_v51, %v732_v61  ;;  %vm482_vm2 = vcmask 519426  }
 0x777   :  { %v741_v5 = vsel %vm738_vm3, %v740_v62, %v736_v4  ;;  %vm573_vm3 = vcmask 259076  }
 0x778   :  { %v744_v7 = vmul.f32 %v743_v2, %v741_v5  ;;  %v747_v12 = vsub.f32 1.0, %v741_v5  ;;  %v754_v29 = vmul.f32 %v741_v5, %v678_v44 }
 0x77a   :  { %v745_v8 = vadd.f32 %v744_v7, %v2517_v63 }
 0x77c   :  { %1985 = vtanh.f32 %v745_v8 }
 0x782   :  { %v1986_v11 = vpop.eup %1985 }
 0x783   :  { %749 = vrot.lane.b32.xlu2 %v1986_v11, %s2267_s6 }
 0x7dd   :  { %v750_v14 = vpop.permute.xlu2 %749 }
 0x7de   :  { %v752_v30 = vmul.f32 %v750_v14, %v747_v12 }
 0x7e0   :  { %v755_v3 = vadd.f32 %v754_v29, %v752_v30 }
 0x7e2   :  { %757 = vrot.lane.b32.xlu0 %v755_v3, %s2267_s6  ;;  %v846_v31 = vrot.slane %v755_v3, 6 }
 0x854   :  { %v2629_v6 = vpop.permute.xlu0 %757 }
 0x855   :  { %1905 = vmatmul.msk.f32.vlgmr.msrb.gmra.mxu1 %vm301_vm13, %v2629_v6  ;;  %1906 = vmatmul.msk.f32.vlgmr.msrb.gmra.mxu2 %vm301_vm13, %v2629_v6 }
 0x8d2   :  { %v787_v9 = vpop.f32.mrf.mxu1 }
 0x8d3   :  { %v811_v13 = vrot.slane %v787_v9, 6 }
 0x8d5   :  { %v813_v16 = vadd.f32 %v811_v13, %v2503_v53 }
 0x8d7   :  { %v1907_v21 = vmul.f32 -1.442695, %v813_v16 }
 0x8d8   :  { %v807_v18 = vpop.f32.mrf.mxu2 }
 0x8d9   :  { %1987 = vpow2.f32 %v1907_v21  ;;  %v833_v28 = vadd.f32 %v2530_v10, %v807_v18 }
 0x8db   :  { %v835_v33 = vrot.slane %v833_v28, 6 }
 0x8df   :  { %v1988_v17 = vpop.eup %1987 }
 0x8e0   :  { %v817_v22 = vadd.f32 1.0, %v1988_v17 }
 0x8e2   :  { %1989 = vrcp.f32 %v817_v22  ;;  %v829_v26 = vand.u32 2147483648, %v817_v22  ;;  %v827_v27 = vand.u32 2147483647, %v817_v22  ;;  %vm823_vm5 = vweird.f32 %v817_v22 }
 0x8e4   :  { %v830_v36 = vor.u32 1.1754944e-38, %v829_v26  ;;  %vm828_vm9 = vcmp.eq.f32.partialorder %v827_v27, 8.507059e+37 }
 0x8e8   :  { %v1990_v23 = vpop.eup %1989 }
 0x8e9   :  { %v819_v24 = vmul.f32 %v1990_v23, %v817_v22  ;;  %vm824_vm4 = vweird.f32 %v1990_v23 }
 0x8ea   :  { %vm825_vm8 = vmor %vm823_vm5, %vm824_vm4  ;;  %vm575_vm4 = vcmask 521476  }
 0x8eb   :  { %v820_v25 = vsub.f32 1.0, %v819_v24 }
 0x8ed   :  { %v821_v19 = vmul.f32 %v1990_v23, %v820_v25 }
 0x8ef   :  { %v822_v55 = vadd.f32 %v1990_v23, %v821_v19 }
 0x8f1   :  { %v826_v32 = vsel %vm825_vm8, %v1990_v23, %v822_v55 }
 0x8f2   :  { %v831_v34 = vsel %vm828_vm9, %v830_v36, %v826_v32 }
 0x8f3   :  { %v837_v37 = vmul.f32 %v835_v33, %v831_v34  ;;  %v848_v38 = vmul.f32 %v846_v31, %v831_v34  ;;  %v840_v41 = vsub.f32 1.0, %v831_v34 }
 0x8f5   :  { %v838_v39 = vadd.f32 %v837_v37, %v2521_v0 }
 0x8f7   :  { %1991 = vtanh.f32 %v838_v39 }
 0x8fd   :  { %v1992_v40 = vpop.eup %1991 }
 0x8fe   :  { %842 = vrot.lane.b32.xlu1 %v1992_v40, %s2267_s6 }
 0x970   :  { %v843_v44 = vpop.permute.xlu1 %842 }
 0x971   :  { %v845_v45 = vmul.f32 %v843_v44, %v840_v41 }
 0x973   :  { %v849_v1 = vadd.f32 %v848_v38, %v845_v45 }
 0x975   :  { %v856_v46 = vrot.slane %v849_v1, 2  ;;  %v937_v9 = vrot.slane %v849_v1, 6 }
 0x977   :  { %857 = vrot.lane.b32.xlu2 %v856_v46, %s2267_s6 }
 0x9d1   :  { %v858_v47 = vpop.permute.xlu2 %857 }
 0x9d2   :  { %1908 = vmatmul.msk.f32.vlgmr.msrb.gmra.mxu3 %vm301_vm13, %v858_v47  ;;  %1909 = vmatmul.msk.f32.vlgmr.msra.gmra.mxu0 %vm301_vm13, %v858_v47 }
 0xa4f   :  { %v898_v54 = vpop.f32.mrf.mxu0 }
 0xa50   :  { %v924_v2 = vadd.f32 %v2530_v10, %v898_v54 }
 0xa55   :  { %v878_v49 = vpop.f32.mrf.mxu3 }
 0xa56   :  { %v902_v50 = vrot.slane %v878_v49, 4 }
 0xa58   :  { %v904_v51 = vadd.f32 %v902_v50, %v2499_v52  ;;  %v926_v52 = vrot.slane %v924_v2, 4  ;;  %v1055_v50 = vld [vmem:[#allocation12 + $0x78] sm:$0xff]  ;;  %v1046_v2 = vld [vmem:[#allocation12 + $0x30] sm:$0xff] }
 0xa59   :  { %1099 = vmatpush.msrb.mxu0 %v1055_v50 }
 0xa5a   :  { %v1910_v56 = vmul.f32 -1.442695, %v904_v51  ;;  %v1052_v51 = vld [vmem:[#allocation12 + $0x60] sm:$0xff] }
 0xa5c   :  { %1993 = vpow2.f32 %v1910_v56  ;;  %v1053_v56 = vld [vmem:[#allocation12 + $0x68] sm:$0xff] }
 0xa5d   :  { %1100 = vmatpush.msrb.mxu0 %v1053_v56 }
 0xa62   :  { %v1994_v57 = vpop.eup %1993 }
 0xa63   :  { %v908_v58 = vadd.f32 1.0, %v1994_v57  ;;  %v1050_v57 = vld [vmem:[#allocation12 + $0x50] sm:$0xff] }
 0xa65   :  { %1995 = vrcp.f32 %v908_v58  ;;  %v920_v62 = vand.u32 2147483648, %v908_v58  ;;  %v918_v5 = vand.u32 2147483647, %v908_v58  ;;  %vm914_vm11 = vweird.f32 %v908_v58 }
 0xa67   :  { %v921_v8 = vor.u32 1.1754944e-38, %v920_v62  ;;  %vm919_vm0 = vcmp.eq.f32.partialorder %v918_v5, 8.507059e+37  ;;  %v1044_v5 = vld [vmem:[#allocation12 + $0x20] sm:$0xff] }
 0xa6b   :  { %v1996_v59 = vpop.eup %1995 }
 0xa6c   :  { %v910_v60 = vmul.f32 %v1996_v59, %v908_v58  ;;  %vm915_vm10 = vweird.f32 %v1996_v59  ;;  %v1051_v58 = vld [vmem:[#allocation12 + $0x58] sm:$0xff] }
 0xa6d   :  { %vm916_vm15 = vmor %vm914_vm11, %vm915_vm10  ;;  %1101 = vmatpush.msrb.mxu0 %v1051_v58  ;;  %vm666_vm11 = vcmask 261126  }
 0xa6e   :  { %v911_v61 = vsub.f32 1.0, %v910_v60  ;;  %v1049_v60 = vld [vmem:[#allocation12 + $0x48] sm:$0xff] }
 0xa6f   :  { %1102 = vmatpush.msrb.mxu0 %v1049_v60 }
 0xa70   :  { %v912_v4 = vmul.f32 %v1996_v59, %v911_v61 }
 0xa72   :  { %v913_v7 = vadd.f32 %v1996_v59, %v912_v4  ;;  %v1047_v4 = vld [vmem:[#allocation12 + $0x38] sm:$0xff] }
 0xa73   :  { %1103 = vmatpush.msrb.mxu0 %v1047_v4 }
 0xa74   :  { %v917_v11 = vsel %vm916_vm15, %v1996_v59, %v913_v7  ;;  %v1048_v59 = vld [vmem:[#allocation12 + $0x40] sm:$0xff]  ;;  %vm668_vm15 = vcmask 523526   ;;  %v1045_v7 = vld [vmem:[#allocation12 + $0x28] sm:$0xff] }
 0xa75   :  { %v922_v12 = vsel %vm919_vm0, %v921_v8, %v917_v11  ;;  %v1042_v8 = vld [vmem:[#allocation12 + $0x10] sm:$0xff]  ;;  %1104 = vmatpush.msrb.mxu0 %v1045_v7  ;;  %v1040_v11 = vld [vmem:[#allocation12] sm:$0xff] }
 0xa76   :  { %v928_v14 = vmul.f32 %v926_v52, %v922_v12  ;;  %v931_v3 = vsub.f32 1.0, %v922_v12  ;;  %v939_v16 = vmul.f32 %v937_v9, %v922_v12  ;;  %v1043_v52 = vld [vmem:[#allocation12 + $0x18] sm:$0xff]  ;;  %v1041_v12 = vld [vmem:[#allocation12 + $0x8] sm:$0xff] }
 0xa77   :  { %1105 = vmatpush.msrb.mxu0 %v1043_v52  ;;  %v2692_v9 = vld [vmem:[#allocation14 + $0x78] sm:$0xff] }
 0xa78   :  { %v929_v29 = vadd.f32 %v928_v14, %v2517_v63  ;;  %v2676_v14 = vld [vmem:[#allocation14 + $0x70] sm:$0xff]  ;;  %1167 = vmatpush.msrb.mxu2 %v2692_v9 }
 0xa79   :  { %1106 = vmatpush.msrb.mxu0 %v1041_v12  ;;  %1147 = vmatpush.msrb.mxu1 %v2676_v14 }
 0xa7a   :  { %1997 = vtanh.f32 %v929_v29  ;;  %v2678_v29 = vld [vmem:[#allocation14 + $0x60] sm:$0xff] }
 0xa7b   :  { %1148 = vmatpush.msrb.mxu1 %v2678_v29  ;;  %1256 = vmatpush.msra.mxu0 %v2692_v9 }
 0xa80   :  { %v1998_v30 = vpop.eup %1997 }
 0xa81   :  { %933 = vrot.lane.b32.xlu0 %v1998_v30, %s2267_s6  ;;  %v2686_v30 = vld [vmem:[#allocation14 + $0x40] sm:$0xff] }
 0xa89   :  { %477 = vrot.lane.b32.xlu0 %v2564_v35, %s2267_s6 }
 0xa91   :  { %851 = vrot.lane.b32.xlu0 %v849_v1, %s2267_s6 }
 0xaf3   :  { %v934_v13 = vpop.permute.xlu0 %933 }
 0xaf4   :  { %v936_v21 = vmul.f32 %v934_v13, %v931_v3  ;;  %v2690_v3 = vld [vmem:[#allocation14 + $0x30] sm:$0xff]  ;;  %v2694_v13 = vld [vmem:[#allocation14 + $0x68] sm:$0xff] }
 0xaf5   :  { %1168 = vmatpush.msrb.mxu2 %v2694_v13  ;;  %1257 = vmatpush.msra.mxu0 %v2694_v13 }
 0xaf6   :  { %v940_v17 = vadd.f32 %v939_v16, %v936_v21  ;;  %v2698_v16 = vld [vmem:[#allocation14 + $0x20] sm:$0xff]  ;;  %v2700_v21 = vld [vmem:[#allocation14 + $0x58] sm:$0xff] }
 0xaf7   :  { %1169 = vmatpush.msrb.mxu2 %v2700_v21  ;;  %1258 = vmatpush.msra.mxu0 %v2700_v21 }
 0xaf8   :  { %v947_v22 = vrot.slane %v940_v17, 4  ;;  %v1028_v44 = vrot.slane %v940_v17, 6 }
 0xafa   :  { %948 = vrot.lane.b32.xlu1 %v947_v22, %s2267_s6  ;;  %v2708_v22 = vld [vmem:[#allocation14 + $0x48] sm:$0xff] }
 0xafb   :  { %v478_v63 = vpop.permute.xlu0 %477  ;;  %1170 = vmatpush.msrb.mxu2 %v2708_v22  ;;  %1259 = vmatpush.msra.mxu0 %v2708_v22 }
 0xafc   :  { %481 = vst.msk [vmem:[#allocation2] sm:$0xc] %vm480_vm1, %v478_v63 }
 0xafd   :  { %483 = vst.msk [vmem:[#allocation2 + $0xa] sm:$0xc] %vm482_vm2, %v478_v63  ;;  %v2714_v63 = vld [vmem:[#allocation14] sm:$0xff] }
 0xb02   :  { %570 = vrot.lane.b32.xlu1 %v2591_v15, %s2267_s6 }
 0xb03   :  { %v852_v24 = vpop.permute.xlu0 %851 }
 0xb0a   :  { %942 = vrot.lane.b32.xlu1 %v940_v17, %s2267_s6  ;;  %v2706_v17 = vld [vmem:[#allocation14 + $0x10] sm:$0xff] }
 0xb6c   :  { %v949_v35 = vpop.permute.xlu1 %948 }
 0xb6d   :  { %1911 = vmatmul.msk.f32.vlgmr.msra.gmra.mxu1 %vm301_vm13, %v949_v35  ;;  %1912 = vmatmul.msk.f32.vlgmr.msra.gmra.mxu2 %vm301_vm13, %v949_v35  ;;  %v2716_v35 = vld [vmem:[#allocation14 + $0x38] sm:$0xff] }
 0xb6e   :  { %1171 = vmatpush.msrb.mxu2 %v2716_v35  ;;  %1260 = vmatpush.msra.mxu0 %v2716_v35 }
 0xb74   :  { %v571_v23 = vpop.permute.xlu1 %570 }
 0xb75   :  { %574 = vst.msk [vmem:[#allocation2] sm:$0x30] %vm573_vm3, %v571_v23 }
 0xb76   :  { %576 = vst.msk [vmem:[#allocation2 + $0x6] sm:$0x30] %vm575_vm4, %v571_v23  ;;  %v2722_v23 = vld [vmem:[#allocation14 + $0x28] sm:$0xff] }
 0xb77   :  { %854 = vst.msk [vmem:[#allocation2 + $0x8] sm:$0xc] %vm480_vm1, %v852_v24  ;;  %1172 = vmatpush.msrb.mxu2 %v2722_v23  ;;  %1261 = vmatpush.msra.mxu0 %v2722_v23 }
 0xb78   :  { %855 = vst.msk [vmem:[#allocation2 + $0x2] sm:$0xc] %vm482_vm2, %v852_v24  ;;  %v2729_v24 = vld [vmem:[#allocation14 + $0x18] sm:$0xff] }
 0xb79   :  { %1173 = vmatpush.msrb.mxu2 %v2729_v24  ;;  %1262 = vmatpush.msra.mxu0 %v2729_v24 }
 0xb7c   :  { %v943_v15 = vpop.permute.xlu1 %942 }
 0xb7d   :  { %945 = vst.msk [vmem:[#allocation2 + $0x8] sm:$0x30] %vm573_vm3, %v943_v15 }
 0xb7e   :  { %946 = vst.msk [vmem:[#allocation2 - $0x2] sm:$0x30] %vm575_vm4, %v943_v15 }
 0xbea   :  { %v969_v18 = vpop.f32.mrf.mxu1 }
 0xbeb   :  { %v993_v25 = vrot.slane %v969_v18, 2  ;;  %v2734_v18 = vld [vmem:[#allocation14 + $0x8] sm:$0xff] }
 0xbec   :  { %1174 = vmatpush.msrb.mxu2 %v2734_v18  ;;  %1263 = vmatpush.msra.mxu0 %v2734_v18 }
 0xbed   :  { %v995_v26 = vadd.f32 %v993_v25, %v2503_v53  ;;  %1175 = vmatmul.f32.vlgmr.msrb.gmra.mxu2 %v2266_v20 }
 0xbee   :  { %1347 = vmatpush.msra.mxu2 %v2692_v9 }
 0xbef   :  { %v1913_v19 = vmul.f32 -1.442695, %v995_v26  ;;  %v1056_v26 = vld [vmem:[%s2993_s8] sm:$0x3] }
 0xbf0   :  { %v989_v31 = vpop.f32.mrf.mxu2  ;;  %1348 = vmatpush.msra.mxu2 %v2694_v13 }
 0xbf1   :  { %1999 = vpow2.f32 %v1913_v19  ;;  %v1015_v38 = vadd.f32 %v2530_v10, %v989_v31  ;;  %v1054_v10 = vld [vmem:[#allocation12 + $0x70] sm:$0xff] }
 0xbf2   :  { %1076 = vmatpush.msra.mxu3 %v1054_v10  ;;  %1349 = vmatpush.msra.mxu2 %v2700_v21 }
 0xbf3   :  { %v1017_v41 = vrot.slane %v1015_v38, 2 }
 0xbf4   :  { %1077 = vmatpush.msra.mxu3 %v1052_v51  ;;  %1350 = vmatpush.msra.mxu2 %v2708_v22 }
 0xbf6   :  { %1078 = vmatpush.msra.mxu3 %v1050_v57  ;;  %1351 = vmatpush.msra.mxu2 %v2716_v35 }
 0xbf7   :  { %v2000_v27 = vpop.eup %1999 }
 0xbf8   :  { %v999_v28 = vadd.f32 1.0, %v2000_v27  ;;  %1079 = vmatpush.msra.mxu3 %v1048_v59  ;;  %1352 = vmatpush.msra.mxu2 %v2722_v23  ;;  %v1059_v27 = vperm.slane %v1056_v26, 1 }
 0xbfa   :  { %2001 = vrcp.f32 %v999_v28  ;;  %v1011_v33 = vand.u32 2147483648, %v999_v28  ;;  %v1009_v37 = vand.u32 2147483647, %v999_v28  ;;  %vm1005_vm8 = vweird.f32 %v999_v28  ;;  %1080 = vmatpush.msra.mxu3 %v1046_v2  ;;  %1353 = vmatpush.msra.mxu2 %v2729_v24 }
 0xbfc   :  { %v1012_v40 = vor.u32 1.1754944e-38, %v1011_v33  ;;  %vm1010_vm10 = vcmp.eq.f32.partialorder %v1009_v37, 8.507059e+37  ;;  %1081 = vmatpush.msra.mxu3 %v1044_v5  ;;  %1354 = vmatpush.msra.mxu2 %v2734_v18 }
 0xbfe   :  { %1082 = vmatpush.msra.mxu3 %v1042_v8  ;;  %1537 = vmatpush.msrb.mxu2 %v2692_v9 }
 0xc00   :  { %v2002_v55 = vpop.eup %2001  ;;  %1083 = vmatpush.msra.mxu3 %v1040_v11  ;;  %1538 = vmatpush.msrb.mxu2 %v2694_v13 }
 0xc01   :  { %v1001_v36 = vmul.f32 %v2002_v55, %v999_v28  ;;  %vm1006_vm5 = vweird.f32 %v2002_v55 }
 0xc02   :  { %vm1007_vm9 = vmor %vm1005_vm8, %vm1006_vm5  ;;  %1236 = vmatpush.msrb.mxu3 %v2676_v14  ;;  %1539 = vmatpush.msrb.mxu2 %v2700_v21 }
 0xc03   :  { %v1002_v32 = vsub.f32 1.0, %v1001_v36  ;;  %v1058_v36 = vperm.slane %v1056_v26, 0 }
 0xc04   :  { %1237 = vmatpush.msrb.mxu3 %v2678_v29  ;;  %1540 = vmatpush.msrb.mxu2 %v2708_v22 }
 0xc05   :  { %v1003_v34 = vmul.f32 %v2002_v55, %v1002_v32 }
 0xc06   :  { %1541 = vmatpush.msrb.mxu2 %v2716_v35 }
 0xc07   :  { %v1004_v39 = vadd.f32 %v2002_v55, %v1003_v34 }
 0xc08   :  { %1542 = vmatpush.msrb.mxu2 %v2722_v23 }
 0xc09   :  { %v1008_v53 = vsel %vm1007_vm9, %v2002_v55, %v1004_v39 }
 0xc0a   :  { %v1013_v45 = vsel %vm1010_vm10, %v1012_v40, %v1008_v53  ;;  %1543 = vmatpush.msrb.mxu2 %v2729_v24 }
 0xc0b   :  { %v1019_v1 = vmul.f32 %v1017_v41, %v1013_v45  ;;  %v1030_v46 = vmul.f32 %v1028_v44, %v1013_v45 }
 0xc0c   :  { %1544 = vmatpush.msrb.mxu2 %v2734_v18 }
 0xc0d   :  { %v1020_v47 = vadd.f32 %v1019_v1, %v2521_v0  ;;  %v1022_v0 = vsub.f32 1.0, %v1013_v45 }
 0xc0f   :  { %2003 = vtanh.f32 %v1020_v47 }
 0xc15   :  { %v2004_v49 = vpop.eup %2003 }
 0xc16   :  { %1024 = vrot.lane.b32.xlu2 %v2004_v49, %s2267_s6 }
 0xc1e   :  { %663 = vrot.lane.b32.xlu2 %v2618_v42, %s2267_s6 }
 0xc70   :  { %v1025_v54 = vpop.permute.xlu2 %1024 }
 0xc71   :  { %v1027_v61 = vmul.f32 %v1025_v54, %v1022_v0 }
 0xc73   :  { %v1031_v42 = vadd.f32 %v1030_v46, %v1027_v61 }
 0xc75   :  { %1033 = vrot.lane.b32.xlu2 %v1031_v42, %s2267_s6  ;;  %v2831_v42 = vld [vmem:[%s2995_s10] ss:$0 sm:$0xff]  ;;  %s2268_s10 = smov [#allocation15]  }
 0xc76   :  { %s1868_s17 = sshll.u32 %s2268_s10, 4  ;;  %s1869_s17 = int_to_ptr.vmem [resolvable:$true] %s1868_s17 }
 0xc78   :  { %v664_v62 = vpop.permute.xlu2 %663 }
 0xc79   :  { %667 = vst.msk [vmem:[#allocation2] sm:$0xc0] %vm666_vm11, %v664_v62 }
 0xc7a   :  { %669 = vst.msk [vmem:[#allocation2 + $0x2] sm:$0xc0] %vm668_vm15, %v664_v62  ;;  %v1176_v62 = vpop.f32.mrf.mxu2 }
 0xc7b   :  { %760 = vst.msk [vmem:[#allocation2 + $0x8] sm:$0x3] %vm384_vm12, %v2629_v6  ;;  %v1202_v7 = vadd.f32 %v2831_v42, %v1176_v62 }
 0xc7c   :  { %761 = vst.msk [vmem:[#allocation2 + $0x6] sm:$0x3] %vm386_vm14, %v2629_v6  ;;  %v2684_v6 = vld [vmem:[#allocation14 + $0x50] sm:$0xff] }
 0xc7d   :  { %1149 = vmatpush.msrb.mxu1 %v2684_v6  ;;  %1238 = vmatpush.msrb.mxu3 %v2684_v6 }
 0xc7f   :  { %1150 = vmatpush.msrb.mxu1 %v2686_v30  ;;  %1239 = vmatpush.msrb.mxu3 %v2686_v30 }
 0xc81   :  { %1151 = vmatpush.msrb.mxu1 %v2690_v3  ;;  %1240 = vmatpush.msrb.mxu3 %v2690_v3 }
 0xc83   :  { %1152 = vmatpush.msrb.mxu1 %v2698_v16  ;;  %1241 = vmatpush.msrb.mxu3 %v2698_v16 }
 0xc85   :  { %1153 = vmatpush.msrb.mxu1 %v2706_v17  ;;  %1242 = vmatpush.msrb.mxu3 %v2706_v17 }
 0xc87   :  { %1154 = vmatpush.msrb.mxu1 %v2714_v63  ;;  %1243 = vmatpush.msrb.mxu3 %v2714_v63 }
 0xc88   :  { %1155 = vmatmul.f32.vlgmr.msrb.gmra.mxu1 %v2266_v20 }
 0xc89   :  { %1327 = vmatpush.msra.mxu1 %v2676_v14 }
 0xc8b   :  { %1328 = vmatpush.msra.mxu1 %v2678_v29 }
 0xc8d   :  { %1329 = vmatpush.msra.mxu1 %v2684_v6 }
 0xc8f   :  { %1330 = vmatpush.msra.mxu1 %v2686_v30 }
 0xc91   :  { %1331 = vmatpush.msra.mxu1 %v2690_v3 }
 0xc93   :  { %1332 = vmatpush.msra.mxu1 %v2698_v16 }
 0xc95   :  { %1333 = vmatpush.msra.mxu1 %v2706_v17 }
 0xc97   :  { %1334 = vmatpush.msra.mxu1 %v2714_v63 }
 0xc99   :  { %1517 = vmatpush.msrb.mxu1 %v2676_v14 }
 0xc9b   :  { %1518 = vmatpush.msrb.mxu1 %v2678_v29 }
 0xc9d   :  { %1519 = vmatpush.msrb.mxu1 %v2684_v6 }
 0xc9f   :  { %1520 = vmatpush.msrb.mxu1 %v2686_v30 }
 0xca1   :  { %1521 = vmatpush.msrb.mxu1 %v2690_v3 }
 0xca3   :  { %1522 = vmatpush.msrb.mxu1 %v2698_v16 }
 0xca5   :  { %1523 = vmatpush.msrb.mxu1 %v2706_v17 }
 0xca7   :  { %1524 = vmatpush.msrb.mxu1 %v2714_v63 }
 0xccf   :  { %v1034_v15 = vpop.permute.xlu2 %1033 }
 0xcd0   :  { %1036 = vst.msk [vmem:[#allocation2 + $0x8] sm:$0xc0] %vm666_vm11, %v1034_v15 }
 0xcd1   :  { %1037 = vst.msk [vmem:[#allocation2 - $0x6] sm:$0xc0] %vm668_vm15, %v1034_v15 }
 0xcd7   :  { %v1039_v20 = vld [vmem:[#allocation2 + $0x8] sm:$0xff] }
 0xcd8   :  { %v1038_v25 = vld [vmem:[#allocation2] sm:$0xff] }
 0xcd9   :  { %1914 = vmatmul.msk.f32.vlgmr.msra.gmra.mxu3 %vm301_vm13, %v1038_v25  ;;  %1916 = vmatmul.msk.f32.vlgmr.msrb.gmra.mxu0 %vm301_vm13, %v1038_v25 }
 0xcda   :  { %1418 = vmatpush.msra.mxu3 %v2676_v14  ;;  %1438 = vmatpush.msrb.mxu0 %v2692_v9 }
 0xcdc   :  { %1419 = vmatpush.msra.mxu3 %v2678_v29  ;;  %1439 = vmatpush.msrb.mxu0 %v2694_v13 }
 0xcde   :  { %1420 = vmatpush.msra.mxu3 %v2684_v6  ;;  %1440 = vmatpush.msrb.mxu0 %v2700_v21 }
 0xce0   :  { %1421 = vmatpush.msra.mxu3 %v2686_v30  ;;  %1441 = vmatpush.msrb.mxu0 %v2708_v22 }
 0xce1   :  { %1915 = vmatmul.msk.f32.gmra.mxu3 %vm301_vm13, %v1039_v20  ;;  %1917 = vmatmul.msk.f32.gmra.mxu0 %vm301_vm13, %v1039_v20 }
 0xce2   :  { %1422 = vmatpush.msra.mxu3 %v2690_v3  ;;  %1442 = vmatpush.msrb.mxu0 %v2716_v35 }
 0xce4   :  { %1423 = vmatpush.msra.mxu3 %v2698_v16  ;;  %1443 = vmatpush.msrb.mxu0 %v2722_v23 }
 0xce6   :  { %1424 = vmatpush.msra.mxu3 %v2706_v17  ;;  %1444 = vmatpush.msrb.mxu0 %v2729_v24 }
 0xce8   :  { %1425 = vmatpush.msra.mxu3 %v2714_v63  ;;  %1445 = vmatpush.msrb.mxu0 %v2734_v18 }
 0xd05   :  { %v1156_v47 = vpop.f32.mrf.mxu1 }
 0xd56   :  { %v1108_v19 = vpop.f32.mrf.mxu0 }
 0xd57   :  { %v1109_v28 = vadd.f32 %v1108_v19, %v1059_v27 }
 0xd59   :  { %v1499_v32 = vrot.slane %v1109_v28, 6  ;;  %v1589_v33 = vrot.slane %v1109_v28, 2 }
 0xd5c   :  { %v1085_v55 = vpop.f32.mrf.mxu3 }
 0xd5d   :  { %v1086_v37 = vadd.f32 %v1085_v55, %v1058_v36 }
 0xd5e   :  { %v1111_v31 = vpop.f32.mrf.mxu0 }
 0xd5f   :  { %v1112_v34 = vadd.f32 %v1111_v31, %v1059_v27  ;;  %v1498_v45 = vrot.slane %v1086_v37, 6  ;;  %v1588_v1 = vrot.slane %v1086_v37, 2 }
 0xd61   :  { %v1221_v38 = vrot.slane %v1112_v34, 2  ;;  %v2801_v39 = vsel %vm162_vm7, %v1112_v34, %v1589_v33  ;;  %v2805_v40 = vsel %vm162_vm7, %v1112_v34, %v1499_v32  ;;  %v1134_v8 = vrot.slane %v1112_v34, 6 }
 0xd63   :  { %v2809_v53 = vsel %vm162_vm7, %v1109_v28, %v1221_v38  ;;  %v2836_v25 = vsel %vm162_vm7, %v1109_v28, %v1134_v8 }
 0xd64   :  { %v1088_v41 = vpop.f32.mrf.mxu3 }
 0xd65   :  { %v1089_v44 = vadd.f32 %v1088_v41, %v1058_v36 }
 0xd67   :  { %v1133_v46 = vrot.slane %v1089_v44, 6  ;;  %v1220_v49 = vrot.slane %v1089_v44, 2  ;;  %v2813_v10 = vsel %vm2491_vm6, %v1089_v44, %v1498_v45  ;;  %v2817_v50 = vsel %vm2491_vm6, %v1089_v44, %v1588_v1 }
 0xd69   :  { %v2821_v51 = vsel %vm2491_vm6, %v1086_v37, %v1133_v46  ;;  %v2825_v56 = vsel %vm2491_vm6, %v1086_v37, %v1220_v49 }
 0xd6a   :  { %v1179_v57 = vadd.f32 %v1156_v47, %v2821_v51 }
 0xd6c   :  { %v1918_v58 = vmul.f32 -1.442695, %v1179_v57 }
 0xd6e   :  { %2005 = vpow2.f32 %v1918_v58 }
 0xd74   :  { %v2006_v59 = vpop.eup %2005 }
 0xd75   :  { %v1183_v60 = vadd.f32 1.0, %v2006_v59 }
 0xd77   :  { %2007 = vrcp.f32 %v1183_v60  ;;  %v1195_v2 = vand.u32 2147483648, %v1183_v60  ;;  %v1193_v4 = vand.u32 2147483647, %v1183_v60  ;;  %vm1189_vm0 = vweird.f32 %v1183_v60 }
 0xd79   :  { %v1196_v52 = vor.u32 1.1754944e-38, %v1195_v2  ;;  %vm1194_vm8 = vcmp.eq.f32.partialorder %v1193_v4, 8.507059e+37 }
 0xd7d   :  { %v2008_v0 = vpop.eup %2007 }
 0xd7e   :  { %v1185_v54 = vmul.f32 %v2008_v0, %v1183_v60  ;;  %vm1190_vm6 = vweird.f32 %v2008_v0 }
 0xd7f   :  { %vm1191_vm5 = vmor %vm1189_vm0, %vm1190_vm6 }
 0xd80   :  { %v1186_v61 = vsub.f32 1.0, %v1185_v54 }
 0xd82   :  { %v1187_v43 = vmul.f32 %v2008_v0, %v1186_v61 }
 0xd84   :  { %v1188_v5 = vadd.f32 %v2008_v0, %v1187_v43 }
 0xd86   :  { %v1192_v11 = vsel %vm1191_vm5, %v2008_v0, %v1188_v5 }
 0xd87   :  { %v1197_v12 = vsel %vm1194_vm8, %v1196_v52, %v1192_v11 }
 0xd88   :  { %v1203_v15 = vmul.f32 %v1202_v7, %v1197_v12  ;;  %v1206_v19 = vsub.f32 1.0, %v1197_v12  ;;  %v1212_v55 = vmul.f32 0.0, %v1197_v12 }
 0xd8a   :  { %v1204_v20 = vadd.f32 %v1203_v15, %v2836_v25 }
 0xd8c   :  { %2009 = vtanh.f32 %v1204_v20 }
 0xd92   :  { %v2010_v26 = vpop.eup %2009 }
 0xd93   :  { %1208 = vrot.lane.b32.xlu0 %v2010_v26, %s2267_s6 }
 0xe05   :  { %v1209_v27 = vpop.permute.xlu0 %1208 }
 0xe06   :  { %v1211_v36 = vmul.f32 %v1209_v27, %v1206_v19 }
 0xe08   :  { %v1213_v31 = vadd.f32 %v1212_v55, %v1211_v36 }
 0xe0a   :  { %1215 = vrot.lane.b32.xlu1 %v1213_v31, %s2267_s6  ;;  %v1304_v60 = vrot.slane %v1213_v31, 6 }
 0xe7c   :  { %v1216_v32 = vpop.permute.xlu1 %1215 }
 0xe7d   :  { %1218 = vst.msk [vmem:[#allocation15] sm:$0x3] %vm384_vm12, %v1216_v32  ;;  %1919 = vmatmul.msk.f32.vlgmr.msrb.gmra.mxu3 %vm301_vm13, %v1216_v32  ;;  %1920 = vmatmul.msk.f32.vlgmr.msra.gmra.mxu0 %vm301_vm13, %v1216_v32 }
 0xe7e   :  { %1219 = vst.msk [vmem:[#allocation15 + $0xe] sm:$0x3] %vm386_vm14, %v1216_v32  ;;  %1604 = vmatpush.msrb.mxu3 %v2676_v14  ;;  %1624 = vmatpush.msra.mxu0 %v2692_v9 }
 0xe80   :  { %1605 = vmatpush.msrb.mxu3 %v2678_v29  ;;  %1625 = vmatpush.msra.mxu0 %v2694_v13 }
 0xe82   :  { %1606 = vmatpush.msrb.mxu3 %v2684_v6  ;;  %1626 = vmatpush.msra.mxu0 %v2700_v21 }
 0xe84   :  { %1607 = vmatpush.msrb.mxu3 %v2686_v30  ;;  %1627 = vmatpush.msra.mxu0 %v2708_v22 }
 0xe86   :  { %1608 = vmatpush.msrb.mxu3 %v2690_v3  ;;  %1628 = vmatpush.msra.mxu0 %v2716_v35 }
 0xe88   :  { %1609 = vmatpush.msrb.mxu3 %v2698_v16  ;;  %1629 = vmatpush.msra.mxu0 %v2722_v23 }
 0xe8a   :  { %1610 = vmatpush.msrb.mxu3 %v2706_v17  ;;  %1630 = vmatpush.msra.mxu0 %v2729_v24 }
 0xe8c   :  { %1611 = vmatpush.msrb.mxu3 %v2714_v63  ;;  %1631 = vmatpush.msra.mxu0 %v2734_v18 }
 0xefa   :  { %v1265_v45 = vpop.f32.mrf.mxu0 }
 0xefb   :  { %v1291_v47 = vadd.f32 %v2831_v42, %v1265_v45 }
 0xefd   :  { %v1293_v0 = vrot.slane %v1291_v47, 6 }
 0xf00   :  { %v1245_v48 = vpop.f32.mrf.mxu3 }
 0xf01   :  { %v1269_v28 = vrot.slane %v1245_v48, 6 }
 0xf03   :  { %v1271_v33 = vadd.f32 %v1269_v28, %v2825_v56 }
 0xf05   :  { %v1921_v34 = vmul.f32 -1.442695, %v1271_v33 }
 0xf07   :  { %2011 = vpow2.f32 %v1921_v34 }
 0xf0d   :  { %v2012_v37 = vpop.eup %2011 }
 0xf0e   :  { %v1275_v38 = vadd.f32 1.0, %v2012_v37 }
 0xf10   :  { %2013 = vrcp.f32 %v1275_v38  ;;  %v1287_v46 = vand.u32 2147483648, %v1275_v38  ;;  %v1285_v57 = vand.u32 2147483647, %v1275_v38  ;;  %vm1281_vm9 = vweird.f32 %v1275_v38 }
 0xf12   :  { %v1288_v59 = vor.u32 1.1754944e-38, %v1287_v46  ;;  %vm1286_vm6 = vcmp.eq.f32.partialorder %v1285_v57, 8.507059e+37 }
 0xf16   :  { %v2014_v41 = vpop.eup %2013 }
 0xf17   :  { %v1277_v44 = vmul.f32 %v2014_v41, %v1275_v38  ;;  %vm1282_vm7 = vweird.f32 %v2014_v41 }
 0xf18   :  { %vm1283_vm10 = vmor %vm1281_vm9, %vm1282_vm7 }
 0xf19   :  { %v1278_v1 = vsub.f32 1.0, %v1277_v44 }
 0xf1b   :  { %v1279_v49 = vmul.f32 %v2014_v41, %v1278_v1 }
 0xf1d   :  { %v1280_v58 = vadd.f32 %v2014_v41, %v1279_v49 }
 0xf1f   :  { %v1284_v54 = vsel %vm1283_vm10, %v2014_v41, %v1280_v58 }
 0xf20   :  { %v1289_v61 = vsel %vm1286_vm6, %v1288_v59, %v1284_v54 }
 0xf21   :  { %v1295_v62 = vmul.f32 %v1293_v0, %v1289_v61  ;;  %v1306_v2 = vmul.f32 %v1304_v60, %v1289_v61  ;;  %v1298_v5 = vsub.f32 1.0, %v1289_v61 }
 0xf23   :  { %v1296_v43 = vadd.f32 %v1295_v62, %v2809_v53 }
 0xf25   :  { %2015 = vtanh.f32 %v1296_v43 }
 0xf2b   :  { %v2016_v4 = vpop.eup %2015 }
 0xf2c   :  { %1300 = vrot.lane.b32.xlu2 %v2016_v4, %s2267_s6 }
 0xf86   :  { %v1301_v7 = vpop.permute.xlu2 %1300 }
 0xf87   :  { %v1303_v8 = vmul.f32 %v1301_v7, %v1298_v5 }
 0xf89   :  { %v2865_v52 = vadd.f32 %v1306_v2, %v1303_v8 }
 0xf8b   :  { %v1314_v11 = vrot.slane %v2865_v52, 2  ;;  %v1395_v57 = vrot.slane %v2865_v52, 6 }
 0xf8d   :  { %1315 = vrot.lane.b32.xlu0 %v1314_v11, %s2267_s6 }
 0xfff   :  { %v1316_v12 = vpop.permute.xlu0 %1315 }
0x1000   :  { %1922 = vmatmul.msk.f32.vlgmr.msra.gmra.mxu1 %vm301_vm13, %v1316_v12  ;;  %1923 = vmatmul.msk.f32.vlgmr.msra.gmra.mxu2 %vm301_vm13, %v1316_v12 }
0x1001   :  { %1695 = vmatpush.msra.mxu1 %v2676_v14  ;;  %1715 = vmatpush.msra.mxu2 %v2692_v9 }
0x1003   :  { %1696 = vmatpush.msra.mxu1 %v2678_v29  ;;  %1716 = vmatpush.msra.mxu2 %v2694_v13 }
0x1005   :  { %1697 = vmatpush.msra.mxu1 %v2684_v6  ;;  %1717 = vmatpush.msra.mxu2 %v2700_v21 }
0x1007   :  { %1698 = vmatpush.msra.mxu1 %v2686_v30  ;;  %1718 = vmatpush.msra.mxu2 %v2708_v22 }
0x1009   :  { %1699 = vmatpush.msra.mxu1 %v2690_v3  ;;  %1719 = vmatpush.msra.mxu2 %v2716_v35 }
0x100b   :  { %1700 = vmatpush.msra.mxu1 %v2698_v16  ;;  %1720 = vmatpush.msra.mxu2 %v2722_v23 }
0x100d   :  { %1701 = vmatpush.msra.mxu1 %v2706_v17  ;;  %1721 = vmatpush.msra.mxu2 %v2729_v24 }
0x100f   :  { %1702 = vmatpush.msra.mxu1 %v2714_v63  ;;  %1722 = vmatpush.msra.mxu2 %v2734_v18 }
0x107d   :  { %v1336_v15 = vpop.f32.mrf.mxu1 }
0x107e   :  { %v1360_v20 = vrot.slane %v1336_v15, 4 }
0x1080   :  { %v1362_v26 = vadd.f32 %v1360_v20, %v2821_v51 }
0x1082   :  { %v1924_v19 = vmul.f32 -1.442695, %v1362_v26 }
0x1083   :  { %v1356_v32 = vpop.f32.mrf.mxu2 }
0x1084   :  { %2017 = vpow2.f32 %v1924_v19  ;;  %v1382_v37 = vadd.f32 %v2831_v42, %v1356_v32 }
0x1086   :  { %v1384_v44 = vrot.slane %v1382_v37, 4 }
0x108a   :  { %v2018_v27 = vpop.eup %2017 }
0x108b   :  { %v1366_v55 = vadd.f32 1.0, %v2018_v27 }
0x108d   :  { %2019 = vrcp.f32 %v1366_v55  ;;  %v1378_v28 = vand.u32 2147483648, %v1366_v55  ;;  %v1376_v34 = vand.u32 2147483647, %v1366_v55  ;;  %vm1372_vm5 = vweird.f32 %v1366_v55 }
0x108f   :  { %v1379_v41 = vor.u32 1.1754944e-38, %v1378_v28  ;;  %vm1377_vm7 = vcmp.eq.f32.partialorder %v1376_v34, 8.507059e+37 }
0x1093   :  { %v2020_v36 = vpop.eup %2019 }
0x1094   :  { %v1368_v31 = vmul.f32 %v2020_v36, %v1366_v55  ;;  %vm1373_vm0 = vweird.f32 %v2020_v36 }
0x1095   :  { %vm1374_vm8 = vmor %vm1372_vm5, %vm1373_vm0 }
0x1096   :  { %v1369_v48 = vsub.f32 1.0, %v1368_v31 }
0x1098   :  { %v1370_v33 = vmul.f32 %v2020_v36, %v1369_v48 }
0x109a   :  { %v1371_v38 = vadd.f32 %v2020_v36, %v1370_v33 }
0x109c   :  { %v1375_v51 = vsel %vm1374_vm8, %v2020_v36, %v1371_v38 }
0x109d   :  { %v1380_v45 = vsel %vm1377_vm7, %v1379_v41, %v1375_v51 }
0x109e   :  { %v1386_v1 = vmul.f32 %v1384_v44, %v1380_v45  ;;  %v1389_v49 = vsub.f32 1.0, %v1380_v45  ;;  %v1397_v59 = vmul.f32 %v1395_v57, %v1380_v45 }
0x10a0   :  { %v1387_v46 = vadd.f32 %v1386_v1, %v2836_v25 }
0x10a2   :  { %2021 = vtanh.f32 %v1387_v46 }
0x10a8   :  { %v2022_v47 = vpop.eup %2021 }
0x10a9   :  { %1391 = vrot.lane.b32.xlu1 %v2022_v47, %s2267_s6 }
0x111b   :  { %v1392_v58 = vpop.permute.xlu1 %1391 }
0x111c   :  { %v1394_v60 = vmul.f32 %v1392_v58, %v1389_v49 }
0x111e   :  { %v2892_v0 = vadd.f32 %v1397_v59, %v1394_v60 }
0x1120   :  { %v1405_v54 = vrot.slane %v2892_v0, 4  ;;  %v1486_v7 = vrot.slane %v2892_v0, 6 }
0x1122   :  { %1406 = vrot.lane.b32.xlu2 %v1405_v54, %s2267_s6 }
0x117c   :  { %v1407_v61 = vpop.permute.xlu2 %1406 }
0x117d   :  { %1925 = vmatmul.msk.f32.vlgmr.msra.gmra.mxu3 %vm301_vm13, %v1407_v61  ;;  %1926 = vmatmul.msk.f32.vlgmr.msrb.gmra.mxu0 %vm301_vm13, %v1407_v61 }
0x117e   :  { %1786 = vmatpush.msra.mxu3 %v2676_v14  ;;  %1806 = vmatpush.msrb.mxu0 %v2692_v9 }
0x1180   :  { %1787 = vmatpush.msra.mxu3 %v2678_v29  ;;  %1807 = vmatpush.msrb.mxu0 %v2694_v13 }
0x1182   :  { %1788 = vmatpush.msra.mxu3 %v2684_v6  ;;  %1808 = vmatpush.msrb.mxu0 %v2700_v21 }
0x1184   :  { %1789 = vmatpush.msra.mxu3 %v2686_v30  ;;  %1809 = vmatpush.msrb.mxu0 %v2708_v22 }
0x1186   :  { %1790 = vmatpush.msra.mxu3 %v2690_v3  ;;  %1810 = vmatpush.msrb.mxu0 %v2716_v35 }
0x1188   :  { %1791 = vmatpush.msra.mxu3 %v2698_v16  ;;  %1811 = vmatpush.msrb.mxu0 %v2722_v23 }
0x118a   :  { %1792 = vmatpush.msra.mxu3 %v2706_v17  ;;  %1812 = vmatpush.msrb.mxu0 %v2729_v24 }
0x118c   :  { %1793 = vmatpush.msra.mxu3 %v2714_v63  ;;  %1813 = vmatpush.msrb.mxu0 %v2734_v18 }
0x11fa   :  { %v1447_v21 = vpop.f32.mrf.mxu0 }
0x11fb   :  { %v1473_v35 = vadd.f32 %v2831_v42, %v1447_v21 }
0x1200   :  { %v1427_v14 = vpop.f32.mrf.mxu3 }
0x1201   :  { %v1451_v29 = vrot.slane %v1427_v14, 2 }
0x1203   :  { %v1453_v6 = vadd.f32 %v1451_v29, %v2825_v56  ;;  %v1475_v56 = vrot.slane %v1473_v35, 2 }
0x1205   :  { %v1927_v30 = vmul.f32 -1.442695, %v1453_v6 }
0x1207   :  { %2023 = vpow2.f32 %v1927_v30 }
0x120d   :  { %v2024_v3 = vpop.eup %2023 }
0x120e   :  { %v1457_v9 = vadd.f32 1.0, %v2024_v3 }
0x1210   :  { %2025 = vrcp.f32 %v1457_v9  ;;  %v1469_v17 = vand.u32 2147483648, %v1457_v9  ;;  %v1467_v63 = vand.u32 2147483647, %v1457_v9  ;;  %vm1463_vm10 = vweird.f32 %v1457_v9 }
0x1212   :  { %v1470_v18 = vor.u32 1.1754944e-38, %v1469_v17  ;;  %vm1468_vm0 = vcmp.eq.f32.partialorder %v1467_v63, 8.507059e+37 }
0x1216   :  { %v2026_v13 = vpop.eup %2025 }
0x1217   :  { %v1459_v16 = vmul.f32 %v2026_v13, %v1457_v9  ;;  %vm1464_vm9 = vweird.f32 %v2026_v13 }
0x1218   :  { %vm1465_vm6 = vmor %vm1463_vm10, %vm1464_vm9 }
0x1219   :  { %v1460_v22 = vsub.f32 1.0, %v1459_v16 }
0x121b   :  { %v1461_v23 = vmul.f32 %v2026_v13, %v1460_v22 }
0x121d   :  { %v1462_v24 = vadd.f32 %v2026_v13, %v1461_v23 }
0x121f   :  { %v1466_v25 = vsel %vm1465_vm6, %v2026_v13, %v1462_v24 }
0x1220   :  { %v1471_v62 = vsel %vm1468_vm0, %v1470_v18, %v1466_v25 }
0x1221   :  { %v1477_v2 = vmul.f32 %v1475_v56, %v1471_v62  ;;  %v1480_v5 = vsub.f32 1.0, %v1471_v62  ;;  %v1488_v11 = vmul.f32 %v1486_v7, %v1471_v62 }
0x1223   :  { %v1478_v43 = vadd.f32 %v1477_v2, %v2809_v53 }
0x1225   :  { %2027 = vtanh.f32 %v1478_v43 }
0x122b   :  { %v2028_v4 = vpop.eup %2027 }
0x122c   :  { %1482 = vrot.lane.b32.xlu0 %v2028_v4, %s2267_s6 }
0x129e   :  { %v1483_v8 = vpop.permute.xlu0 %1482 }
0x129f   :  { %v1485_v12 = vmul.f32 %v1483_v8, %v1480_v5 }
0x12a1   :  { %v2919_v15 = vadd.f32 %v1488_v11, %v1485_v12 }
0x12a3   :  { %v1504_v20 = vrot.slane %v2919_v15, 6 }
0x12a5   :  { %1505 = vrot.lane.b32.xlu1 %v1504_v20, %s2267_s6 }
0x1317   :  { %v1506_v26 = vpop.permute.xlu1 %1505 }
0x1318   :  { %1928 = vmatmul.msk.f32.vlgmr.msrb.gmra.mxu1 %vm301_vm13, %v1506_v26  ;;  %1929 = vmatmul.msk.f32.vlgmr.msrb.gmra.mxu2 %vm301_vm13, %v1506_v26 }
0x1395   :  { %v1526_v53 = vpop.f32.mrf.mxu1 }
0x1396   :  { %v1549_v19 = vadd.f32 %v1526_v53, %v2813_v10 }
0x1398   :  { %v1930_v27 = vmul.f32 -1.442695, %v1549_v19 }
0x139a   :  { %2029 = vpow2.f32 %v1930_v27 }
0x139b   :  { %v1546_v37 = vpop.f32.mrf.mxu2 }
0x139c   :  { %v1569_v44 = vadd.f32 %v2831_v42, %v1546_v37 }
0x13a0   :  { %v2030_v55 = vpop.eup %2029 }
0x13a1   :  { %v1553_v36 = vadd.f32 1.0, %v2030_v55 }
0x13a3   :  { %2031 = vrcp.f32 %v1553_v36  ;;  %v1565_v28 = vand.u32 2147483648, %v1553_v36  ;;  %v1563_v34 = vand.u32 2147483647, %v1553_v36  ;;  %vm1559_vm8 = vweird.f32 %v1553_v36 }
0x13a5   :  { %v1566_v41 = vor.u32 1.1754944e-38, %v1565_v28  ;;  %vm1564_vm9 = vcmp.eq.f32.partialorder %v1563_v34, 8.507059e+37 }
0x13a9   :  { %v2032_v31 = vpop.eup %2031 }
0x13aa   :  { %v1555_v32 = vmul.f32 %v2032_v31, %v1553_v36  ;;  %vm1560_vm5 = vweird.f32 %v2032_v31 }
0x13ab   :  { %vm1561_vm7 = vmor %vm1559_vm8, %vm1560_vm5 }
0x13ac   :  { %v1556_v48 = vsub.f32 1.0, %v1555_v32 }
0x13ae   :  { %v1557_v33 = vmul.f32 %v2032_v31, %v1556_v48 }
0x13b0   :  { %v1558_v38 = vadd.f32 %v2032_v31, %v1557_v33 }
0x13b2   :  { %v1562_v51 = vsel %vm1561_vm7, %v2032_v31, %v1558_v38 }
0x13b3   :  { %v1567_v45 = vsel %vm1564_vm9, %v1566_v41, %v1562_v51 }
0x13b4   :  { %v1570_v1 = vmul.f32 %v1569_v44, %v1567_v45  ;;  %v1573_v49 = vsub.f32 1.0, %v1567_v45  ;;  %v1580_v58 = vmul.f32 %v1567_v45, %v1504_v20 }
0x13b6   :  { %v1571_v46 = vadd.f32 %v1570_v1, %v2805_v40 }
0x13b8   :  { %2033 = vtanh.f32 %v1571_v46 }
0x13be   :  { %v2034_v47 = vpop.eup %2033 }
0x13bf   :  { %1575 = vrot.lane.b32.xlu2 %v2034_v47, %s2267_s6 }
0x1419   :  { %v1576_v57 = vpop.permute.xlu2 %1575 }
0x141a   :  { %v1578_v59 = vmul.f32 %v1576_v57, %v1573_v49 }
0x141c   :  { %v1581_v60 = vadd.f32 %v1580_v58, %v1578_v59 }
0x141e   :  { %1583 = vrot.lane.b32.xlu0 %v1581_v60, %s2267_s6  ;;  %v1672_v18 = vrot.slane %v1581_v60, 6 }
0x1490   :  { %v2930_v54 = vpop.permute.xlu0 %1583 }
0x1491   :  { %1931 = vmatmul.msk.f32.vlgmr.msrb.gmra.mxu3 %vm301_vm13, %v2930_v54  ;;  %1932 = vmatmul.msk.f32.vlgmr.msra.gmra.mxu0 %vm301_vm13, %v2930_v54 }
0x150e   :  { %v1633_v16 = vpop.f32.mrf.mxu0 }
0x150f   :  { %v1659_v17 = vadd.f32 %v2831_v42, %v1633_v16 }
0x1511   :  { %v1661_v56 = vrot.slane %v1659_v17, 6 }
0x1514   :  { %v1613_v61 = vpop.f32.mrf.mxu3 }
0x1515   :  { %v1637_v14 = vrot.slane %v1613_v61, 6 }
0x1517   :  { %v1639_v29 = vadd.f32 %v1637_v14, %v2817_v50 }
0x1519   :  { %v1933_v6 = vmul.f32 -1.442695, %v1639_v29 }
0x151b   :  { %2035 = vpow2.f32 %v1933_v6 }
0x1521   :  { %v2036_v30 = vpop.eup %2035 }
0x1522   :  { %v1643_v3 = vadd.f32 1.0, %v2036_v30 }
0x1524   :  { %2037 = vrcp.f32 %v1643_v3  ;;  %v1655_v22 = vand.u32 2147483648, %v1643_v3  ;;  %v1653_v23 = vand.u32 2147483647, %v1643_v3  ;;  %vm1649_vm6 = vweird.f32 %v1643_v3 }
0x1526   :  { %v1656_v24 = vor.u32 1.1754944e-38, %v1655_v22  ;;  %vm1654_vm5 = vcmp.eq.f32.partialorder %v1653_v23, 8.507059e+37 }
0x152a   :  { %v2038_v9 = vpop.eup %2037 }
0x152b   :  { %v1645_v13 = vmul.f32 %v2038_v9, %v1643_v3  ;;  %vm1650_vm10 = vweird.f32 %v2038_v9 }
0x152c   :  { %vm1651_vm0 = vmor %vm1649_vm6, %vm1650_vm10 }
0x152d   :  { %v1646_v21 = vsub.f32 1.0, %v1645_v13 }
0x152f   :  { %v1647_v35 = vmul.f32 %v2038_v9, %v1646_v21 }
0x1531   :  { %v1648_v63 = vadd.f32 %v2038_v9, %v1647_v35 }
0x1533   :  { %v1652_v25 = vsel %vm1651_vm0, %v2038_v9, %v1648_v63 }
0x1534   :  { %v1657_v62 = vsel %vm1654_vm5, %v1656_v24, %v1652_v25 }
0x1535   :  { %v1663_v2 = vmul.f32 %v1661_v56, %v1657_v62  ;;  %v1674_v43 = vmul.f32 %v1672_v18, %v1657_v62  ;;  %v1666_v7 = vsub.f32 1.0, %v1657_v62 }
0x1537   :  { %v1664_v4 = vadd.f32 %v1663_v2, %v2801_v39 }
0x1539   :  { %2039 = vtanh.f32 %v1664_v4 }
0x153f   :  { %v2040_v5 = vpop.eup %2039 }
0x1540   :  { %1668 = vrot.lane.b32.xlu1 %v2040_v5, %s2267_s6 }
0x15b2   :  { %v1669_v8 = vpop.permute.xlu1 %1668 }
0x15b3   :  { %v1671_v11 = vmul.f32 %v1669_v8, %v1666_v7 }
0x15b5   :  { %v1675_v12 = vadd.f32 %v1674_v43, %v1671_v11 }
0x15b7   :  { %v1682_v20 = vrot.slane %v1675_v12, 2  ;;  %v1763_v58 = vrot.slane %v1675_v12, 6 }
0x15b9   :  { %1683 = vrot.lane.b32.xlu2 %v1682_v20, %s2267_s6 }
0x1613   :  { %v1684_v26 = vpop.permute.xlu2 %1683 }
0x1614   :  { %1934 = vmatmul.msk.f32.vlgmr.msra.gmra.mxu1 %vm301_vm13, %v1684_v26  ;;  %1935 = vmatmul.msk.f32.vlgmr.msra.gmra.mxu2 %vm301_vm13, %v1684_v26 }
0x1691   :  { %v1704_v53 = vpop.f32.mrf.mxu1 }
0x1692   :  { %v1728_v19 = vrot.slane %v1704_v53, 4 }
0x1694   :  { %v1730_v27 = vadd.f32 %v1728_v19, %v2813_v10 }
0x1696   :  { %v1936_v55 = vmul.f32 -1.442695, %v1730_v27 }
0x1697   :  { %v1724_v28 = vpop.f32.mrf.mxu2 }
0x1698   :  { %2041 = vpow2.f32 %v1936_v55  ;;  %v1750_v41 = vadd.f32 %v2831_v42, %v1724_v28 }
0x169a   :  { %v1752_v45 = vrot.slane %v1750_v41, 4 }
0x169e   :  { %v2042_v36 = vpop.eup %2041 }
0x169f   :  { %v1734_v31 = vadd.f32 1.0, %v2042_v36 }
0x16a1   :  { %2043 = vrcp.f32 %v1734_v31  ;;  %v1746_v34 = vand.u32 2147483648, %v1734_v31  ;;  %v1744_v38 = vand.u32 2147483647, %v1734_v31  ;;  %vm1740_vm7 = vweird.f32 %v1734_v31 }
0x16a3   :  { %v1747_v44 = vor.u32 1.1754944e-38, %v1746_v34  ;;  %vm1745_vm10 = vcmp.eq.f32.partialorder %v1744_v38, 8.507059e+37 }
0x16a7   :  { %v2044_v32 = vpop.eup %2043 }
0x16a8   :  { %v1736_v48 = vmul.f32 %v2044_v32, %v1734_v31  ;;  %vm1741_vm8 = vweird.f32 %v2044_v32 }
0x16a9   :  { %vm1742_vm9 = vmor %vm1740_vm7, %vm1741_vm8 }
0x16aa   :  { %v1737_v33 = vsub.f32 1.0, %v1736_v48 }
0x16ac   :  { %v1738_v37 = vmul.f32 %v2044_v32, %v1737_v33 }
0x16ae   :  { %v1739_v51 = vadd.f32 %v2044_v32, %v1738_v37 }
0x16b0   :  { %v1743_v10 = vsel %vm1742_vm9, %v2044_v32, %v1739_v51 }
0x16b1   :  { %v1748_v1 = vsel %vm1745_vm10, %v1747_v44, %v1743_v10 }
0x16b2   :  { %v1754_v46 = vmul.f32 %v1752_v45, %v1748_v1  ;;  %v1757_v57 = vsub.f32 1.0, %v1748_v1  ;;  %v1765_v60 = vmul.f32 %v1763_v58, %v1748_v1 }
0x16b4   :  { %v1755_v47 = vadd.f32 %v1754_v46, %v2805_v40 }
0x16b6   :  { %2045 = vtanh.f32 %v1755_v47 }
0x16bc   :  { %v2046_v49 = vpop.eup %2045 }
0x16bd   :  { %1759 = vrot.lane.b32.xlu0 %v2046_v49, %s2267_s6 }
0x16c5   :  { %1309 = vrot.lane.b32.xlu0 %v2865_v52, %s2267_s6 }
0x16cd   :  { %1677 = vrot.lane.b32.xlu0 %v1675_v12, %s2267_s6 }
0x172f   :  { %v1760_v59 = vpop.permute.xlu0 %1759 }
0x1730   :  { %v1762_v61 = vmul.f32 %v1760_v59, %v1757_v57 }
0x1732   :  { %v1766_v14 = vadd.f32 %v1765_v60, %v1762_v61 }
0x1734   :  { %v1773_v29 = vrot.slane %v1766_v14, 4  ;;  %v1854_v4 = vrot.slane %v1766_v14, 6 }
0x1736   :  { %1774 = vrot.lane.b32.xlu1 %v1773_v29, %s2267_s6 }
0x1737   :  { %v1310_v6 = vpop.permute.xlu0 %1309 }
0x1738   :  { %1312 = vst.msk [vmem:[#allocation15] sm:$0xc] %vm480_vm1, %v1310_v6 }
0x1739   :  { %1313 = vst.msk [vmem:[#allocation15 + $0xa] sm:$0xc] %vm482_vm2, %v1310_v6 }
0x173e   :  { %1400 = vrot.lane.b32.xlu1 %v2892_v0, %s2267_s6 }
0x173f   :  { %v1678_v30 = vpop.permute.xlu0 %1677 }
0x1746   :  { %1768 = vrot.lane.b32.xlu1 %v1766_v14, %s2267_s6 }
0x17a8   :  { %v1775_v40 = vpop.permute.xlu1 %1774 }
0x17a9   :  { %1937 = vmatmul.msk.f32.vlgmr.msra.gmra.mxu3 %vm301_vm13, %v1775_v40  ;;  %1938 = vmatmul.msk.f32.vlgmr.msrb.gmra.mxu0 %vm301_vm13, %v1775_v40 }
0x17b0   :  { %v1401_v52 = vpop.permute.xlu1 %1400 }
0x17b1   :  { %1403 = vst.msk [vmem:[#allocation15] sm:$0x30] %vm573_vm3, %v1401_v52 }
0x17b2   :  { %1404 = vst.msk [vmem:[#allocation15 + $0x6] sm:$0x30] %vm575_vm4, %v1401_v52 }
0x17b3   :  { %1680 = vst.msk [vmem:[#allocation15 + $0x8] sm:$0xc] %vm480_vm1, %v1678_v30 }
0x17b4   :  { %1681 = vst.msk [vmem:[#allocation15 + $0x2] sm:$0xc] %vm482_vm2, %v1678_v30 }
0x17b8   :  { %v1769_v3 = vpop.permute.xlu1 %1768 }
0x17b9   :  { %1771 = vst.msk [vmem:[#allocation15 + $0x8] sm:$0x30] %vm573_vm3, %v1769_v3 }
0x17ba   :  { %1772 = vst.msk [vmem:[#allocation15 - $0x2] sm:$0x30] %vm575_vm4, %v1769_v3 }
0x1826   :  { %v1815_v23 = vpop.f32.mrf.mxu0 }
0x1827   :  { %v1841_v18 = vadd.f32 %v2831_v42, %v1815_v23 }
0x182c   :  { %v1795_v0 = vpop.f32.mrf.mxu3 }
0x182d   :  { %v1819_v9 = vrot.slane %v1795_v0, 2 }
0x182f   :  { %v1821_v13 = vadd.f32 %v1819_v9, %v2817_v50  ;;  %v1843_v50 = vrot.slane %v1841_v18, 2 }
0x1831   :  { %v1939_v16 = vmul.f32 -1.442695, %v1821_v13 }
0x1833   :  { %2047 = vpow2.f32 %v1939_v16 }
0x1839   :  { %v2048_v21 = vpop.eup %2047 }
0x183a   :  { %v1825_v22 = vadd.f32 1.0, %v2048_v21 }
0x183c   :  { %2049 = vrcp.f32 %v1825_v22  ;;  %v1837_v24 = vand.u32 2147483648, %v1825_v22  ;;  %v1835_v25 = vand.u32 2147483647, %v1825_v22  ;;  %vm1831_vm1 = vweird.f32 %v1825_v22 }
0x183e   :  { %v1838_v2 = vor.u32 1.1754944e-38, %v1837_v24  ;;  %vm1836_vm3 = vcmp.eq.f32.partialorder %v1835_v25, 8.507059e+37 }
0x1842   :  { %v2050_v17 = vpop.eup %2049 }
0x1843   :  { %v1827_v35 = vmul.f32 %v2050_v17, %v1825_v22  ;;  %vm1832_vm13 = vweird.f32 %v2050_v17 }
0x1844   :  { %vm1833_vm2 = vmor %vm1831_vm1, %vm1832_vm13 }
0x1845   :  { %v1828_v63 = vsub.f32 1.0, %v1827_v35 }
0x1847   :  { %v1829_v56 = vmul.f32 %v2050_v17, %v1828_v63 }
0x1849   :  { %v1830_v62 = vadd.f32 %v2050_v17, %v1829_v56 }
0x184b   :  { %v1834_v43 = vsel %vm1833_vm2, %v2050_v17, %v1830_v62 }
0x184c   :  { %v1839_v5 = vsel %vm1836_vm3, %v1838_v2, %v1834_v43 }
0x184d   :  { %v1845_v7 = vmul.f32 %v1843_v50, %v1839_v5  ;;  %v1856_v8 = vmul.f32 %v1854_v4, %v1839_v5  ;;  %v1848_v42 = vsub.f32 1.0, %v1839_v5 }
0x184f   :  { %v1846_v11 = vadd.f32 %v1845_v7, %v2801_v39 }
0x1851   :  { %2051 = vtanh.f32 %v1846_v11 }
0x1857   :  { %v2052_v12 = vpop.eup %2051 }
0x1858   :  { %1850 = vrot.lane.b32.xlu2 %v2052_v12, %s2267_s6 }
0x1860   :  { %1491 = vrot.lane.b32.xlu2 %v2919_v15, %s2267_s6 }
0x18b2   :  { %v1851_v20 = vpop.permute.xlu2 %1850 }
0x18b3   :  { %v1853_v26 = vmul.f32 %v1851_v20, %v1848_v42 }
0x18b5   :  { %v1857_v53 = vadd.f32 %v1856_v8, %v1853_v26 }
0x18b7   :  { %1859 = vrot.lane.b32.xlu2 %v1857_v53, %s2267_s6 }
0x18ba   :  { %v1492_v19 = vpop.permute.xlu2 %1491 }
0x18bb   :  { %1494 = vst.msk [vmem:[#allocation15] sm:$0xc0] %vm666_vm11, %v1492_v19 }
0x18bc   :  { %1495 = vst.msk [vmem:[#allocation15 + $0x2] sm:$0xc0] %vm668_vm15, %v1492_v19 }
0x18bd   :  { %1586 = vst.msk [vmem:[#allocation15 + $0x8] sm:$0x3] %vm384_vm12, %v2930_v54 }
0x18be   :  { %1587 = vst.msk [vmem:[#allocation15 + $0x6] sm:$0x3] %vm386_vm14, %v2930_v54 }
0x1911   :  { %v1860_v39 = vpop.permute.xlu2 %1859 }
0x1912   :  { %1862 = vst.msk [vmem:[#allocation15 + $0x8] sm:$0xc0] %vm666_vm11, %v1860_v39 }
0x1913   :  { %1863 = vst.msk [vmem:[#allocation15 - $0x6] sm:$0xc0] %vm668_vm15, %v1860_v39 }
0x1914   :  { %1876 = dma.vmem_to_hbm [thread:$0]  %s1869_s17, 256, %s1871_s20, [#allocation5], %s2256_s25, %s2256_s25, %s2257_s26  }
0x1915   :  { %2253 = dma.done.wait [#allocation5], 256  }
0x1916   :  { %2254 = vsyncadd [#allocation5], 4294967040 }
0x1917   :  { %1881 = vsyncpa [#allocation4], 1 }
0x1918   :  { %1882 = vsyncpa [#allocation7], 1 }
0x1919   :  { %1883 = vsyncpa [#allocation10], 1 }
0x191a   :  { %1884 = vsyncpa [#allocation13], 1 }
0x191b   :  { %1885 = vsyncpa [#allocation5], 1 }

</bundles_post_ra>
